<compile_context>
chip_gen: v5e
topology: v5e:2x2
jax: 0.10.0
libtpu: 0.0.40
codegen_flags: <defaults>
</compile_context>

<pallas_src>
import jax
import jax.numpy as jnp
from jax import lax
from jax.experimental import pallas as pl
from jax.experimental.pallas import tpu as pltpu


# ----------------------------- fused Pallas kernel -----------------------------

def _make_fused_bottleneck_kernel(H, W, Cin, P, Cout):
    """Returns a kernel closure for one NHWC image per grid step."""

    def kernel(x_ref, w1_ref, b1_ref, w2_ref, b2_ref, w3_ref, b3_ref,
               o_ref, hp_ref, col_ref):
        # x_ref : (1, H, W, Cin)        input tile (also the residual)
        # w1_ref: (Cin, P)  bf16/f32    conv1 weight with bn1 scale folded in
        # w2_ref: (9*P, P)  bf16/f32    conv2 weight (im2col layout, bn2 folded)
        # w3_ref: (P, Cout) bf16/f32    conv3 weight with bn3 scale folded in
        # b*_ref: (1, C) f32            folded bn biases
        # o_ref : (1, H, W, Cout)
        # hp_ref : VMEM (H+2, W+2, P) f32       zero-padded h1 (halo scratch)
        # col_ref: VMEM (H*W, 9*P)   mm_dtype   im2col matrix
        mm_dtype = w1_ref.dtype

        # Zero only the halo border (the interior is fully overwritten below).
        # Done every step so correctness does not depend on how the parallel
        # grid axis is split across cores.
        zrow = jnp.zeros((1, W + 2, P), jnp.float32)
        hp_ref[0:1, :, :] = zrow
        hp_ref[H + 1:H + 2, :, :] = zrow
        zcol = jnp.zeros((H + 2, 1, P), jnp.float32)
        hp_ref[:, 0:1, :] = zcol
        hp_ref[:, W + 1:W + 2, :] = zcol

        # ---- conv1 (1x1) + bn1 + relu ----
        x2d = x_ref[...].reshape(H * W, Cin).astype(jnp.float32)   # residual too
        h1 = jnp.dot(x2d.astype(mm_dtype), w1_ref[...],
                     preferred_element_type=jnp.float32)
        h1 = jnp.maximum(h1 + b1_ref[...], 0.0)
        hp_ref[1:H + 1, 1:W + 1, :] = h1.reshape(H, W, P)

        # ---- conv2 (3x3, pad=1) via im2col + ONE wide-K MXU matmul ----
        for ky in range(3):                       # static 9-tap unroll
            for kx in range(3):
                tap = ky * 3 + kx
                col_ref[:, tap * P:(tap + 1) * P] = (
                    hp_ref[ky:ky + H, kx:kx + W, :]
                    .reshape(H * W, P).astype(mm_dtype))
        h2 = jnp.dot(col_ref[...], w2_ref[...],
                     preferred_element_type=jnp.float32)
        h2 = jnp.maximum(h2 + b2_ref[...], 0.0)

        # ---- conv3 (1x1) + bn3 + residual add + relu ----
        h3 = jnp.dot(h2.astype(mm_dtype), w3_ref[...],
                     preferred_element_type=jnp.float32)
        out = jnp.maximum(h3 + b3_ref[...] + x2d, 0.0)
        o_ref[...] = out.reshape(1, H, W, Cout).astype(o_ref.dtype)

    return kernel


# ----------------------------- wrappers -----------------------------

def _fold_bn(gamma, beta, mean, var, eps=1e-5):
    scale = gamma / jnp.sqrt(var + eps)
    bias = beta - mean * scale
    return scale.astype(jnp.float32), bias.astype(jnp.float32)


def bottleneck_forward_nhwc(x_nhwc, params, *, matmul_dtype=jnp.float32, stride=1):
    """Fused bottleneck on NHWC input. downsample=None => stride must be 1."""
    assert stride == 1, "downsample=None implies stride=1 for the residual add"
    N, H, W, Cin = x_nhwc.shape
    P = params["w1_pt"].shape[0]                 # planes
    Cout = P * 4
    assert Cin == Cout, "residual add requires inplanes == planes*4"

    s1, b1 = _fold_bn(params["g1"], params["be1"], params["m1"], params["v1"])
    s2, b2 = _fold_bn(params["g2"], params["be2"], params["m2"], params["v2"])
    s3, b3 = _fold_bn(params["g3"], params["be3"], params["m3"], params["v3"])

    # Fold BN scales into the conv weights (per output channel) on the host.
    w1 = (jnp.transpose(params["w1_pt"][:, :, 0, 0], (1, 0))
          * s1[None, :]).astype(matmul_dtype)                      # (Cin, P)
    w2 = jnp.transpose(params["w2_pt"], (2, 3, 1, 0)).reshape(9 * P, P)
    w2 = (w2 * s2[None, :]).astype(matmul_dtype)                   # (9P, P), tap-major
    w3 = (jnp.transpose(params["w3_pt"][:, :, 0, 0], (1, 0))
          * s3[None, :]).astype(matmul_dtype)                      # (P, Cout)
    b1 = b1.reshape(1, P)
    b2 = b2.reshape(1, P)
    b3 = b3.reshape(1, Cout)

    kernel = _make_fused_bottleneck_kernel(H, W, Cin, P, Cout)

    itemsize = x_nhwc.dtype.itemsize
    w_itemsize = jnp.dtype(matmul_dtype).itemsize
    flops = 2 * N * H * W * (Cin * P + 9 * P * P + P * Cout)
    bytes_accessed = (N * H * W * (Cin + Cout) * itemsize
                      + (w1.size + w2.size + w3.size) * w_itemsize)

    return pl.pallas_call(
        kernel,
        out_shape=jax.ShapeDtypeStruct((N, H, W, Cout), x_nhwc.dtype),
        grid=(N,),
        in_specs=[
            pl.BlockSpec((1, H, W, Cin), lambda n: (n, 0, 0, 0)),
            pl.BlockSpec((Cin, P), lambda n: (0, 0)),
            pl.BlockSpec((1, P), lambda n: (0, 0)),
            pl.BlockSpec((9 * P, P), lambda n: (0, 0)),
            pl.BlockSpec((1, P), lambda n: (0, 0)),
            pl.BlockSpec((P, Cout), lambda n: (0, 0)),
            pl.BlockSpec((1, Cout), lambda n: (0, 0)),
        ],
        out_specs=pl.BlockSpec((1, H, W, Cout), lambda n: (n, 0, 0, 0)),
        scratch_shapes=[
            pltpu.VMEM((H + 2, W + 2, P), jnp.float32),   # padded h1 halo
            pltpu.VMEM((H * W, 9 * P), matmul_dtype),     # im2col matrix
        ],
        compiler_params=pltpu.CompilerParams(
            dimension_semantics=("parallel",),            # megacore-shardable on v7x
            vmem_limit_bytes=48 * 1024 * 1024),           # headroom under v7x 64 MiB
        cost_estimate=pl.CostEstimate(
            flops=flops, transcendentals=0, bytes_accessed=bytes_accessed),
    )(x_nhwc, w1, b1, w2, b2, w3, b3)


def bottleneck_forward(x_nchw, params, *, matmul_dtype=jnp.float32, stride=1):
    """PyTorch-layout wrapper. x_nchw: (N, inplanes, H, W)."""
    x = jnp.transpose(x_nchw, (0, 2, 3, 1))               # NHWC (glue only)
    out = bottleneck_forward_nhwc(x, params, matmul_dtype=matmul_dtype,
                                  stride=stride)
    return jnp.transpose(out, (0, 3, 1, 2))               # back to NCHW


# ----------------------------- pure-JAX reference -----------------------------

def _ref_conv(x_nhwc, w_pt, pad):
    w_hwio = jnp.transpose(w_pt, (2, 3, 1, 0))
    return lax.conv_general_dilated(x_nhwc, w_hwio, (1, 1), [(pad, pad), (pad, pad)],
                                    dimension_numbers=("NHWC", "HWIO", "NHWC"))


def _ref_bn(x, g, b, m, v, eps=1e-5):
    return (x - m) / jnp.sqrt(v + eps) * g + b


def bottleneck_reference(x_nchw, p):
    x = jnp.transpose(x_nchw, (0, 2, 3, 1))
    h = jax.nn.relu(_ref_bn(_ref_conv(x, p["w1_pt"], 0), p["g1"], p["be1"], p["m1"], p["v1"]))
    h = jax.nn.relu(_ref_bn(_ref_conv(h, p["w2_pt"], 1), p["g2"], p["be2"], p["m2"], p["v2"]))
    h = _ref_bn(_ref_conv(h, p["w3_pt"], 0), p["g3"], p["be3"], p["m3"], p["v3"])
    out = jax.nn.relu(h + x)
    return jnp.transpose(out, (0, 3, 1, 2))


# ----------------------------- main -----------------------------

if __name__ == "__main__":
    key = jax.random.PRNGKey(0)
    planes, inplanes = 4, 16            # expansion=4 -> inplanes == planes*4
    N, H, W = 2, 16, 16

    ks = jax.random.split(key, 16)

    def nrm(k, shape, scale=0.1):
        return scale * jax.random.normal(k, shape, dtype=jnp.float32)

    params = {
        # PyTorch-layout conv weights (Cout, Cin, kH, kW), bias=False
        "w1_pt": nrm(ks[0], (planes, inplanes, 1, 1)),
        "w2_pt": nrm(ks[1], (planes, planes, 3, 3)),
        "w3_pt": nrm(ks[2], (planes * 4, planes, 1, 1)),
        # BN params (gamma, beta, running_mean, running_var) per layer
        "g1": 1.0 + nrm(ks[3], (planes,)), "be1": nrm(ks[4], (planes,)),
        "m1": nrm(ks[5], (planes,)),       "v1": jnp.abs(nrm(ks[6], (planes,), 1.0)) + 0.5,
        "g2": 1.0 + nrm(ks[7], (planes,)), "be2": nrm(ks[8], (planes,)),
        "m2": nrm(ks[9], (planes,)),       "v2": jnp.abs(nrm(ks[10], (planes,), 1.0)) + 0.5,
        "g3": 1.0 + nrm(ks[11], (planes * 4,)), "be3": nrm(ks[12], (planes * 4,)),
        "m3": nrm(ks[13], (planes * 4,)),       "v3": jnp.abs(nrm(ks[14], (planes * 4,), 1.0)) + 0.5,
    }

    x = jax.random.normal(ks[15], (N, inplanes, H, W), dtype=jnp.float32)  # NCHW

    ref = jax.block_until_ready(bottleneck_reference(x, params))

    # f32 matmul path: tight check against the pure-JAX reference.
    out_f32 = jax.block_until_ready(bottleneck_forward(x, params, matmul_dtype=jnp.float32))
    assert out_f32.shape == (N, planes * 4, H, W), out_f32.shape
    assert jnp.allclose(out_f32, ref, atol=1e-4, rtol=1e-4), \
        float(jnp.max(jnp.abs(out_f32 - ref)))

    # bf16 matmul path (MXU/bandwidth-friendly on v6e/v7x): loose check.
    out_bf16 = jax.block_until_ready(bottleneck_forward(x, params, matmul_dtype=jnp.bfloat16))
    assert out_bf16.shape == (N, planes * 4, H, W), out_bf16.shape
    assert jnp.allclose(out_bf16, ref, atol=5e-2, rtol=5e-2), \
        float(jnp.max(jnp.abs(out_bf16 - ref)))

    print("KERNEL_OK")
</pallas_src>

<mosaic_0001>
module attributes {stable_mosaic.version = 11 : i64} {
  func.func @kernel(%arg0: i32, %arg1: memref<1x16x16x16xf32, #tpu.memory_space<vmem>>, %arg2: memref<16x4xf32, #tpu.memory_space<vmem>>, %arg3: memref<1x4xf32, #tpu.memory_space<vmem>>, %arg4: memref<36x4xf32, #tpu.memory_space<vmem>>, %arg5: memref<1x4xf32, #tpu.memory_space<vmem>>, %arg6: memref<4x16xf32, #tpu.memory_space<vmem>>, %arg7: memref<1x16xf32, #tpu.memory_space<vmem>>, %arg8: memref<1x16x16x16xf32, #tpu.memory_space<vmem>>, %arg9: memref<18x18x4xf32, #tpu.memory_space<vmem>>, %arg10: memref<256x36xf32, #tpu.memory_space<vmem>>) attributes {dimension_semantics = [#tpu.dimension_semantics<parallel>], iteration_bounds = array<i64: 2>, scalar_prefetch = 0 : i64, scratch_operands = 2 : i64, tpu.core_type = #tpu.core_type<tc>, window_params = [{transform_indices = @transform_0, window_bounds = array<i64: 1, 16, 16, 16>}, {pipeline_mode = #tpu.pipeline_mode<synchronous>, transform_indices = @transform_1, window_bounds = array<i64: 16, 4>}, {pipeline_mode = #tpu.pipeline_mode<synchronous>, transform_indices = @transform_2, window_bounds = array<i64: 1, 4>}, {pipeline_mode = #tpu.pipeline_mode<synchronous>, transform_indices = @transform_3, window_bounds = array<i64: 36, 4>}, {pipeline_mode = #tpu.pipeline_mode<synchronous>, transform_indices = @transform_4, window_bounds = array<i64: 1, 4>}, {pipeline_mode = #tpu.pipeline_mode<synchronous>, transform_indices = @transform_5, window_bounds = array<i64: 4, 16>}, {pipeline_mode = #tpu.pipeline_mode<synchronous>, transform_indices = @transform_6, window_bounds = array<i64: 1, 16>}, {transform_indices = @transform_7, window_bounds = array<i64: 1, 16, 16, 16>}]} {
    %cst = arith.constant 0.000000e+00 : f32
    %0 = vector.broadcast %cst : f32 to vector<1x18x4xf32>
    %c0 = arith.constant 0 : index
    %c0_0 = arith.constant 0 : index
    %c0_1 = arith.constant 0 : index
    %1 = vector.load %arg9[%c0, %c0_0, %c0_1] : memref<18x18x4xf32, #tpu.memory_space<vmem>>, vector<1x18x4xf32>
    tpu.vector_store %arg9[%c0, %c0_0, %c0_1], %0 {strides = array<i32>} : memref<18x18x4xf32, #tpu.memory_space<vmem>>, vector<1x18x4xf32>,
    %c17 = arith.constant 17 : index
    %c0_2 = arith.constant 0 : index
    %c0_3 = arith.constant 0 : index
    %2 = vector.load %arg9[%c17, %c0_2, %c0_3] : memref<18x18x4xf32, #tpu.memory_space<vmem>>, vector<1x18x4xf32>
    tpu.vector_store %arg9[%c17, %c0_2, %c0_3], %0 {strides = array<i32>} : memref<18x18x4xf32, #tpu.memory_space<vmem>>, vector<1x18x4xf32>,
    %cst_4 = arith.constant 0.000000e+00 : f32
    %3 = vector.broadcast %cst_4 : f32 to vector<18x1x4xf32>
    %c0_5 = arith.constant 0 : index
    %c0_6 = arith.constant 0 : index
    %c0_7 = arith.constant 0 : index
    %4 = vector.load %arg9[%c0_5, %c0_6, %c0_7] : memref<18x18x4xf32, #tpu.memory_space<vmem>>, vector<18x1x4xf32>
    tpu.vector_store %arg9[%c0_5, %c0_6, %c0_7], %3 {strides = array<i32>} : memref<18x18x4xf32, #tpu.memory_space<vmem>>, vector<18x1x4xf32>,
    %c0_8 = arith.constant 0 : index
    %c17_9 = arith.constant 17 : index
    %c0_10 = arith.constant 0 : index
    %5 = vector.load %arg9[%c0_8, %c17_9, %c0_10] : memref<18x18x4xf32, #tpu.memory_space<vmem>>, vector<18x1x4xf32>
    tpu.vector_store %arg9[%c0_8, %c17_9, %c0_10], %3 {strides = array<i32>} : memref<18x18x4xf32, #tpu.memory_space<vmem>>, vector<18x1x4xf32>,
    %c0_11 = arith.constant 0 : index
    %c0_12 = arith.constant 0 : index
    %c0_13 = arith.constant 0 : index
    %c0_14 = arith.constant 0 : index
    %6 = vector.load %arg1[%c0_11, %c0_12, %c0_13, %c0_14] : memref<1x16x16x16xf32, #tpu.memory_space<vmem>>, vector<1x16x16x16xf32>
    %7 = vector.shape_cast %6 : vector<1x16x16x16xf32> to vector<256x16xf32>
    %c0_15 = arith.constant 0 : index
    %c0_16 = arith.constant 0 : index
    %8 = vector.load %arg2[%c0_15, %c0_16] : memref<16x4xf32, #tpu.memory_space<vmem>>, vector<16x4xf32>
    %cst_17 = arith.constant dense<0.000000e+00> : vector<256x4xf32>
    %9 = tpu.matmul %7, %8, %cst_17 {dimension_numbers = #tpu.dot_dimension_numbers<[1], [0], [0], [1], [0, 0, 1, 1], [], []>} : vector<256x16xf32>, vector<16x4xf32>, vector<256x4xf32> -> vector<256x4xf32>
    %c0_18 = arith.constant 0 : index
    %c0_19 = arith.constant 0 : index
    %10 = vector.load %arg3[%c0_18, %c0_19] : memref<1x4xf32, #tpu.memory_space<vmem>>, vector<1x4xf32>
    %11 = vector.broadcast %10 : vector<1x4xf32> to vector<256x4xf32>
    %12 = arith.addf %9, %11 : vector<256x4xf32>
    %cst_20 = arith.constant 0.000000e+00 : f32
    %13 = vector.broadcast %cst_20 : f32 to vector<256x4xf32>
    %14 = arith.maximumf %12, %13 : vector<256x4xf32>
    %15 = vector.shape_cast %14 : vector<256x4xf32> to vector<16x16x4xf32>
    %c1 = arith.constant 1 : index
    %c1_21 = arith.constant 1 : index
    %c0_22 = arith.constant 0 : index
    %16 = vector.load %arg9[%c1, %c1_21, %c0_22] : memref<18x18x4xf32, #tpu.memory_space<vmem>>, vector<16x16x4xf32>
    tpu.vector_store %arg9[%c1, %c1_21, %c0_22], %15 {strides = array<i32>} : memref<18x18x4xf32, #tpu.memory_space<vmem>>, vector<16x16x4xf32>,
    %c0_23 = arith.constant 0 : index
    %c0_24 = arith.constant 0 : index
    %c0_25 = arith.constant 0 : index
    %17 = vector.load %arg9[%c0_23, %c0_24, %c0_25] : memref<18x18x4xf32, #tpu.memory_space<vmem>>, vector<16x16x4xf32>
    %18 = vector.shape_cast %17 : vector<16x16x4xf32> to vector<256x4xf32>
    %c0_26 = arith.constant 0 : index
    %c0_27 = arith.constant 0 : index
    %19 = vector.load %arg10[%c0_26, %c0_27] : memref<256x36xf32, #tpu.memory_space<vmem>>, vector<256x4xf32>
    tpu.vector_store %arg10[%c0_26, %c0_27], %18 {strides = array<i32>} : memref<256x36xf32, #tpu.memory_space<vmem>>, vector<256x4xf32>,
    %c0_28 = arith.constant 0 : index
    %c1_29 = arith.constant 1 : index
    %c0_30 = arith.constant 0 : index
    %20 = vector.load %arg9[%c0_28, %c1_29, %c0_30] : memref<18x18x4xf32, #tpu.memory_space<vmem>>, vector<16x16x4xf32>
    %21 = vector.shape_cast %20 : vector<16x16x4xf32> to vector<256x4xf32>
    %c0_31 = arith.constant 0 : index
    %c4 = arith.constant 4 : index
    %22 = vector.load %arg10[%c0_31, %c4] : memref<256x36xf32, #tpu.memory_space<vmem>>, vector<256x4xf32>
    tpu.vector_store %arg10[%c0_31, %c4], %21 {strides = array<i32>} : memref<256x36xf32, #tpu.memory_space<vmem>>, vector<256x4xf32>,
    %c0_32 = arith.constant 0 : index
    %c2 = arith.constant 2 : index
    %c0_33 = arith.constant 0 : index
    %23 = vector.load %arg9[%c0_32, %c2, %c0_33] : memref<18x18x4xf32, #tpu.memory_space<vmem>>, vector<16x16x4xf32>
    %24 = vector.shape_cast %23 : vector<16x16x4xf32> to vector<256x4xf32>
    %c0_34 = arith.constant 0 : index
    %c8 = arith.constant 8 : index
    %25 = vector.load %arg10[%c0_34, %c8] : memref<256x36xf32, #tpu.memory_space<vmem>>, vector<256x4xf32>
    tpu.vector_store %arg10[%c0_34, %c8], %24 {strides = array<i32>} : memref<256x36xf32, #tpu.memory_space<vmem>>, vector<256x4xf32>,
    %c1_35 = arith.constant 1 : index
    %c0_36 = arith.constant 0 : index
    %c0_37 = arith.constant 0 : index
    %26 = vector.load %arg9[%c1_35, %c0_36, %c0_37] : memref<18x18x4xf32, #tpu.memory_space<vmem>>, vector<16x16x4xf32>
    %27 = vector.shape_cast %26 : vector<16x16x4xf32> to vector<256x4xf32>
    %c0_38 = arith.constant 0 : index
    %c12 = arith.constant 12 : index
    %28 = vector.load %arg10[%c0_38, %c12] : memref<256x36xf32, #tpu.memory_space<vmem>>, vector<256x4xf32>
    tpu.vector_store %arg10[%c0_38, %c12], %27 {strides = array<i32>} : memref<256x36xf32, #tpu.memory_space<vmem>>, vector<256x4xf32>,
    %c1_39 = arith.constant 1 : index
    %c1_40 = arith.constant 1 : index
    %c0_41 = arith.constant 0 : index
    %29 = vector.load %arg9[%c1_39, %c1_40, %c0_41] : memref<18x18x4xf32, #tpu.memory_space<vmem>>, vector<16x16x4xf32>
    %30 = vector.shape_cast %29 : vector<16x16x4xf32> to vector<256x4xf32>
    %c0_42 = arith.constant 0 : index
    %c16 = arith.constant 16 : index
    %31 = vector.load %arg10[%c0_42, %c16] : memref<256x36xf32, #tpu.memory_space<vmem>>, vector<256x4xf32>
    tpu.vector_store %arg10[%c0_42, %c16], %30 {strides = array<i32>} : memref<256x36xf32, #tpu.memory_space<vmem>>, vector<256x4xf32>,
    %c1_43 = arith.constant 1 : index
    %c2_44 = arith.constant 2 : index
    %c0_45 = arith.constant 0 : index
    %32 = vector.load %arg9[%c1_43, %c2_44, %c0_45] : memref<18x18x4xf32, #tpu.memory_space<vmem>>, vector<16x16x4xf32>
    %33 = vector.shape_cast %32 : vector<16x16x4xf32> to vector<256x4xf32>
    %c0_46 = arith.constant 0 : index
    %c20 = arith.constant 20 : index
    %34 = vector.load %arg10[%c0_46, %c20] : memref<256x36xf32, #tpu.memory_space<vmem>>, vector<256x4xf32>
    tpu.vector_store %arg10[%c0_46, %c20], %33 {strides = array<i32>} : memref<256x36xf32, #tpu.memory_space<vmem>>, vector<256x4xf32>,
    %c2_47 = arith.constant 2 : index
    %c0_48 = arith.constant 0 : index
    %c0_49 = arith.constant 0 : index
    %35 = vector.load %arg9[%c2_47, %c0_48, %c0_49] : memref<18x18x4xf32, #tpu.memory_space<vmem>>, vector<16x16x4xf32>
    %36 = vector.shape_cast %35 : vector<16x16x4xf32> to vector<256x4xf32>
    %c0_50 = arith.constant 0 : index
    %c24 = arith.constant 24 : index
    %37 = vector.load %arg10[%c0_50, %c24] : memref<256x36xf32, #tpu.memory_space<vmem>>, vector<256x4xf32>
    tpu.vector_store %arg10[%c0_50, %c24], %36 {strides = array<i32>} : memref<256x36xf32, #tpu.memory_space<vmem>>, vector<256x4xf32>,
    %c2_51 = arith.constant 2 : index
    %c1_52 = arith.constant 1 : index
    %c0_53 = arith.constant 0 : index
    %38 = vector.load %arg9[%c2_51, %c1_52, %c0_53] : memref<18x18x4xf32, #tpu.memory_space<vmem>>, vector<16x16x4xf32>
    %39 = vector.shape_cast %38 : vector<16x16x4xf32> to vector<256x4xf32>
    %c0_54 = arith.constant 0 : index
    %c28 = arith.constant 28 : index
    %40 = vector.load %arg10[%c0_54, %c28] : memref<256x36xf32, #tpu.memory_space<vmem>>, vector<256x4xf32>
    tpu.vector_store %arg10[%c0_54, %c28], %39 {strides = array<i32>} : memref<256x36xf32, #tpu.memory_space<vmem>>, vector<256x4xf32>,
    %c2_55 = arith.constant 2 : index
    %c2_56 = arith.constant 2 : index
    %c0_57 = arith.constant 0 : index
    %41 = vector.load %arg9[%c2_55, %c2_56, %c0_57] : memref<18x18x4xf32, #tpu.memory_space<vmem>>, vector<16x16x4xf32>
    %42 = vector.shape_cast %41 : vector<16x16x4xf32> to vector<256x4xf32>
    %c0_58 = arith.constant 0 : index
    %c32 = arith.constant 32 : index
    %43 = vector.load %arg10[%c0_58, %c32] : memref<256x36xf32, #tpu.memory_space<vmem>>, vector<256x4xf32>
    tpu.vector_store %arg10[%c0_58, %c32], %42 {strides = array<i32>} : memref<256x36xf32, #tpu.memory_space<vmem>>, vector<256x4xf32>,
    %c0_59 = arith.constant 0 : index
    %c0_60 = arith.constant 0 : index
    %44 = vector.load %arg10[%c0_59, %c0_60] : memref<256x36xf32, #tpu.memory_space<vmem>>, vector<256x36xf32>
    %c0_61 = arith.constant 0 : index
    %c0_62 = arith.constant 0 : index
    %45 = vector.load %arg4[%c0_61, %c0_62] : memref<36x4xf32, #tpu.memory_space<vmem>>, vector<36x4xf32>
    %cst_63 = arith.constant dense<0.000000e+00> : vector<256x4xf32>
    %46 = tpu.matmul %44, %45, %cst_63 {dimension_numbers = #tpu.dot_dimension_numbers<[1], [0], [0], [1], [0, 0, 1, 1], [], []>} : vector<256x36xf32>, vector<36x4xf32>, vector<256x4xf32> -> vector<256x4xf32>
    %c0_64 = arith.constant 0 : index
    %c0_65 = arith.constant 0 : index
    %47 = vector.load %arg5[%c0_64, %c0_65] : memref<1x4xf32, #tpu.memory_space<vmem>>, vector<1x4xf32>
    %48 = vector.broadcast %47 : vector<1x4xf32> to vector<256x4xf32>
    %49 = arith.addf %46, %48 : vector<256x4xf32>
    %cst_66 = arith.constant 0.000000e+00 : f32
    %50 = vector.broadcast %cst_66 : f32 to vector<256x4xf32>
    %51 = arith.maximumf %49, %50 : vector<256x4xf32>
    %c0_67 = arith.constant 0 : index
    %c0_68 = arith.constant 0 : index
    %52 = vector.load %arg6[%c0_67, %c0_68] : memref<4x16xf32, #tpu.memory_space<vmem>>, vector<4x16xf32>
    %cst_69 = arith.constant dense<0.000000e+00> : vector<256x16xf32>
    %53 = tpu.matmul %51, %52, %cst_69 {dimension_numbers = #tpu.dot_dimension_numbers<[1], [0], [0], [1], [0, 0, 1, 1], [], []>} : vector<256x4xf32>, vector<4x16xf32>, vector<256x16xf32> -> vector<256x16xf32>
    %c0_70 = arith.constant 0 : index
    %c0_71 = arith.constant 0 : index
    %54 = vector.load %arg7[%c0_70, %c0_71] : memref<1x16xf32, #tpu.memory_space<vmem>>, vector<1x16xf32>
    %55 = vector.broadcast %54 : vector<1x16xf32> to vector<256x16xf32>
    %56 = arith.addf %53, %55 : vector<256x16xf32>
    %57 = arith.addf %56, %7 : vector<256x16xf32>
    %cst_72 = arith.constant 0.000000e+00 : f32
    %58 = vector.broadcast %cst_72 : f32 to vector<256x16xf32>
    %59 = arith.maximumf %57, %58 : vector<256x16xf32>
    %60 = vector.shape_cast %59 : vector<256x16xf32> to vector<1x16x16x16xf32>
    %c0_73 = arith.constant 0 : index
    %c0_74 = arith.constant 0 : index
    %c0_75 = arith.constant 0 : index
    %c0_76 = arith.constant 0 : index
    %61 = vector.load %arg8[%c0_73, %c0_74, %c0_75, %c0_76] : memref<1x16x16x16xf32, #tpu.memory_space<vmem>>, vector<1x16x16x16xf32>
    tpu.vector_store %arg8[%c0_73, %c0_74, %c0_75, %c0_76], %60 {strides = array<i32>} : memref<1x16x16x16xf32, #tpu.memory_space<vmem>>, vector<1x16x16x16xf32>,
    return
  }
  func.func @transform_0(%arg0: i32) -> (i32, i32, i32, i32) {
    %c0_i32 = arith.constant 0 : i32
    %c0_i32_0 = arith.constant 0 : i32
    %c0_i32_1 = arith.constant 0 : i32
    %c0_i32_2 = arith.constant 0 : i32
    return %arg0, %c0_i32, %c0_i32_0, %c0_i32_1 : i32, i32, i32, i32
  }
  func.func @transform_1(%arg0: i32) -> (i32, i32) {
    %c0_i32 = arith.constant 0 : i32
    %c0_i32_0 = arith.constant 0 : i32
    %c0_i32_1 = arith.constant 0 : i32
    return %c0_i32, %c0_i32_0 : i32, i32
  }
  func.func @transform_2(%arg0: i32) -> (i32, i32) {
    %c0_i32 = arith.constant 0 : i32
    %c0_i32_0 = arith.constant 0 : i32
    %c0_i32_1 = arith.constant 0 : i32
    return %c0_i32, %c0_i32_0 : i32, i32
  }
  func.func @transform_3(%arg0: i32) -> (i32, i32) {
    %c0_i32 = arith.constant 0 : i32
    %c0_i32_0 = arith.constant 0 : i32
    %c0_i32_1 = arith.constant 0 : i32
    return %c0_i32, %c0_i32_0 : i32, i32
  }
  func.func @transform_4(%arg0: i32) -> (i32, i32) {
    %c0_i32 = arith.constant 0 : i32
    %c0_i32_0 = arith.constant 0 : i32
    %c0_i32_1 = arith.constant 0 : i32
    return %c0_i32, %c0_i32_0 : i32, i32
  }
  func.func @transform_5(%arg0: i32) -> (i32, i32) {
    %c0_i32 = arith.constant 0 : i32
    %c0_i32_0 = arith.constant 0 : i32
    %c0_i32_1 = arith.constant 0 : i32
    return %c0_i32, %c0_i32_0 : i32, i32
  }
  func.func @transform_6(%arg0: i32) -> (i32, i32) {
    %c0_i32 = arith.constant 0 : i32
    %c0_i32_0 = arith.constant 0 : i32
    %c0_i32_1 = arith.constant 0 : i32
    return %c0_i32, %c0_i32_0 : i32, i32
  }
  func.func @transform_7(%arg0: i32) -> (i32, i32, i32, i32) {
    %c0_i32 = arith.constant 0 : i32
    %c0_i32_0 = arith.constant 0 : i32
    %c0_i32_1 = arith.constant 0 : i32
    %c0_i32_2 = arith.constant 0 : i32
    return %arg0, %c0_i32, %c0_i32_0, %c0_i32_1 : i32, i32, i32, i32
  }
}

</mosaic_0001>

<bundles_post_ra>
// kernel: tpu_custom_call.1
= control target key start
LH: loop header
LB: loop body
LE: loop exit
PB: predicated region body
PF: predicated region fallthrough
CT: control target
= control target key end

     0   :  { %12 = vsyncpa [#allocation5], 0  ;;  %s4861_s0 = inlined_call_operand.hbm [shape: f32[2,16,16,16], index: 0, kind: input, shape index: {}]   ;;  %s4862_s1 = inlined_call_operand.vmem [shape: f32[16,4], index: 1, kind: input, shape index: {}]   ;;  %s4863_s2 = inlined_call_operand.vmem [shape: f32[1,4], index: 2, kind: input, shape index: {}]   ;;  %s4864_s3 = inlined_call_operand.vmem [shape: f32[36,4], index: 3, kind: input, shape index: {}]   ;;  %s4865_s4 = inlined_call_operand.vmem [shape: f32[1,4], index: 4, kind: input, shape index: {}]   ;;  %s4866_s5 = inlined_call_operand.vmem [shape: f32[4,16], index: 5, kind: input, shape index: {}]   ;;  %s4867_s6 = inlined_call_operand.vmem [shape: f32[1,16], index: 6, kind: input, shape index: {}]   ;;  %s4868_s7 = inlined_call_operand.hbm [shape: f32[2,16,16,16], index: 7, kind: output, shape index: {}]  }
   0x1   :  { %14 = vsyncpa [#allocation5 + $0x1], 0 }
   0x2   :  { %15 = vsyncpa [#allocation6], 0 }
   0x3   :  { %17 = vsyncpa [#allocation6 + $0x1], 0  ;;  %s3324_s24 = smov 0   ;;  %s3326_s25 = smov 0  }
   0x4   :  { %s3328_s26 = smov 0   ;;  %s3330_s27 = smov 0  }
   0x5 LB: > { %s3345_s28 = sadd.s32 4294967295, %s3270_s27   ;;  %s2956_s29 = sadd.s32 4294967294, %s3270_s27   ;;  %s3270_s27 = sphi %s3330_s27, %s4880_s27   ;;  %s3266_s26 = sphi %s3328_s26, %s4879_s26   ;;  %s3262_s25 = sphi %s3326_s25, %s4878_s25   ;;  %s3258_s24 = sphi %s3324_s24, %s4877_s24  }
   0x6   : > { %s3349_s30 = sadd.s32 1, %s3270_s27   ;;  %s30_s8 = sadd.s32 1, %s3266_s26 }
   0x7   : > { %s27_s9 = ssub.s32 %s3270_s27, %s3349_s30  ;;  %p37_p0 = scmp.ne.s32.totalorder %s3266_s26, %s3262_s25 }
   0x8   : > { %p28_p1 = scmp.eq.s32.totalorder %s27_s9, 0  ;;  %p38_p2 = scmp.eq.s32.totalorder %s3270_s27, 0 }
   0x9   : > { %p43_p3 = scmp.ne.s32.totalorder %s3262_s25, %s3258_s24  ;;  %p44_p4 = scmp.eq.s32.totalorder %s3345_s28, 0 }
   0xa   : > { %s3361_s10 = scalar_select %p28_p1, %s3266_s26, %s30_s8  }
   0xb   : > { %p3363_p5 = por %p38_p2, %p37_p0  ;;  %p3367_p6 = por %p44_p4, %p43_p3 }
   0xc   : > { %4869 = sst [smem:[#allocation10_spill]] %s3361_s10  ;;  %p193_p7 = scmp.eq.s32.totalorder %s3345_s28, 1 }
   0xd   : > { %p199_p8 = scmp.eq.s32.totalorder %s2956_s29, 1  ;;  %p3090_p10 = scmp.lt.s32.totalorder %s3270_s27, 2 }
   0xe   : > { %p3374_p11 = por %p193_p7, %p37_p0  ;;  %s237_s15 = sand.u32 1, %s3266_s26  }
   0xf   : > { %p3378_p12 = por %p199_p8, %p43_p3  ;;  %s3068_s16 = sshll.u32 %s3270_s27, 8 }
  0x10   : > { %s2959_s17 = sshll.u32 %s237_s15, 8  ;;  %s246_s20 = scalar_lea.hbm %s4861_s0, %s3068_s16 }
  0x11   : > { %s247_s21 = sshll.u32 %s246_s20, 4  ;;  %s241_s22 = scalar_lea.vmem [#allocation4], %s2959_s17  ;;  %s248_s21 = int_to_ptr.hbm [resolvable:$true] %s247_s21 }
  0x12   : > { %s249_s23 = sshll.u32 %s241_s22, 4  ;;  %p3389_p13 = pnand %p3090_p10, %p3363_p5  ;;  %s250_s23 = int_to_ptr.vmem [resolvable:$true] %s249_s23 }
  0x13   : > { %p2962_p0 = scmp.ge.s32.totalorder %s3270_s27, 1  ;;  %p257_p1 = scmp.lt.s32.totalorder %s3270_s27, 3 }
  0x14   : > { %s238_s8 = scalar_lea.sflag [#allocation5], %s237_s15  ;;  %s3174_s9 = sshra.s32 %s248_s21, 4  ;;  %s3175_s9 = int_to_ptr.hbm [resolvable:$true] %s3174_s9 }
  0x15   : > { %s3176_s10 = scalar_lea.hbm %s3175_s9, 256  ;;  %p3178_p3 = pneg %p3389_p13 }
  0x16   : > { %p3177_p2 = scmp.ne.s32.totalorder %s3175_s9, %s3176_s10  ;;  %s3181_s11 = scalar_lea.hbm %s4861_s0, 512 }
  0x17   : > { %p3182_p5 = scmp.lt.s32.totalorder %s3175_s9, %s4861_s0  ;;  %p3183_p8 = scmp.lt.s32.totalorder %s3181_s11, %s3176_s10 }
  0x18   : > { %p3179_p4 = pnand %p3178_p3, %p3177_p2 }
  0x19   : > { %p3184_p10 = por %p3183_p8, %p3182_p5 }
  0x1a   : > { %p3180_p7 = pneg %p3179_p4 }
  0x1c   : > { %p3185_p9 = pnand %p3184_p10, %p3180_p7 }
  0x1e   : > { %3188 = shalt.err (!%p3185_p9)
}
  0x1f   : > { %s3272_s15 = smov 128   ;;  %s3273_s20 = smov 8  }
  0x20   : > { %3085 = dma.hbm_to_vmem [thread:$0]  (!%p3389_p13), %s248_s21, 4096, %s250_s23, %s238_s8, %s3272_s15, %s3272_s15, %s3273_s20  }
  0x21   : > { %p258_p2 = pnand %p2962_p0, %p257_p1 }
  0x22   : > { %s3410_s22 = sand.u32 (!%p258_p2), 1, %s3262_s25  }
  0x23   : > { %261 = sbr.rel (%p258_p2) target bundleno = 1258 (0x4ea), region = 48  ;;  %s2963_s10 = sshll.u32 (!%p258_p2), %s3410_s22, 8 }
  0x24   : > { %s264_s9 = scalar_lea.sflag (!%p258_p2), [#allocation5], %s3410_s22  ;;  %s3416_s16 = scalar_lea.vmem (!%p258_p2), [#allocation4], %s2963_s10 }
  0x28   : > { %3249 = dma.done.wait (%p3367_p6), %s264_s9, 4096  }
  0x29   : > { %3251 = vsyncadd (%p3367_p6), %s264_s9, 4294963200  ;;  %v378_v0 = vld [vmem:[%s4862_s1 + $0x8] sm:$0xff]  ;;  %v377_v1 = vld [vmem:[%s4862_s1] sm:$0xff]  ;;  %vm383_vm0 = vcmask 130048   ;;  %vm299_vm1 = vcmask 31744   ;;  %v3274_v18 = vmov 0.0  }
  0x2a   : > { %494 = vmatpush.msra.mxu0 %v378_v0  ;;  %3070 = vmatpush.msra.mxu3 %v378_v0  ;;  %v345_v2 = vld [vmem:[%s3416_s16] sm:$0xff]  ;;  %v370_v3 = vld [vmem:[%s3416_s16 + $0xc8] sm:$0xff]  ;;  %v371_v5 = vld [vmem:[%s3416_s16 + $0xd0] sm:$0xff]  ;;  %300 = vst.msk [vmem:[#allocation2] sm:$0xff] %vm299_vm1, %v3274_v18  ;;  %vm302_vm2 = vcmask 25600   ;;  %vm308_vm3 = vcmask 24576  }
  0x2b   : > { %v346_v4 = vld [vmem:[%s3416_s16 + $0x8] sm:$0xff]  ;;  %v347_v6 = vld [vmem:[%s3416_s16 + $0x10] sm:$0xff]  ;;  %v372_v7 = vld [vmem:[%s3416_s16 + $0xd8] sm:$0xff]  ;;  %301 = vst.msk [vmem:[#allocation2 + $0x8] sm:$0xff] %vm299_vm1, %v3274_v18  ;;  %s3275_s12 = smov 4   ;;  %s3276_s17 = smov 8  }
  0x2c   : > { %495 = vmatpush.msra.mxu0 %v377_v1  ;;  %3071 = vmatpush.msra.mxu3 %v377_v1  ;;  %v348_v8 = vld [vmem:[%s3416_s16 + $0x18] sm:$0xff]  ;;  %v349_v9 = vld [vmem:[%s3416_s16 + $0x20] sm:$0xff]  ;;  %v350_v10 = vld [vmem:[%s3416_s16 + $0x28] sm:$0xff]  ;;  %305 = vst.msk [vmem:[#allocation2 + $0x198] sm:$0xff] %vm299_vm1, %v3274_v18  ;;  %s3277_s19 = smov 16   ;;  %s3278_s15 = smov 12  }
  0x2d   : > { %2965 = vmatmul.msk.f32.vlgmr.msra.gmra.mxu0 %vm383_vm0, %v345_v2  ;;  %2990 = vmatmul.msk.f32.vlgmr.msra.gmra.mxu3 %vm383_vm0, %v370_v3  ;;  %v373_v11 = vld [vmem:[%s3416_s16 + $0xe0] sm:$0xff]  ;;  %v351_v12 = vld [vmem:[%s3416_s16 + $0x30] sm:$0xff]  ;;  %v374_v13 = vld [vmem:[%s3416_s16 + $0xe8] sm:$0xff]  ;;  %306 = vst.msk [vmem:[#allocation2 + $0x1a0] sm:$0xff] %vm299_vm1, %v3274_v18  ;;  %s3279_s20 = smov 20   ;;  %s3280_s9 = smov 24  }
  0x2e   : > { %v352_v14 = vld [vmem:[%s3416_s16 + $0x38] sm:$0xff]  ;;  %v353_v15 = vld [vmem:[%s3416_s16 + $0x40] sm:$0xff]  ;;  %v354_v16 = vld [vmem:[%s3416_s16 + $0x48] sm:$0xff]  ;;  %303 = vst.msk [vmem:[#allocation2 + $0x10] sm:$0x3] %vm302_vm2, %v3274_v18  ;;  %s3281_s21 = smov 28  }
  0x2f   : > { %v355_v17 = vld [vmem:[%s3416_s16 + $0x50] sm:$0xff]  ;;  %v356_v19 = vld [vmem:[%s3416_s16 + $0x58] sm:$0xff]  ;;  %309 = vst.msk [vmem:[#allocation2] sm:$0x1] %vm308_vm3, %v3274_v18  ;;  %v357_v21 = vld [vmem:[%s3416_s16 + $0x60] sm:$0xff]  ;;  %s3282_s23 = smov 32  }
  0x30   : > { %310 = vst.msk [vmem:[#allocation2 + $0x18] sm:$0x1] %vm308_vm3, %v3274_v18  ;;  %v358_v24 = vld [vmem:[%s3416_s16 + $0x68] sm:$0xff]  ;;  %v359_v25 = vld [vmem:[%s3416_s16 + $0x70] sm:$0xff]  ;;  %v360_v26 = vld [vmem:[%s3416_s16 + $0x78] sm:$0xff]  ;;  %vm882_vm4 = vcmask 64544  }
  0x31   : > { %311 = vst.msk [vmem:[#allocation2 + $0x30] sm:$0x1] %vm308_vm3, %v3274_v18  ;;  %v3552_v27 = vld [vmem:[%s4863_s2] ss:$0 sm:$0xff]  ;;  %v361_v29 = vld [vmem:[%s3416_s16 + $0x80] sm:$0xff]  ;;  %v362_v36 = vld [vmem:[%s3416_s16 + $0x88] sm:$0xff] }
  0x32   : > { %v722_v20 = vld [vmem:[#allocation2 + $0x1] sm:$0xff]  ;;  %312 = vst.msk [vmem:[#allocation2 + $0x48] sm:$0x1] %vm308_vm3, %v3274_v18  ;;  %v365_v1 = vld [vmem:[%s3416_s16 + $0xa0] sm:$0xff]  ;;  %vm1075_vm5 = vcmask 97344   ;;  %vm1268_vm6 = vcmask 130144  }
  0x33   : > { %786 = vrot.lane.b32.xlu0 %v722_v20, %s3275_s12  ;;  %313 = vst.msk [vmem:[#allocation2 + $0x60] sm:$0x1] %vm308_vm3, %v3274_v18  ;;  %v915_v23 = vld [vmem:[#allocation2 + $0x2] sm:$0xff]  ;;  %vm1461_vm7 = vcmask 162944   ;;  %vm1654_vm8 = vcmask 195744   ;;  %vm2405_vm9 = vcmask 1043456  }
  0x34   : > { %314 = vst.msk [vmem:[#allocation2 + $0x78] sm:$0x1] %vm308_vm3, %v3274_v18  ;;  %979 = vrot.lane.b32.xlu2 %v915_v23, %s3276_s17  ;;  %v363_v45 = vld [vmem:[%s3416_s16 + $0x90] sm:$0xff]  ;;  %v364_v55 = vld [vmem:[%s3416_s16 + $0x98] sm:$0xff]  ;;  %vm1848_vm10 = vcmask 228544   ;;  %vm2041_vm11 = vcmask 261344  }
  0x35   : > { %2966 = vmatmul.msk.f32.gmra.mxu0 %vm383_vm0, %v346_v4  ;;  %2991 = vmatmul.msk.f32.gmra.mxu3 %vm383_vm0, %v371_v5  ;;  %315 = vst.msk [vmem:[#allocation2 + $0x90] sm:$0x1] %vm308_vm3, %v3274_v18  ;;  %v723_v22 = vld [vmem:[#allocation2 + $0x9] sm:$0xff]  ;;  %vm2234_vm12 = vcmask 294144   ;;  %vm2308_vm13 = vcmask 293888   ;;  %s4290_s18 = scalar_lea.vmem [#allocation7], %s2963_s10 }
  0x36   : > { %316 = vst.msk [vmem:[#allocation2 + $0xa8] sm:$0x1] %vm308_vm3, %v3274_v18  ;;  %s2880_s11 = sshll.u32 %s4290_s18, 4  ;;  %s2881_s11 = int_to_ptr.vmem [resolvable:$true] %s2880_s11 }
  0x37   : > { %317 = vst.msk [vmem:[#allocation2 + $0xc0] sm:$0x1] %vm308_vm3, %v3274_v18 }
  0x38   : > { %318 = vst.msk [vmem:[#allocation2 + $0xd8] sm:$0x1] %vm308_vm3, %v3274_v18 }
  0x39   : > { %319 = vst.msk [vmem:[#allocation2 + $0xf0] sm:$0x1] %vm308_vm3, %v3274_v18 }
  0x3a   : > { %320 = vst.msk [vmem:[#allocation2 + $0x108] sm:$0x1] %vm308_vm3, %v3274_v18 }
  0x3b   : > { %788 = vrot.lane.b32.xlu0 %v723_v22, %s3275_s12  ;;  %321 = vst.msk [vmem:[#allocation2 + $0x120] sm:$0x1] %vm308_vm3, %v3274_v18 }
  0x3c   : > { %322 = vst.msk [vmem:[#allocation2 + $0x138] sm:$0x1] %vm308_vm3, %v3274_v18 }
  0x3d   : > { %2967 = vmatmul.msk.f32.gmra.mxu0 %vm383_vm0, %v347_v6  ;;  %2992 = vmatmul.msk.f32.gmra.mxu3 %vm383_vm0, %v372_v7  ;;  %323 = vst.msk [vmem:[#allocation2 + $0x150] sm:$0x1] %vm308_vm3, %v3274_v18  ;;  %v366_v7 = vld [vmem:[%s3416_s16 + $0xa8] sm:$0xff] }
  0x3e   : > { %324 = vst.msk [vmem:[#allocation2 + $0x168] sm:$0x1] %vm308_vm3, %v3274_v18 }
  0x3f   : > { %325 = vst.msk [vmem:[#allocation2 + $0x180] sm:$0x1] %vm308_vm3, %v3274_v18 }
  0x40   : > { %328 = vst.msk [vmem:[#allocation2 + $0x29] sm:$0x1] %vm308_vm3, %v3274_v18 }
  0x41   : > { %329 = vst.msk [vmem:[#allocation2 + $0x41] sm:$0x1] %vm308_vm3, %v3274_v18 }
  0x42   : > { %330 = vst.msk [vmem:[#allocation2 + $0x59] sm:$0x1] %vm308_vm3, %v3274_v18 }
  0x43   : > { %331 = vst.msk [vmem:[#allocation2 + $0x71] sm:$0x1] %vm308_vm3, %v3274_v18 }
  0x44   : > { %332 = vst.msk [vmem:[#allocation2 + $0x89] sm:$0x1] %vm308_vm3, %v3274_v18 }
  0x45   : > { %2968 = vmatmul.msk.f32.gmra.mxu0 %vm383_vm0, %v348_v8  ;;  %2993 = vmatmul.msk.f32.gmra.mxu3 %vm383_vm0, %v373_v11  ;;  %333 = vst.msk [vmem:[#allocation2 + $0xa1] sm:$0x1] %vm308_vm3, %v3274_v18 }
  0x46   : > { %334 = vst.msk [vmem:[#allocation2 + $0xb9] sm:$0x1] %vm308_vm3, %v3274_v18 }
  0x47   : > { %335 = vst.msk [vmem:[#allocation2 + $0xd1] sm:$0x1] %vm308_vm3, %v3274_v18 }
  0x48   : > { %336 = vst.msk [vmem:[#allocation2 + $0xe9] sm:$0x1] %vm308_vm3, %v3274_v18 }
  0x49   : > { %337 = vst.msk [vmem:[#allocation2 + $0x101] sm:$0x1] %vm308_vm3, %v3274_v18 }
  0x4a   : > { %338 = vst.msk [vmem:[#allocation2 + $0x119] sm:$0x1] %vm308_vm3, %v3274_v18 }
  0x4b   : > { %339 = vst.msk [vmem:[#allocation2 + $0x131] sm:$0x1] %vm308_vm3, %v3274_v18 }
  0x4c   : > { %340 = vst.msk [vmem:[#allocation2 + $0x149] sm:$0x1] %vm308_vm3, %v3274_v18 }
  0x4d   : > { %2969 = vmatmul.msk.f32.gmra.mxu0 %vm383_vm0, %v349_v9  ;;  %2994 = vmatmul.msk.f32.gmra.mxu3 %vm383_vm0, %v374_v13  ;;  %341 = vst.msk [vmem:[#allocation2 + $0x161] sm:$0x1] %vm308_vm3, %v3274_v18 }
  0x4e   : > { %342 = vst.msk [vmem:[#allocation2 + $0x179] sm:$0x1] %vm308_vm3, %v3274_v18 }
  0x4f   : > { %343 = vst.msk [vmem:[#allocation2 + $0x191] sm:$0x1] %vm308_vm3, %v3274_v18 }
  0x50   : > { %326 = vst.msk [vmem:[#allocation2 + $0x198] sm:$0x1] %vm308_vm3, %v3274_v18 }
  0x51   : > { %307 = vst.msk [vmem:[#allocation2 + $0x1a8] sm:$0x3] %vm302_vm2, %v3274_v18 }
  0x52   : > { %327 = vst.msk [vmem:[#allocation2 + $0x11] sm:$0x1] %vm308_vm3, %v3274_v18 }
  0x53   : > { %344 = vst.msk [vmem:[#allocation2 + $0x1a9] sm:$0x1] %vm308_vm3, %v3274_v18 }
  0x55   : > { %2970 = vmatmul.msk.f32.gmra.mxu0 %vm383_vm0, %v350_v10 }
  0x59   : > { %v916_v33 = vld [vmem:[#allocation2 + $0xa] sm:$0xff] }
  0x5a   : > { %981 = vrot.lane.b32.xlu0 %v916_v33, %s3276_s17 }
  0x5d   : > { %2971 = vmatmul.msk.f32.gmra.mxu0 %vm383_vm0, %v351_v12 }
  0x65   : > { %2972 = vmatmul.msk.f32.gmra.mxu0 %vm383_vm0, %v352_v14  ;;  %v367_v14 = vld [vmem:[%s3416_s16 + $0xb0] sm:$0xff] }
  0x6d   : > { %2973 = vmatmul.msk.f32.gmra.mxu0 %vm383_vm0, %v353_v15 }
  0x75   : > { %2974 = vmatmul.msk.f32.gmra.mxu0 %vm383_vm0, %v354_v16 }
  0x7d   : > { %2975 = vmatmul.msk.f32.gmra.mxu0 %vm383_vm0, %v355_v17 }
  0x85   : > { %2976 = vmatmul.msk.f32.gmra.mxu0 %vm383_vm0, %v356_v19 }
  0x8d   : > { %2977 = vmatmul.msk.f32.gmra.mxu0 %vm383_vm0, %v357_v21  ;;  %v368_v21 = vld [vmem:[%s3416_s16 + $0xb8] sm:$0xff] }
  0x95   : > { %2978 = vmatmul.msk.f32.gmra.mxu0 %vm383_vm0, %v358_v24 }
  0x9d   : > { %2979 = vmatmul.msk.f32.gmra.mxu0 %vm383_vm0, %v359_v25 }
  0xa5   : > { %2980 = vmatmul.msk.f32.gmra.mxu0 %vm383_vm0, %v360_v26 }
  0xaa   : > { %v497_v28 = vpop.f32.mrf.mxu0 }
  0xab   : > { %v498_v30 = vadd.f32 %v3552_v27, %v497_v28 }
  0xad   : > { %v593_v31 = vmax.f32 %v498_v30, 0.0  ;;  %2981 = vmatmul.msk.f32.gmra.mxu0 %vm383_vm0, %v361_v29  ;;  %v369_v30 = vld [vmem:[%s3416_s16 + $0xc0] sm:$0xff] }
  0xaf   : > { %626 = vst.msk [vmem:[#allocation2 + $0x19] sm:$0xff] %vm299_vm1, %v593_v31 }
  0xb0   : > { %v572_v32 = vpop.f32.mrf.mxu3 }
  0xb1   : > { %v573_v34 = vadd.f32 %v3552_v27, %v572_v32 }
  0xb2   : > { %v500_v35 = vpop.f32.mrf.mxu0 }
  0xb3   : > { %v618_v37 = vmax.f32 %v573_v34, 0.0  ;;  %v501_v38 = vadd.f32 %v3552_v27, %v500_v35 }
  0xb5   : > { %651 = vst.msk [vmem:[#allocation2 + $0x141] sm:$0xff] %vm299_vm1, %v618_v37  ;;  %v594_v39 = vmax.f32 %v501_v38, 0.0  ;;  %2982 = vmatmul.msk.f32.gmra.mxu0 %vm383_vm0, %v362_v36 }
  0xb6   : > { %v724_v40 = vld [vmem:[#allocation2 + $0x19] sm:$0xff] }
  0xb7   : > { %v1108_v41 = vld [vmem:[#allocation2 + $0x18] sm:$0xff]  ;;  %627 = vst.msk [vmem:[#allocation2 + $0x21] sm:$0xff] %vm299_vm1, %v594_v39  ;;  %790 = vrot.lane.b32.xlu1 %v724_v40, %s3275_s12  ;;  %1365 = vrot.lane.b32.xlu2 %v724_v40, %s3277_s19 }
  0xb8   : > { %v575_v42 = vpop.f32.mrf.mxu3  ;;  %692 = vst.msk [vmem:[#allocation3 + $0x10] sm:$0xff] %vm299_vm1, %v1108_v41 }
  0xb9   : > { %v576_v43 = vadd.f32 %v3552_v27, %v575_v42 }
  0xba   : > { %v503_v44 = vpop.f32.mrf.mxu0 }
  0xbb   : > { %v504_v46 = vadd.f32 %v3552_v27, %v503_v44  ;;  %v619_v47 = vmax.f32 %v576_v43, 0.0  ;;  %v658_v43 = vld [vmem:[#allocation2] sm:$0xff] }
  0xbc   : > { %v749_v48 = vld [vmem:[#allocation2 + $0x141] sm:$0xff]  ;;  %690 = vst.msk [vmem:[#allocation3] sm:$0xff] %vm299_vm1, %v658_v43  ;;  %v2301_v43 = vld [vmem:[%s4864_s3 + $0x10] sm:$0xff] }
  0xbd   : > { %v942_v49 = vld [vmem:[#allocation2 + $0x142] sm:$0xff]  ;;  %v595_v50 = vmax.f32 %v504_v46, 0.0  ;;  %2983 = vmatmul.msk.f32.gmra.mxu0 %vm383_vm0, %v363_v45  ;;  %840 = vrot.lane.b32.xlu0 %v749_v48, %s3275_s12  ;;  %652 = vst.msk [vmem:[#allocation2 + $0x151] sm:$0xff] %vm299_vm1, %v619_v47  ;;  %v787_v45 = vpop.permute.xlu0 %786 }
  0xbe   : > { %v1109_v51 = vld [vmem:[#allocation2 + $0x20] sm:$0xff]  ;;  %883 = vst.msk [vmem:[#allocation3] sm:$0xff] %vm882_vm4, %v787_v45  ;;  %v2300_v45 = vld [vmem:[%s4864_s3 + $0x8] sm:$0xff] }
  0xbf   : > { %628 = vst.msk [vmem:[#allocation2 + $0x31] sm:$0xff] %vm299_vm1, %v595_v50  ;;  %1172 = vrot.lane.b32.xlu1 %v1108_v41, %s3278_s15  ;;  %1033 = vrot.lane.b32.xlu2 %v942_v49, %s3276_s17  ;;  %v1494_v57 = vld [vmem:[#allocation2 + $0x1a] sm:$0xff]  ;;  %v918_v60 = vld [vmem:[#allocation2 + $0x22] sm:$0xff] }
  0xc0   : > { %v578_v52 = vpop.f32.mrf.mxu3  ;;  %693 = vst.msk [vmem:[#allocation3 + $0x18] sm:$0xff] %vm299_vm1, %v1109_v51  ;;  %v725_v59 = vld [vmem:[#allocation2 + $0x21] sm:$0xff] }
  0xc1   : > { %v579_v53 = vadd.f32 %v3552_v27, %v578_v52  ;;  %v659_v49 = vld [vmem:[#allocation2 + $0x8] sm:$0xff] }
  0xc2   : > { %v506_v54 = vpop.f32.mrf.mxu0  ;;  %691 = vst.msk [vmem:[#allocation3 + $0x8] sm:$0xff] %vm299_vm1, %v659_v49 }
  0xc3   : > { %v507_v56 = vadd.f32 %v3552_v27, %v506_v54  ;;  %v620_v58 = vmax.f32 %v579_v53, 0.0 }
  0xc4   : > { %v686_v61 = vld [vmem:[#allocation2 + $0x150] sm:$0xff] }
  0xc5   : > { %v596_v62 = vmax.f32 %v507_v56, 0.0  ;;  %2984 = vmatmul.msk.f32.gmra.mxu0 %vm383_vm0, %v364_v55  ;;  %1558 = vrot.lane.b32.xlu0 %v1494_v57, %s3279_s20  ;;  %653 = vst.msk [vmem:[#allocation2 + $0x159] sm:$0xff] %vm299_vm1, %v620_v58  ;;  %v750_v18 = vld [vmem:[#allocation2 + $0x151] sm:$0xff]  ;;  %v789_v50 = vpop.permute.xlu0 %788  ;;  %v980_v55 = vpop.permute.xlu2 %979 }
  0xc6   : > { %718 = vst.msk [vmem:[#allocation3 + $0xe0] sm:$0xff] %vm299_vm1, %v686_v61  ;;  %v1110_v63 = vld [vmem:[#allocation2 + $0x30] sm:$0xff] }
  0xc7   : > { %629 = vst.msk [vmem:[#allocation2 + $0x39] sm:$0xff] %vm299_vm1, %v596_v62  ;;  %792 = vrot.lane.b32.xlu1 %v725_v59, %s3275_s12  ;;  %985 = vrot.lane.b32.xlu2 %v918_v60, %s3276_s17  ;;  %v1303_v8 = vld [vmem:[#allocation2 + $0x31] sm:$0xff] }
  0xc8   : > { %694 = vst.msk [vmem:[#allocation3 + $0x20] sm:$0xff] %vm299_vm1, %v1110_v63  ;;  %v581_v11 = vpop.f32.mrf.mxu3 }
  0xc9   : > { %v582_v12 = vadd.f32 %v3552_v27, %v581_v11  ;;  %884 = vst.msk [vmem:[#allocation3 + $0x8] sm:$0xff] %vm882_vm4, %v789_v50 }
  0xca   : > { %v509_v0 = vpop.f32.mrf.mxu0  ;;  %1076 = vst.msk [vmem:[#allocation3] sm:$0xff] %vm1075_vm5, %v980_v55 }
  0xcb   : > { %v510_v2 = vadd.f32 %v3552_v27, %v509_v0  ;;  %v621_v17 = vmax.f32 %v582_v12, 0.0 }
  0xcc   : > { %v687_v4 = vld [vmem:[#allocation2 + $0x158] sm:$0xff] }
  0xcd   : > { %v597_v3 = vmax.f32 %v510_v2, 0.0  ;;  %2985 = vmatmul.msk.f32.gmra.mxu0 %vm383_vm0, %v365_v1  ;;  %1176 = vrot.lane.b32.xlu0 %v1110_v63, %s3278_s15  ;;  %719 = vst.msk [vmem:[#allocation3 + $0xe8] sm:$0xff] %vm299_vm1, %v687_v4  ;;  %v943_v15 = vld [vmem:[#allocation2 + $0x152] sm:$0xff]  ;;  %v944_v33 = vld [vmem:[#allocation2 + $0x15a] sm:$0xff]  ;;  %v982_v11 = vpop.permute.xlu0 %981 }
  0xce   : > { %v3601_v5 = vld [vmem:[#allocation2 + $0x38] sm:$0xff]  ;;  %654 = vst.msk [vmem:[#allocation2 + $0x169] sm:$0xff] %vm299_vm1, %v621_v17 }
  0xcf   : > { %630 = vst.msk [vmem:[#allocation2 + $0x49] sm:$0xff] %vm299_vm1, %v597_v3  ;;  %983 = vrot.lane.b32.xlu1 %v1494_v57, %s3276_s17  ;;  %1174 = vrot.lane.b32.xlu2 %v1109_v51, %s3278_s15  ;;  %v3627_v23 = vld [vmem:[#allocation2 + $0x32] sm:$0xff]  ;;  %v920_v41 = vld [vmem:[#allocation2 + $0x3a] sm:$0xff] }
  0xd0   : > { %695 = vst.msk [vmem:[#allocation3 + $0x28] sm:$0xff] %vm299_vm1, %v3601_v5  ;;  %v584_v25 = vpop.f32.mrf.mxu3  ;;  %v751_v34 = vld [vmem:[#allocation2 + $0x159] sm:$0xff] }
  0xd1   : > { %v585_v26 = vadd.f32 %v3552_v27, %v584_v25  ;;  %v727_v42 = vld [vmem:[#allocation2 + $0x39] sm:$0xff]  ;;  %1077 = vst.msk [vmem:[#allocation3 + $0x8] sm:$0xff] %vm1075_vm5, %v982_v11 }
  0xd2   : > { %v512_v6 = vpop.f32.mrf.mxu0 }
  0xd3   : > { %v513_v9 = vadd.f32 %v3552_v27, %v512_v6  ;;  %v622_v28 = vmax.f32 %v585_v26, 0.0 }
  0xd5   : > { %v598_v10 = vmax.f32 %v513_v9, 0.0  ;;  %2986 = vmatmul.msk.f32.gmra.mxu0 %vm383_vm0, %v366_v7  ;;  %1369 = vrot.lane.b32.xlu0 %v1303_v8, %s3277_s19  ;;  %655 = vst.msk [vmem:[#allocation2 + $0x171] sm:$0xff] %vm299_vm1, %v622_v28  ;;  %v688_v37 = vld [vmem:[#allocation2 + $0x168] sm:$0xff] }
  0xd6   : > { %v1112_v35 = vld [vmem:[#allocation2 + $0x48] sm:$0xff]  ;;  %720 = vst.msk [vmem:[#allocation3 + $0xf0] sm:$0xff] %vm299_vm1, %v688_v37  ;;  %v2303_v37 = vld [vmem:[%s4864_s3 + $0x20] sm:$0xf] }
  0xd7   : > { %631 = vst.msk [vmem:[#allocation2 + $0x51] sm:$0xff] %vm299_vm1, %v598_v10  ;;  %1367 = vrot.lane.b32.xlu1 %v725_v59, %s3277_s19  ;;  %1560 = vrot.lane.b32.xlu2 %v918_v60, %s3279_s20  ;;  %v752_v52 = vld [vmem:[#allocation2 + $0x169] sm:$0xff] }
  0xd8   : > { %696 = vst.msk [vmem:[#allocation3 + $0x30] sm:$0xff] %vm299_vm1, %v1112_v35  ;;  %v728_v57 = vld [vmem:[#allocation2 + $0x49] sm:$0xff]  ;;  %2997 = vmatpush.msk.msra.mxu1 %vm2405_vm9, %v2303_v37  ;;  %3072 = vmatpush.msk.msrb.mxu3 %vm2405_vm9, %v2303_v37 }
  0xda   : > { %v515_v13 = vpop.f32.mrf.mxu0 }
  0xdb   : > { %v516_v16 = vadd.f32 %v3552_v27, %v515_v13 }
  0xdc   : > { %v689_v38 = vld [vmem:[#allocation2 + $0x170] sm:$0xff] }
  0xdd   : > { %v599_v19 = vmax.f32 %v516_v16, 0.0  ;;  %2987 = vmatmul.msk.f32.gmra.mxu0 %vm383_vm0, %v367_v14  ;;  %1035 = vrot.lane.b32.xlu0 %v943_v15, %s3276_s17  ;;  %721 = vst.msk [vmem:[#allocation3 + $0xf8] sm:$0xff] %vm299_vm1, %v689_v38  ;;  %v946_v2 = vld [vmem:[#allocation2 + $0x172] sm:$0xff]  ;;  %v945_v6 = vld [vmem:[#allocation2 + $0x16a] sm:$0xff] }
  0xde   : > { %v3654_v44 = vld [vmem:[#allocation2 + $0x50] sm:$0xff]  ;;  %v2302_v38 = vld [vmem:[%s4864_s3 + $0x18] sm:$0xff] }
  0xdf   : > { %632 = vst.msk [vmem:[#allocation2 + $0x61] sm:$0xff] %vm299_vm1, %v599_v19  ;;  %842 = vrot.lane.b32.xlu1 %v750_v18, %s3275_s12  ;;  %794 = vrot.lane.b32.xlu2 %v1303_v8, %s3275_s12  ;;  %v753_v4 = vld [vmem:[#allocation2 + $0x171] sm:$0xff] }
  0xe0   : > { %697 = vst.msk [vmem:[#allocation3 + $0x38] sm:$0xff] %vm299_vm1, %v3654_v44  ;;  %v922_v9 = vld [vmem:[#allocation2 + $0x52] sm:$0xff]  ;;  %v921_v14 = vld [vmem:[#allocation2 + $0x4a] sm:$0xff]  ;;  %2421 = vmatpush.msra.mxu1 %v2302_v38  ;;  %3073 = vmatpush.msrb.mxu3 %v2302_v38 }
  0xe1   : > { %v729_v12 = vld [vmem:[#allocation2 + $0x51] sm:$0xff] }
  0xe2   : > { %v518_v20 = vpop.f32.mrf.mxu0  ;;  %2422 = vmatpush.msra.mxu1 %v2301_v43  ;;  %3074 = vmatpush.msrb.mxu3 %v2301_v43 }
  0xe3   : > { %v519_v22 = vadd.f32 %v3552_v27, %v518_v20 }
  0xe4   : > { %2423 = vmatpush.msra.mxu1 %v2300_v45  ;;  %3075 = vmatpush.msrb.mxu3 %v2300_v45 }
  0xe5   : > { %v600_v24 = vmax.f32 %v519_v22, 0.0  ;;  %2988 = vmatmul.msk.f32.gmra.mxu0 %vm383_vm0, %v368_v21  ;;  %987 = vrot.lane.b32.xlu0 %v3627_v23, %s3276_s17 }
  0xe6   : > { %v3698_v15 = vld [vmem:[#allocation2 + $0x60] sm:$0xff] }
  0xe7   : > { %633 = vst.msk [vmem:[#allocation2 + $0x69] sm:$0xff] %vm299_vm1, %v600_v24  ;;  %1752 = vrot.lane.b32.xlu1 %v1110_v63, %s3280_s9  ;;  %1945 = vrot.lane.b32.xlu2 %v1303_v8, %s3281_s21 }
  0xe8   : > { %698 = vst.msk [vmem:[#allocation3 + $0x40] sm:$0xff] %vm299_vm1, %v3698_v15 }
  0xea   : > { %v521_v29 = vpop.f32.mrf.mxu0 }
  0xeb   : > { %v522_v31 = vadd.f32 %v3552_v27, %v521_v29 }
  0xed   : > { %v601_v32 = vmax.f32 %v522_v31, 0.0  ;;  %2989 = vmatmul.msk.f32.gmra.mxu0 %vm383_vm0, %v369_v30  ;;  %2138 = vrot.lane.b32.xlu0 %v3627_v23, %s3282_s23 }
  0xee   : > { %v3700_v16 = vld [vmem:[#allocation2 + $0x68] sm:$0xff] }
  0xef   : > { %634 = vst.msk [vmem:[#allocation2 + $0x79] sm:$0xff] %vm299_vm1, %v601_v32  ;;  %1037 = vrot.lane.b32.xlu1 %v944_v33, %s3276_s17  ;;  %844 = vrot.lane.b32.xlu2 %v751_v34, %s3275_s12  ;;  %v730_v34 = vld [vmem:[#allocation2 + $0x61] sm:$0xff] }
  0xf0   : > { %699 = vst.msk [vmem:[#allocation3 + $0x48] sm:$0xff] %vm299_vm1, %v3700_v16 }
  0xf2   : > { %v524_v36 = vpop.f32.mrf.mxu0 }
  0xf3   : > { %v525_v39 = vadd.f32 %v3552_v27, %v524_v36 }
  0xf5   : > { %v602_v40 = vmax.f32 %v525_v39, 0.0  ;;  %1754 = vrot.lane.b32.xlu0 %v3601_v5, %s3280_s9 }
  0xf7   : > { %635 = vst.msk [vmem:[#allocation2 + $0x81] sm:$0xff] %vm299_vm1, %v602_v40  ;;  %989 = vrot.lane.b32.xlu1 %v920_v41, %s3276_s17  ;;  %796 = vrot.lane.b32.xlu2 %v727_v42, %s3275_s12 }
  0xfa   : > { %v527_v46 = vpop.f32.mrf.mxu0 }
  0xfb   : > { %v528_v47 = vadd.f32 %v3552_v27, %v527_v46 }
  0xfd   : > { %v603_v48 = vmax.f32 %v528_v47, 0.0  ;;  %1564 = vrot.lane.b32.xlu0 %v920_v41, %s3279_s20  ;;  %v2299_v47 = vld [vmem:[%s4864_s3] sm:$0xff] }
  0xfe   : > { %2424 = vmatpush.msra.mxu1 %v2299_v47  ;;  %3076 = vmatpush.msrb.mxu3 %v2299_v47  ;;  %v3874_v37 = vld [vmem:[#allocation2 + $0x81] sm:$0xff] }
  0xff   : > { %636 = vst.msk [vmem:[#allocation2 + $0x91] sm:$0xff] %vm299_vm1, %v603_v48  ;;  %1178 = vrot.lane.b32.xlu1 %v3601_v5, %s3278_s15  ;;  %2140 = vrot.lane.b32.xlu2 %v920_v41, %s3282_s23  ;;  %v3764_v48 = vld [vmem:[#allocation2 + $0x78] sm:$0xff] }
 0x100   : > { %700 = vst.msk [vmem:[#allocation3 + $0x50] sm:$0xff] %vm299_vm1, %v3764_v48 }
 0x102   : > { %v530_v51 = vpop.f32.mrf.mxu0 }
 0x103   : > { %v531_v53 = vadd.f32 %v3552_v27, %v530_v51 }
 0x105   : > { %v604_v54 = vmax.f32 %v531_v53, 0.0  ;;  %846 = vrot.lane.b32.xlu0 %v752_v52, %s3275_s12  ;;  %v731_v52 = vld [vmem:[#allocation2 + $0x69] sm:$0xff] }
 0x107   : > { %637 = vst.msk [vmem:[#allocation2 + $0x99] sm:$0xff] %vm299_vm1, %v604_v54  ;;  %1947 = vrot.lane.b32.xlu1 %v727_v42, %s3281_s21  ;;  %1371 = vrot.lane.b32.xlu2 %v727_v42, %s3277_s19  ;;  %v3773_v54 = vld [vmem:[#allocation2 + $0x6a] sm:$0xff] }
 0x10a   : > { %v533_v56 = vpop.f32.mrf.mxu0 }
 0x10b   : > { %v534_v58 = vadd.f32 %v3552_v27, %v533_v56 }
 0x10d   : > { %v605_v59 = vmax.f32 %v534_v58, 0.0  ;;  %798 = vrot.lane.b32.xlu0 %v728_v57, %s3275_s12 }
 0x10e   : > { %v3903_v45 = vld [vmem:[#allocation2 + $0x99] sm:$0xff] }
 0x10f   : > { %638 = vst.msk [vmem:[#allocation2 + $0xa9] sm:$0xff] %vm299_vm1, %v605_v59  ;;  %1562 = vrot.lane.b32.xlu1 %v3627_v23, %s3279_s20  ;;  %1180 = vrot.lane.b32.xlu2 %v1112_v35, %s3278_s15 }
 0x111   : > { %v1366_v60 = vpop.permute.xlu2 %1365 }
 0x112   : > { %v536_v61 = vpop.f32.mrf.mxu0 }
 0x113   : > { %v537_v62 = vadd.f32 %v3552_v27, %v536_v61 }
 0x115   : > { %v606_v63 = vmax.f32 %v537_v62, 0.0  ;;  %1949 = vrot.lane.b32.xlu0 %v728_v57, %s3281_s21 }
 0x117   : > { %639 = vst.msk [vmem:[#allocation2 + $0xb1] sm:$0xff] %vm299_vm1, %v606_v63  ;;  %1373 = vrot.lane.b32.xlu1 %v728_v57, %s3277_s19  ;;  %1756 = vrot.lane.b32.xlu2 %v1112_v35, %s3280_s9  ;;  %v3780_v57 = vld [vmem:[#allocation2 + $0x80] sm:$0xff] }
 0x118   : > { %701 = vst.msk [vmem:[#allocation3 + $0x58] sm:$0xff] %vm299_vm1, %v3780_v57  ;;  %v923_v63 = vld [vmem:[#allocation2 + $0x62] sm:$0xff] }
 0x119   : > { %v3685_v0 = vpop.permute.xlu2 %1033 }
 0x11a   : > { %v539_v1 = vpop.f32.mrf.mxu0 }
 0x11b   : > { %v540_v3 = vadd.f32 %v3552_v27, %v539_v1 }
 0x11d   : > { %v607_v5 = vmax.f32 %v540_v3, 0.0  ;;  %1041 = vrot.lane.b32.xlu0 %v946_v2, %s3276_s17 }
 0x11f   : > { %640 = vst.msk [vmem:[#allocation2 + $0xc1] sm:$0xff] %vm299_vm1, %v607_v5  ;;  %848 = vrot.lane.b32.xlu1 %v753_v4, %s3275_s12  ;;  %1039 = vrot.lane.b32.xlu2 %v945_v6, %s3276_s17 }
 0x121   : > { %v986_v7 = vpop.permute.xlu2 %985 }
 0x122   : > { %v542_v8 = vpop.f32.mrf.mxu0 }
 0x123   : > { %v543_v10 = vadd.f32 %v3552_v27, %v542_v8 }
 0x125   : > { %v608_v13 = vmax.f32 %v543_v10, 0.0  ;;  %993 = vrot.lane.b32.xlu0 %v922_v9, %s3276_s17 }
 0x127   : > { %641 = vst.msk [vmem:[#allocation2 + $0xc9] sm:$0xff] %vm299_vm1, %v608_v13  ;;  %800 = vrot.lane.b32.xlu1 %v729_v12, %s3275_s12  ;;  %991 = vrot.lane.b32.xlu2 %v921_v14, %s3276_s17 }
 0x129   : > { %v791_v17 = vpop.permute.xlu1 %790  ;;  %v1175_v18 = vpop.permute.xlu2 %1174 }
 0x12a   : > { %885 = vst.msk [vmem:[#allocation3 + $0x10] sm:$0xff] %vm882_vm4, %v791_v17  ;;  %v545_v19 = vpop.f32.mrf.mxu0 }
 0x12b   : > { %1270 = vst.msk [vmem:[#allocation3 + $0x8] sm:$0xff] %vm1268_vm6, %v1175_v18  ;;  %v546_v20 = vadd.f32 %v3552_v27, %v545_v19  ;;  %v3818_v19 = vld [vmem:[#allocation2 + $0x98] sm:$0xff] }
 0x12c   : > { %703 = vst.msk [vmem:[#allocation3 + $0x68] sm:$0xff] %vm299_vm1, %v3818_v19 }
 0x12d   : > { %v609_v21 = vmax.f32 %v546_v20, 0.0  ;;  %1182 = vrot.lane.b32.xlu0 %v3654_v44, %s3278_s15 }
 0x12f   : > { %642 = vst.msk [vmem:[#allocation2 + $0xd9] sm:$0xff] %vm299_vm1, %v609_v21  ;;  %2142 = vrot.lane.b32.xlu1 %v921_v14, %s3282_s23  ;;  %1951 = vrot.lane.b32.xlu2 %v729_v12, %s3281_s21  ;;  %v3714_v22 = vpop.permute.xlu0 %840  ;;  %v3823_v21 = vld [vmem:[#allocation2 + $0x7a] sm:$0xff] }
 0x131   : > { %v1173_v23 = vpop.permute.xlu1 %1172  ;;  %v3716_v24 = vpop.permute.xlu2 %1560 }
 0x132   : > { %1269 = vst.msk [vmem:[#allocation3] sm:$0xff] %vm1268_vm6, %v1173_v23  ;;  %v548_v25 = vpop.f32.mrf.mxu0  ;;  %v3827_v23 = vld [vmem:[#allocation2 + $0x79] sm:$0xff] }
 0x133   : > { %v549_v26 = vadd.f32 %v3552_v27, %v548_v25  ;;  %1462 = vst.msk [vmem:[#allocation3] sm:$0xff] %vm1461_vm7, %v1366_v60 }
 0x135   : > { %v610_v28 = vmax.f32 %v549_v26, 0.0  ;;  %2144 = vrot.lane.b32.xlu0 %v922_v9, %s3282_s23 }
 0x137   : > { %643 = vst.msk [vmem:[#allocation2 + $0xe1] sm:$0xff] %vm299_vm1, %v610_v28  ;;  %1758 = vrot.lane.b32.xlu1 %v3654_v44, %s3280_s9  ;;  %1566 = vrot.lane.b32.xlu2 %v921_v14, %s3279_s20  ;;  %v1559_v29 = vpop.permute.xlu0 %1558  ;;  %v3843_v28 = vld [vmem:[#allocation2 + $0xa8] sm:$0xff] }
 0x138   : > { %1655 = vst.msk [vmem:[#allocation3] sm:$0xff] %vm1654_vm8, %v1559_v29 }
 0x139   : > { %v793_v30 = vpop.permute.xlu1 %792  ;;  %v795_v31 = vpop.permute.xlu2 %794  ;;  %704 = vst.msk [vmem:[#allocation3 + $0x70] sm:$0xff] %vm299_vm1, %v3843_v28 }
 0x13a   : > { %886 = vst.msk [vmem:[#allocation3 + $0x18] sm:$0xff] %vm882_vm4, %v793_v30  ;;  %v551_v32 = vpop.f32.mrf.mxu0 }
 0x13b   : > { %1079 = vst.msk [vmem:[#allocation3 + $0x18] sm:$0xff] %vm1075_vm5, %v986_v7  ;;  %v552_v33 = vadd.f32 %v3552_v27, %v551_v32 }
 0x13c   : > { %887 = vst.msk [vmem:[#allocation3 + $0x20] sm:$0xff] %vm882_vm4, %v795_v31  ;;  %v3856_v31 = vld [vmem:[#allocation2 + $0xb0] sm:$0xff] }
 0x13d   : > { %v611_v35 = vmax.f32 %v552_v33, 0.0  ;;  %1375 = vrot.lane.b32.xlu0 %v729_v12, %s3277_s19  ;;  %705 = vst.msk [vmem:[#allocation3 + $0x78] sm:$0xff] %vm299_vm1, %v3856_v31 }
 0x13f   : > { %644 = vst.msk [vmem:[#allocation2 + $0xf1] sm:$0xff] %vm299_vm1, %v611_v35  ;;  %1568 = vrot.lane.b32.xlu1 %v922_v9, %s3279_s20  ;;  %802 = vrot.lane.b32.xlu2 %v730_v34, %s3275_s12  ;;  %v1177_v36 = vpop.permute.xlu0 %1176  ;;  %v3866_v35 = vld [vmem:[#allocation2 + $0xc0] sm:$0xff] }
 0x140   : > { %706 = vst.msk [vmem:[#allocation3 + $0x80] sm:$0xff] %vm299_vm1, %v3866_v35 }
 0x141   : > { %v984_v39 = vpop.permute.xlu1 %983  ;;  %v3743_v40 = vpop.permute.xlu2 %1945 }
 0x142   : > { %1078 = vst.msk [vmem:[#allocation3 + $0x10] sm:$0xff] %vm1075_vm5, %v984_v39  ;;  %v554_v41 = vpop.f32.mrf.mxu0 }
 0x143   : > { %1271 = vst.msk [vmem:[#allocation3 + $0x10] sm:$0xff] %vm1268_vm6, %v1177_v36  ;;  %v555_v42 = vadd.f32 %v3552_v27, %v554_v41  ;;  %v3872_v36 = vld [vmem:[#allocation2 + $0x82] sm:$0xff] }
 0x145   : > { %v612_v44 = vmax.f32 %v555_v42, 0.0  ;;  %1760 = vrot.lane.b32.xlu0 %v3698_v15, %s3280_s9  ;;  %v3886_v42 = vld [vmem:[#allocation2 + $0x9a] sm:$0xff] }
 0x147   : > { %645 = vst.msk [vmem:[#allocation2 + $0xf9] sm:$0xff] %vm299_vm1, %v612_v44  ;;  %1184 = vrot.lane.b32.xlu1 %v3698_v15, %s3278_s15  ;;  %1377 = vrot.lane.b32.xlu2 %v730_v34, %s3277_s19  ;;  %v1370_v46 = vpop.permute.xlu0 %1369  ;;  %v3814_v15 = vld [vmem:[#allocation2 + $0x90] sm:$0xff] }
 0x148   : > { %1464 = vst.msk [vmem:[#allocation3 + $0x10] sm:$0xff] %vm1461_vm7, %v1370_v46  ;;  %v3907_v46 = vld [vmem:[#allocation2 + $0x92] sm:$0xff] }
 0x149   : > { %v1368_v49 = vpop.permute.xlu1 %1367  ;;  %v845_v50 = vpop.permute.xlu2 %844  ;;  %702 = vst.msk [vmem:[#allocation3 + $0x60] sm:$0xff] %vm299_vm1, %v3814_v15 }
 0x14a   : > { %1463 = vst.msk [vmem:[#allocation3 + $0x8] sm:$0xff] %vm1461_vm7, %v1368_v49  ;;  %v557_v51 = vpop.f32.mrf.mxu0 }
 0x14b   : > { %1656 = vst.msk [vmem:[#allocation3 + $0x8] sm:$0xff] %vm1654_vm8, %v3716_v24  ;;  %v558_v53 = vadd.f32 %v3552_v27, %v557_v51  ;;  %v3918_v51 = vld [vmem:[#allocation2 + $0xa9] sm:$0xff] }
 0x14c   : > { %912 = vst.msk [vmem:[#allocation3 + $0xe8] sm:$0xff] %vm882_vm4, %v845_v50  ;;  %v3914_v50 = vld [vmem:[#allocation2 + $0xb1] sm:$0xff] }
 0x14d   : > { %v613_v55 = vmax.f32 %v558_v53, 0.0  ;;  %804 = vrot.lane.b32.xlu0 %v731_v52, %s3275_s12  ;;  %v3926_v53 = vld [vmem:[#allocation2 + $0xd8] sm:$0xff] }
 0x14e   : > { %708 = vst.msk [vmem:[#allocation3 + $0x90] sm:$0xff] %vm299_vm1, %v3926_v53 }
 0x14f   : > { %646 = vst.msk [vmem:[#allocation2 + $0x109] sm:$0xff] %vm299_vm1, %v613_v55  ;;  %1953 = vrot.lane.b32.xlu1 %v730_v34, %s3281_s21  ;;  %997 = vrot.lane.b32.xlu2 %v3773_v54, %s3276_s17  ;;  %v1036_v56 = vpop.permute.xlu0 %1035  ;;  %v3861_v34 = vld [vmem:[#allocation2 + $0x91] sm:$0xff] }
 0x151   : > { %v843_v58 = vpop.permute.xlu1 %842  ;;  %v797_v59 = vpop.permute.xlu2 %796 }
 0x152   : > { %911 = vst.msk [vmem:[#allocation3 + $0xe0] sm:$0xff] %vm882_vm4, %v843_v58  ;;  %v560_v60 = vpop.f32.mrf.mxu0  ;;  %v3937_v58 = vld [vmem:[#allocation2 + $0xb2] sm:$0xff] }
 0x153   : > { %1104 = vst.msk [vmem:[#allocation3 + $0xe0] sm:$0xff] %vm1075_vm5, %v1036_v56  ;;  %v561_v61 = vadd.f32 %v3552_v27, %v560_v60 }
 0x154   : > { %888 = vst.msk [vmem:[#allocation3 + $0x28] sm:$0xff] %vm882_vm4, %v797_v59  ;;  %v3941_v59 = vld [vmem:[#allocation2 + $0xaa] sm:$0xff] }
 0x155   : > { %v614_v62 = vmax.f32 %v561_v61, 0.0  ;;  %1955 = vrot.lane.b32.xlu0 %v731_v52, %s3281_s21 }
 0x157   : > { %647 = vst.msk [vmem:[#allocation2 + $0x111] sm:$0xff] %vm299_vm1, %v614_v62  ;;  %995 = vrot.lane.b32.xlu1 %v923_v63, %s3276_s17  ;;  %1186 = vrot.lane.b32.xlu2 %v3700_v16, %s3278_s15  ;;  %v988_v1 = vpop.permute.xlu0 %987 }
 0x158   : > { %1080 = vst.msk [vmem:[#allocation3 + $0x20] sm:$0xff] %vm1075_vm5, %v988_v1  ;;  %v3951_v1 = vld [vmem:[#allocation2 + $0xc1] sm:$0xff] }
 0x159   : > { %v1753_v2 = vpop.permute.xlu1 %1752  ;;  %v3794_v3 = vpop.permute.xlu2 %2140 }
 0x15a   : > { %1849 = vst.msk [vmem:[#allocation3] sm:$0xff] %vm1848_vm10, %v1753_v2  ;;  %v563_v4 = vpop.f32.mrf.mxu0 }
 0x15b   : > { %v564_v5 = vadd.f32 %v3552_v27, %v563_v4  ;;  %2042 = vst.msk [vmem:[#allocation3] sm:$0xff] %vm2041_vm11, %v3743_v40 }
 0x15d   : > { %v615_v6 = vmax.f32 %v564_v5, 0.0  ;;  %1570 = vrot.lane.b32.xlu0 %v923_v63, %s3279_s20 }
 0x15f   : > { %648 = vst.msk [vmem:[#allocation2 + $0x121] sm:$0xff] %vm299_vm1, %v615_v6  ;;  %2148 = vrot.lane.b32.xlu1 %v3773_v54, %s3282_s23  ;;  %2146 = vrot.lane.b32.xlu2 %v923_v63, %s3282_s23  ;;  %v2139_v7 = vpop.permute.xlu0 %2138  ;;  %v3949_v63 = vld [vmem:[#allocation2 + $0xc2] sm:$0xff]  ;;  %v3961_v6 = vld [vmem:[#allocation2 + $0xd9] sm:$0xff] }
 0x160   : > { %2235 = vst.msk [vmem:[#allocation3] sm:$0xff] %vm2234_vm12, %v2139_v7  ;;  %v3965_v7 = vld [vmem:[#allocation2 + $0xca] sm:$0xff] }
 0x161   : > { %v1038_v8 = vpop.permute.xlu1 %1037  ;;  %v1372_v9 = vpop.permute.xlu2 %1371 }
 0x162   : > { %1105 = vst.msk [vmem:[#allocation3 + $0xe8] sm:$0xff] %vm1075_vm5, %v1038_v8  ;;  %v566_v10 = vpop.f32.mrf.mxu0  ;;  %v3967_v8 = vld [vmem:[#allocation2 + $0xc9] sm:$0xff] }
 0x163   : > { %v567_v11 = vadd.f32 %v3552_v27, %v566_v10 }
 0x165   : > { %v616_v12 = vmax.f32 %v567_v11, 0.0  ;;  %1188 = vrot.lane.b32.xlu0 %v3764_v48, %s3278_s15  ;;  %v3980_v11 = vld [vmem:[#allocation2 + $0xf8] sm:$0xff] }
 0x166   : > { %711 = vst.msk [vmem:[#allocation3 + $0xa8] sm:$0xff] %vm299_vm1, %v3980_v11 }
 0x167   : > { %649 = vst.msk [vmem:[#allocation2 + $0x129] sm:$0xff] %vm299_vm1, %v616_v12  ;;  %1379 = vrot.lane.b32.xlu1 %v731_v52, %s3277_s19  ;;  %1762 = vrot.lane.b32.xlu2 %v3700_v16, %s3280_s9  ;;  %v1755_v13 = vpop.permute.xlu0 %1754  ;;  %v2267_v14 = vld [vmem:[#allocation3] sm:$0xff] }
 0x168   : > { %1850 = vst.msk [vmem:[#allocation3 + $0x8] sm:$0xff] %vm1848_vm10, %v1755_v13  ;;  %2998 = vmatmul.msk.f32.vlgmr.msra.gmra.mxu1 %vm2308_vm13, %v2267_v14  ;;  %v3985_v14 = vld [vmem:[#allocation2 + $0xe2] sm:$0xff] }
 0x169   : > { %v990_v17 = vpop.permute.xlu1 %989  ;;  %v1181_v18 = vpop.permute.xlu2 %1180 }
 0x16a   : > { %1081 = vst.msk [vmem:[#allocation3 + $0x28] sm:$0xff] %vm1075_vm5, %v990_v17  ;;  %v569_v20 = vpop.f32.mrf.mxu0 }
 0x16b   : > { %1273 = vst.msk [vmem:[#allocation3 + $0x20] sm:$0xff] %vm1268_vm6, %v1181_v18  ;;  %v570_v16 = vadd.f32 %v3552_v27, %v569_v20  ;;  %v3988_v18 = vld [vmem:[#allocation2 + $0x108] sm:$0xff] }
 0x16c   : > { %712 = vst.msk [vmem:[#allocation3 + $0xb0] sm:$0xff] %vm299_vm1, %v3988_v18 }
 0x16d   : > { %v617_v24 = vmax.f32 %v570_v16, 0.0  ;;  %999 = vrot.lane.b32.xlu0 %v3823_v21, %s3276_s17 }
 0x16f   : > { %650 = vst.msk [vmem:[#allocation2 + $0x139] sm:$0xff] %vm299_vm1, %v617_v24  ;;  %806 = vrot.lane.b32.xlu1 %v3827_v23, %s3275_s12  ;;  %1572 = vrot.lane.b32.xlu2 %v3773_v54, %s3279_s20  ;;  %v1565_v25 = vpop.permute.xlu0 %1564  ;;  %v3928_v54 = vld [vmem:[#allocation2 + $0xe0] sm:$0xff] }
 0x170   : > { %709 = vst.msk [vmem:[#allocation3 + $0x98] sm:$0xff] %vm299_vm1, %v3928_v54 }
 0x171   : > { %v1179_v26 = vpop.permute.xlu1 %1178  ;;  %v1757_v27 = vpop.permute.xlu2 %1756 }
 0x172   : > { %1272 = vst.msk [vmem:[#allocation3 + $0x18] sm:$0xff] %vm1268_vm6, %v1179_v26  ;;  %v4006_v26 = vld [vmem:[#allocation2 + $0xda] sm:$0xff] }
 0x173   : > { %1465 = vst.msk [vmem:[#allocation3 + $0x18] sm:$0xff] %vm1461_vm7, %v1372_v9  ;;  %v3971_v9 = vld [vmem:[#allocation2 + $0xf0] sm:$0xff] }
 0x174   : > { %1658 = vst.msk [vmem:[#allocation3 + $0x18] sm:$0xff] %vm1654_vm8, %v1565_v25  ;;  %v4002_v25 = vld [vmem:[#allocation2 + $0xe1] sm:$0xff] }
 0x175   : > { %2150 = vrot.lane.b32.xlu0 %v3823_v21, %s3282_s23  ;;  %710 = vst.msk [vmem:[#allocation3 + $0xa0] sm:$0xff] %vm299_vm1, %v3971_v9 }
 0x176   : > { %v3847_v29 = vld [vmem:[#allocation2 + $0x140] sm:$0xff] }
 0x177   : > { %1764 = vrot.lane.b32.xlu1 %v3764_v48, %s3280_s9  ;;  %1957 = vrot.lane.b32.xlu2 %v3827_v23, %s3281_s21  ;;  %v847_v30 = vpop.permute.xlu0 %846  ;;  %717 = vst.msk [vmem:[#allocation3 + $0xd8] sm:$0xff] %vm299_vm1, %v3847_v29 }
 0x178   : > { %913 = vst.msk [vmem:[#allocation3 + $0xf0] sm:$0xff] %vm882_vm4, %v847_v30 }
 0x179   : > { %v1948_v32 = vpop.permute.xlu1 %1947  ;;  %v1040_v33 = vpop.permute.xlu2 %1039  ;;  %910 = vst.msk [vmem:[#allocation3 + $0xd8] sm:$0xff] %vm882_vm4, %v3714_v22  ;;  %v3898_v22 = vld [vmem:[#allocation2 + $0xc8] sm:$0xff] }
 0x17a   : > { %2043 = vst.msk [vmem:[#allocation3 + $0x8] sm:$0xff] %vm2041_vm11, %v1948_v32 }
 0x17b   : > { %2236 = vst.msk [vmem:[#allocation3 + $0x8] sm:$0xff] %vm2234_vm12, %v3794_v3 }
 0x17c   : > { %1106 = vst.msk [vmem:[#allocation3 + $0xf0] sm:$0xff] %vm1075_vm5, %v1040_v33  ;;  %v4015_v33 = vld [vmem:[#allocation2 + $0x110] sm:$0xff] }
 0x17d   : > { %810 = vrot.lane.b32.xlu0 %v3861_v34, %s3275_s12  ;;  %1103 = vst.msk [vmem:[#allocation3 + $0xd8] sm:$0xff] %vm1075_vm5, %v3685_v0 }
 0x17e   : > { %707 = vst.msk [vmem:[#allocation3 + $0x88] sm:$0xff] %vm299_vm1, %v3898_v22 }
 0x17f   : > { %1001 = vrot.lane.b32.xlu1 %v3872_v36, %s3276_s17  ;;  %808 = vrot.lane.b32.xlu2 %v3874_v37, %s3275_s12  ;;  %v799_v38 = vpop.permute.xlu0 %798  ;;  %713 = vst.msk [vmem:[#allocation3 + $0xb8] sm:$0xff] %vm299_vm1, %v4015_v33 }
 0x180   : > { %889 = vst.msk [vmem:[#allocation3 + $0x30] sm:$0xff] %vm882_vm4, %v799_v38  ;;  %v4019_v38 = vld [vmem:[#allocation2 + $0xf1] sm:$0xff] }
 0x181   : > { %v1563_v39 = vpop.permute.xlu1 %1562  ;;  %v992_v40 = vpop.permute.xlu2 %991 }
 0x182   : > { %1657 = vst.msk [vmem:[#allocation3 + $0x10] sm:$0xff] %vm1654_vm8, %v1563_v39  ;;  %v2268_v41 = vld [vmem:[#allocation3 + $0x8] sm:$0xff] }
 0x183   : > { %1851 = vst.msk [vmem:[#allocation3 + $0x10] sm:$0xff] %vm1848_vm10, %v1757_v27  ;;  %2999 = vmatmul.msk.f32.gmra.mxu1 %vm2308_vm13, %v2268_v41 }
 0x184   : > { %1082 = vst.msk [vmem:[#allocation3 + $0x30] sm:$0xff] %vm1075_vm5, %v992_v40  ;;  %v2554_v40 = vld [vmem:[%s4866_s5] sm:$0xf] }
 0x185   : > { %1005 = vrot.lane.b32.xlu0 %v3886_v42, %s3276_s17  ;;  %3030 = vmatpush.msk.msra.mxu2 %vm2405_vm9, %v2554_v40 }
 0x186   : > { %3077 = vmatpush.msk.msra.mxu3 %vm2405_vm9, %v2554_v40 }
 0x187   : > { %1190 = vrot.lane.b32.xlu1 %v3780_v57, %s3278_s15  ;;  %1192 = vrot.lane.b32.xlu2 %v3814_v15, %s3278_s15  ;;  %v1950_v0 = vpop.permute.xlu0 %1949 }
 0x188   : > { %2044 = vst.msk [vmem:[#allocation3 + $0x10] sm:$0xff] %vm2041_vm11, %v1950_v0 }
 0x189   : > { %v1374_v43 = vpop.permute.xlu1 %1373  ;;  %v1952_v44 = vpop.permute.xlu2 %1951 }
 0x18a   : > { %1466 = vst.msk [vmem:[#allocation3 + $0x20] sm:$0xff] %vm1461_vm7, %v1374_v43  ;;  %v4036_v43 = vld [vmem:[#allocation2 + $0xf9] sm:$0xff] }
 0x18d   : > { %1194 = vrot.lane.b32.xlu0 %v3818_v19, %s3278_s15 }
 0x18f   : > { %812 = vrot.lane.b32.xlu1 %v3903_v45, %s3275_s12  ;;  %1003 = vrot.lane.b32.xlu2 %v3907_v46, %s3276_s17  ;;  %v1042_v47 = vpop.permute.xlu0 %1041 }
 0x191   : > { %v849_v48 = vpop.permute.xlu1 %848  ;;  %v1567_v49 = vpop.permute.xlu2 %1566 }
 0x192   : > { %914 = vst.msk [vmem:[#allocation3 + $0xf8] sm:$0xff] %vm882_vm4, %v849_v48  ;;  %v4048_v48 = vld [vmem:[#allocation2 + $0x120] sm:$0xff] }
 0x193   : > { %1107 = vst.msk [vmem:[#allocation3 + $0xf8] sm:$0xff] %vm1075_vm5, %v1042_v47 }
 0x194   : > { %1659 = vst.msk [vmem:[#allocation3 + $0x20] sm:$0xff] %vm1654_vm8, %v1567_v49  ;;  %v4050_v49 = vld [vmem:[#allocation2 + $0x128] sm:$0xff] }
 0x195   : > { %816 = vrot.lane.b32.xlu0 %v3914_v50, %s3275_s12  ;;  %714 = vst.msk [vmem:[#allocation3 + $0xc0] sm:$0xff] %vm299_vm1, %v4048_v48 }
 0x196   : > { %715 = vst.msk [vmem:[#allocation3 + $0xc8] sm:$0xff] %vm299_vm1, %v4050_v49 }
 0x197   : > { %1196 = vrot.lane.b32.xlu1 %v3843_v28, %s3278_s15  ;;  %814 = vrot.lane.b32.xlu2 %v3918_v51, %s3275_s12  ;;  %v994_v52 = vpop.permute.xlu0 %993 }
 0x199   : > { %v801_v55 = vpop.permute.xlu1 %800  ;;  %v803_v56 = vpop.permute.xlu2 %802 }
 0x19a   : > { %890 = vst.msk [vmem:[#allocation3 + $0x38] sm:$0xff] %vm882_vm4, %v801_v55 }
 0x19b   : > { %1083 = vst.msk [vmem:[#allocation3 + $0x38] sm:$0xff] %vm1075_vm5, %v994_v52 }
 0x19c   : > { %891 = vst.msk [vmem:[#allocation3 + $0x40] sm:$0xff] %vm882_vm4, %v803_v56  ;;  %v4059_v56 = vld [vmem:[#allocation2 + $0xf2] sm:$0xff] }
 0x19d   : > { %1200 = vrot.lane.b32.xlu0 %v3866_v35, %s3278_s15 }
 0x19f   : > { %1007 = vrot.lane.b32.xlu1 %v3941_v59, %s3276_s17  ;;  %1009 = vrot.lane.b32.xlu2 %v3937_v58, %s3276_s17  ;;  %v1183_v60 = vpop.permute.xlu0 %1182 }
 0x1a0   : > { %1274 = vst.msk [vmem:[#allocation3 + $0x28] sm:$0xff] %vm1268_vm6, %v1183_v60 }
 0x1a1   : > { %v2143_v61 = vpop.permute.xlu1 %2142  ;;  %v1378_v62 = vpop.permute.xlu2 %1377 }
 0x1a2   : > { %2237 = vst.msk [vmem:[#allocation3 + $0x10] sm:$0xff] %vm2234_vm12, %v2143_v61 }
 0x1a5   : > { %1011 = vrot.lane.b32.xlu0 %v3949_v63, %s3276_s17 }
 0x1a7   : > { %818 = vrot.lane.b32.xlu1 %v3951_v1, %s3275_s12  ;;  %1198 = vrot.lane.b32.xlu2 %v3856_v31, %s3278_s15  ;;  %v2145_v2 = vpop.permute.xlu0 %2144 }
 0x1a9   : > { %v1759_v3 = vpop.permute.xlu1 %1758  ;;  %v998_v4 = vpop.permute.xlu2 %997  ;;  %v2269_v5 = vld [vmem:[#allocation3 + $0x10] sm:$0xff] }
 0x1aa   : > { %1852 = vst.msk [vmem:[#allocation3 + $0x18] sm:$0xff] %vm1848_vm10, %v1759_v3  ;;  %3000 = vmatmul.msk.f32.gmra.mxu1 %vm2308_vm13, %v2269_v5  ;;  %v4068_v3 = vld [vmem:[#allocation2 + $0x10a] sm:$0xff] }
 0x1ab   : > { %2045 = vst.msk [vmem:[#allocation3 + $0x18] sm:$0xff] %vm2041_vm11, %v1952_v44  ;;  %v4039_v44 = vld [vmem:[#allocation2 + $0xfa] sm:$0xff] }
 0x1ac   : > { %2238 = vst.msk [vmem:[#allocation3 + $0x18] sm:$0xff] %vm2234_vm12, %v2145_v2 }
 0x1ad   : > { %822 = vrot.lane.b32.xlu0 %v3961_v6, %s3275_s12 }
 0x1af   : > { %1013 = vrot.lane.b32.xlu1 %v3965_v7, %s3276_s17  ;;  %820 = vrot.lane.b32.xlu2 %v3967_v8, %s3275_s12  ;;  %v1376_v10 = vpop.permute.xlu0 %1375 }
 0x1b0   : > { %1467 = vst.msk [vmem:[#allocation3 + $0x28] sm:$0xff] %vm1461_vm7, %v1376_v10 }
 0x1b1   : > { %v1569_v12 = vpop.permute.xlu1 %1568  ;;  %v1187_v13 = vpop.permute.xlu2 %1186 }
 0x1b2   : > { %1660 = vst.msk [vmem:[#allocation3 + $0x28] sm:$0xff] %vm1654_vm8, %v1569_v12 }
 0x1b3   : > { %1276 = vst.msk [vmem:[#allocation3 + $0x38] sm:$0xff] %vm1268_vm6, %v1187_v13  ;;  %v2270_v17 = vld [vmem:[#allocation3 + $0x18] sm:$0xff] }
 0x1b4   : > { %3001 = vmatmul.msk.f32.gmra.mxu1 %vm2308_vm13, %v2270_v17  ;;  %v4081_v13 = vld [vmem:[#allocation2 + $0x121] sm:$0xff]  ;;  %v4086_v17 = vld [vmem:[%s4865_s4] ss:$0 sm:$0xff] }
 0x1b5   : > { %1017 = vrot.lane.b32.xlu0 %v3985_v14, %s3276_s17 }
 0x1b7   : > { %1202 = vrot.lane.b32.xlu1 %v3898_v22, %s3278_s15  ;;  %1204 = vrot.lane.b32.xlu2 %v3926_v53, %s3278_s15  ;;  %v1761_v20 = vpop.permute.xlu0 %1760 }
 0x1b8   : > { %1853 = vst.msk [vmem:[#allocation3 + $0x20] sm:$0xff] %vm1848_vm10, %v1761_v20  ;;  %v4090_v20 = vld [vmem:[#allocation2 + $0x112] sm:$0xff] }
 0x1b9   : > { %v1185_v16 = vpop.permute.xlu1 %1184  ;;  %v2147_v24 = vpop.permute.xlu2 %2146 }
 0x1ba   : > { %1275 = vst.msk [vmem:[#allocation3 + $0x30] sm:$0xff] %vm1268_vm6, %v1185_v16  ;;  %v4092_v16 = vld [vmem:[#allocation2 + $0x111] sm:$0xff] }
 0x1bb   : > { %1468 = vst.msk [vmem:[#allocation3 + $0x30] sm:$0xff] %vm1461_vm7, %v1378_v62 }
 0x1bd   : > { %1206 = vrot.lane.b32.xlu0 %v3928_v54, %s3278_s15 }
 0x1bf   : > { %824 = vrot.lane.b32.xlu1 %v4002_v25, %s3275_s12  ;;  %1015 = vrot.lane.b32.xlu2 %v4006_v26, %s3276_s17  ;;  %v805_v27 = vpop.permute.xlu0 %804 }
 0x1c0   : > { %892 = vst.msk [vmem:[#allocation3 + $0x48] sm:$0xff] %vm882_vm4, %v805_v27 }
 0x1c1   : > { %1085 = vst.msk [vmem:[#allocation3 + $0x48] sm:$0xff] %vm1075_vm5, %v998_v4  ;;  %v1954_v30 = vpop.permute.xlu1 %1953  ;;  %v1763_v32 = vpop.permute.xlu2 %1762  ;;  %v4072_v4 = vld [vmem:[#allocation2 + $0x109] sm:$0xff] }
 0x1c2   : > { %2046 = vst.msk [vmem:[#allocation3 + $0x20] sm:$0xff] %vm2041_vm11, %v1954_v30 }
 0x1c3   : > { %2239 = vst.msk [vmem:[#allocation3 + $0x20] sm:$0xff] %vm2234_vm12, %v2147_v24 }
 0x1c4   : > { %1854 = vst.msk [vmem:[#allocation3 + $0x28] sm:$0xff] %vm1848_vm10, %v1763_v32 }
 0x1c5   : > { %1766 = vrot.lane.b32.xlu0 %v3780_v57, %s3280_s9 }
 0x1c7   : > { %1959 = vrot.lane.b32.xlu1 %v3874_v37, %s3281_s21  ;;  %826 = vrot.lane.b32.xlu2 %v4019_v38, %s3275_s12  ;;  %v1956_v39 = vpop.permute.xlu0 %1955 }
 0x1c8   : > { %2047 = vst.msk [vmem:[#allocation3 + $0x28] sm:$0xff] %vm2041_vm11, %v1956_v39  ;;  %v4101_v39 = vld [vmem:[#allocation2 + $0x138] sm:$0xff] }
 0x1c9   : > { %v996_v41 = vpop.permute.xlu1 %995  ;;  %v1573_v0 = vpop.permute.xlu2 %1572  ;;  %716 = vst.msk [vmem:[#allocation3 + $0xd0] sm:$0xff] %vm299_vm1, %v4101_v39 }
 0x1ca   : > { %1084 = vst.msk [vmem:[#allocation3 + $0x40] sm:$0xff] %vm1075_vm5, %v996_v41  ;;  %v2271_v57 = vld [vmem:[#allocation3 + $0x20] sm:$0xff] }
 0x1cb   : > { %3002 = vmatmul.msk.f32.gmra.mxu1 %vm2308_vm13, %v2271_v57  ;;  %v4109_v57 = vld [vmem:[#allocation2 + $0x122] sm:$0xff] }
 0x1cd   : > { %828 = vrot.lane.b32.xlu0 %v4036_v43, %s3275_s12 }
 0x1cf   : > { %1208 = vrot.lane.b32.xlu1 %v3971_v9, %s3278_s15  ;;  %1021 = vrot.lane.b32.xlu2 %v4039_v44, %s3276_s17  ;;  %v1571_v47 = vpop.permute.xlu0 %1570 }
 0x1d0   : > { %1661 = vst.msk [vmem:[#allocation3 + $0x30] sm:$0xff] %vm1654_vm8, %v1571_v47 }
 0x1d1   : > { %v2149_v52 = vpop.permute.xlu1 %2148  ;;  %v1958_v55 = vpop.permute.xlu2 %1957 }
 0x1d2   : > { %2240 = vst.msk [vmem:[#allocation3 + $0x28] sm:$0xff] %vm2234_vm12, %v2149_v52 }
 0x1d5   : > { %1212 = vrot.lane.b32.xlu0 %v3988_v18, %s3278_s15 }
 0x1d7   : > { %1019 = vrot.lane.b32.xlu1 %v4059_v56, %s3276_s17  ;;  %1210 = vrot.lane.b32.xlu2 %v3980_v11, %s3278_s15  ;;  %v1189_v60 = vpop.permute.xlu0 %1188 }
 0x1d8   : > { %1277 = vst.msk [vmem:[#allocation3 + $0x40] sm:$0xff] %vm1268_vm6, %v1189_v60 }
 0x1d9   : > { %v1380_v61 = vpop.permute.xlu1 %1379  ;;  %v809_v62 = vpop.permute.xlu2 %808  ;;  %v2272_v2 = vld [vmem:[#allocation3 + $0x28] sm:$0xff] }
 0x1da   : > { %1469 = vst.msk [vmem:[#allocation3 + $0x38] sm:$0xff] %vm1461_vm7, %v1380_v61  ;;  %3003 = vmatmul.msk.f32.gmra.mxu1 %vm2308_vm13, %v2272_v2  ;;  %v747_v61 = vld [vmem:[#allocation2 + $0x129] sm:$0xff] }
 0x1db   : > { %1662 = vst.msk [vmem:[#allocation3 + $0x38] sm:$0xff] %vm1654_vm8, %v1573_v0  ;;  %v940_v0 = vld [vmem:[#allocation2 + $0x12a] sm:$0xff] }
 0x1dc   : > { %894 = vst.msk [vmem:[#allocation3 + $0x58] sm:$0xff] %vm882_vm4, %v809_v62 }
 0x1dd   : > { %1023 = vrot.lane.b32.xlu0 %v4068_v3, %s3276_s17 }
 0x1df   : > { %830 = vrot.lane.b32.xlu1 %v4072_v4, %s3275_s12  ;;  %2152 = vrot.lane.b32.xlu2 %v3872_v36, %s3282_s23  ;;  %v1000_v5 = vpop.permute.xlu0 %999 }
 0x1e1   : > { %v807_v10 = vpop.permute.xlu1 %806  ;;  %v1193_v12 = vpop.permute.xlu2 %1192 }
 0x1e2   : > { %893 = vst.msk [vmem:[#allocation3 + $0x50] sm:$0xff] %vm882_vm4, %v807_v10  ;;  %v4127_v10 = vld [vmem:[#allocation2 + $0x139] sm:$0xff] }
 0x1e3   : > { %1086 = vst.msk [vmem:[#allocation3 + $0x50] sm:$0xff] %vm1075_vm5, %v1000_v5 }
 0x1e4   : > { %1279 = vst.msk [vmem:[#allocation3 + $0x50] sm:$0xff] %vm1268_vm6, %v1193_v12 }
 0x1e5   : > { %834 = vrot.lane.b32.xlu0 %v4081_v13, %s3275_s12  ;;  %v2426_v24 = vpop.f32.mrf.mxu1 }
 0x1e6   : > { %v2427_v27 = vadd.f32 %v4086_v17, %v2426_v24 }
 0x1e7   : > { %1025 = vrot.lane.b32.xlu1 %v4090_v20, %s3276_s17  ;;  %832 = vrot.lane.b32.xlu2 %v4092_v16, %s3275_s12  ;;  %v2151_v30 = vpop.permute.xlu0 %2150 }
 0x1e8   : > { %v2522_v32 = vmax.f32 %v2427_v27, 0.0 }
 0x1e9   : > { %v1765_v40 = vpop.permute.xlu1 %1764  ;;  %v1004_v41 = vpop.permute.xlu2 %1003 }
 0x1ea   : > { %1855 = vst.msk [vmem:[#allocation3 + $0x30] sm:$0xff] %vm1848_vm10, %v1765_v40  ;;  %3031 = vmatmul.msk.f32.vlgmr.msra.gmra.mxu2 %vm299_vm1, %v2522_v32 }
 0x1eb   : > { %2048 = vst.msk [vmem:[#allocation3 + $0x30] sm:$0xff] %vm2041_vm11, %v1958_v55 }
 0x1ec   : > { %2241 = vst.msk [vmem:[#allocation3 + $0x30] sm:$0xff] %vm2234_vm12, %v2151_v30 }
 0x1ed   : > { %1029 = vrot.lane.b32.xlu0 %v940_v0, %s3276_s17 }
 0x1ef   : > { %1214 = vrot.lane.b32.xlu1 %v4015_v33, %s3278_s15  ;;  %1027 = vrot.lane.b32.xlu2 %v4109_v57, %s3276_s17  ;;  %v811_v47 = vpop.permute.xlu0 %810 }
 0x1f0   : > { %895 = vst.msk [vmem:[#allocation3 + $0x60] sm:$0xff] %vm882_vm4, %v811_v47 }
 0x1f1   : > { %1088 = vst.msk [vmem:[#allocation3 + $0x60] sm:$0xff] %vm1075_vm5, %v1004_v41  ;;  %v1002_v52 = vpop.permute.xlu1 %1001  ;;  %v815_v60 = vpop.permute.xlu2 %814 }
 0x1f2   : > { %1087 = vst.msk [vmem:[#allocation3 + $0x58] sm:$0xff] %vm1075_vm5, %v1002_v52 }
 0x1f3   : > { %897 = vst.msk [vmem:[#allocation3 + $0x70] sm:$0xff] %vm882_vm4, %v815_v60  ;;  %v2273_v55 = vld [vmem:[#allocation3 + $0x30] sm:$0xff] }
 0x1f4   : > { %3004 = vmatmul.msk.f32.gmra.mxu1 %vm2308_vm13, %v2273_v55 }
 0x1f5   : > { %1381 = vrot.lane.b32.xlu0 %v3827_v23, %s3277_s19 }
 0x1f7   : > { %836 = vrot.lane.b32.xlu1 %v747_v61, %s3275_s12  ;;  %1768 = vrot.lane.b32.xlu2 %v3814_v15, %s3280_s9  ;;  %v1006_v62 = vpop.permute.xlu0 %1005 }
 0x1f9   : > { %v1191_v2 = vpop.permute.xlu1 %1190  ;;  %v1010_v5 = vpop.permute.xlu2 %1009 }
 0x1fa   : > { %1278 = vst.msk [vmem:[#allocation3 + $0x48] sm:$0xff] %vm1268_vm6, %v1191_v2 }
 0x1fd   : > { %1961 = vrot.lane.b32.xlu0 %v3861_v34, %s3281_s21 }
 0x1ff   : > { %1574 = vrot.lane.b32.xlu1 %v3823_v21, %s3279_s20  ;;  %838 = vrot.lane.b32.xlu2 %v4127_v10, %s3275_s12  ;;  %v1195_v23 = vpop.permute.xlu0 %1194  ;;  %v4143_v21 = vld [vmem:[#allocation2 + $0x13a] sm:$0xff] }
 0x200   : > { %1280 = vst.msk [vmem:[#allocation3 + $0x58] sm:$0xff] %vm1268_vm6, %v1195_v23  ;;  %v2429_v15 = vpop.f32.mrf.mxu1 }
 0x201   : > { %v2430_v12 = vadd.f32 %v4086_v17, %v2429_v15  ;;  %v813_v24 = vpop.permute.xlu1 %812  ;;  %v1199_v27 = vpop.permute.xlu2 %1198 }
 0x202   : > { %896 = vst.msk [vmem:[#allocation3 + $0x68] sm:$0xff] %vm882_vm4, %v813_v24 }
 0x203   : > { %v2523_v30 = vmax.f32 %v2430_v12, 0.0  ;;  %1089 = vst.msk [vmem:[#allocation3 + $0x68] sm:$0xff] %vm1075_vm5, %v1006_v62 }
 0x204   : > { %1282 = vst.msk [vmem:[#allocation3 + $0x68] sm:$0xff] %vm1268_vm6, %v1199_v27  ;;  %v375_v27 = vld [vmem:[%s3416_s16 + $0xf0] sm:$0xff] }
 0x205   : > { %1576 = vrot.lane.b32.xlu0 %v3872_v36, %s3279_s20  ;;  %3032 = vmatmul.msk.f32.gmra.mxu2 %vm299_vm1, %v2523_v30 }
 0x206   : > { %2995 = vmatmul.msk.f32.gmra.mxu3 %vm383_vm0, %v375_v27  ;;  %v4307_v27 = vld [vmem:[#allocation2 + $0x152] sm:$0xff] }
 0x207   : > { %1031 = vrot.lane.b32.xlu1 %v4143_v21, %s3276_s17  ;;  %1383 = vrot.lane.b32.xlu2 %v3874_v37, %s3277_s19  ;;  %v817_v32 = vpop.permute.xlu0 %816 }
 0x208   : > { %898 = vst.msk [vmem:[#allocation3 + $0x78] sm:$0xff] %vm882_vm4, %v817_v32 }
 0x209   : > { %1091 = vst.msk [vmem:[#allocation3 + $0x78] sm:$0xff] %vm1075_vm5, %v1010_v5  ;;  %v1197_v40 = vpop.permute.xlu1 %1196  ;;  %v821_v41 = vpop.permute.xlu2 %820 }
 0x20a   : > { %1281 = vst.msk [vmem:[#allocation3 + $0x60] sm:$0xff] %vm1268_vm6, %v1197_v40 }
 0x20b   : > { %900 = vst.msk [vmem:[#allocation3 + $0x88] sm:$0xff] %vm882_vm4, %v821_v41 }
 0x20d   : > { %2156 = vrot.lane.b32.xlu0 %v3886_v42, %s3282_s23 }
 0x20f   : > { %2154 = vrot.lane.b32.xlu1 %v3907_v46, %s3282_s23  ;;  %1963 = vrot.lane.b32.xlu2 %v3903_v45, %s3281_s21  ;;  %v1201_v36 = vpop.permute.xlu0 %1200 }
 0x211   : > { %v1008_v37 = vpop.permute.xlu1 %1007  ;;  %v1205_v0 = vpop.permute.xlu2 %1204 }
 0x212   : > { %1090 = vst.msk [vmem:[#allocation3 + $0x70] sm:$0xff] %vm1075_vm5, %v1008_v37 }
 0x213   : > { %1283 = vst.msk [vmem:[#allocation3 + $0x70] sm:$0xff] %vm1268_vm6, %v1201_v36 }
 0x215   : > { %1772 = vrot.lane.b32.xlu0 %v3843_v28, %s3280_s9 }
 0x217   : > { %1770 = vrot.lane.b32.xlu1 %v3818_v19, %s3280_s9  ;;  %1578 = vrot.lane.b32.xlu2 %v3907_v46, %s3279_s20  ;;  %v1012_v47 = vpop.permute.xlu0 %1011 }
 0x219   : > { %v819_v52 = vpop.permute.xlu1 %818  ;;  %v1016_v60 = vpop.permute.xlu2 %1015 }
 0x21a   : > { %899 = vst.msk [vmem:[#allocation3 + $0x80] sm:$0xff] %vm882_vm4, %v819_v52 }
 0x21b   : > { %1092 = vst.msk [vmem:[#allocation3 + $0x80] sm:$0xff] %vm1075_vm5, %v1012_v47 }
 0x21c   : > { %1285 = vst.msk [vmem:[#allocation3 + $0x80] sm:$0xff] %vm1268_vm6, %v1205_v0 }
 0x21d   : > { %1387 = vrot.lane.b32.xlu0 %v3903_v45, %s3277_s19 }
 0x21f   : > { %1385 = vrot.lane.b32.xlu1 %v3861_v34, %s3277_s19  ;;  %2158 = vrot.lane.b32.xlu2 %v3941_v59, %s3282_s23  ;;  %v823_v19 = vpop.permute.xlu0 %822 }
 0x220   : > { %901 = vst.msk [vmem:[#allocation3 + $0x90] sm:$0xff] %vm882_vm4, %v823_v19 }
 0x221   : > { %1094 = vst.msk [vmem:[#allocation3 + $0x90] sm:$0xff] %vm1075_vm5, %v1016_v60  ;;  %v1014_v28 = vpop.permute.xlu1 %1013  ;;  %v827_v46 = vpop.permute.xlu2 %826 }
 0x222   : > { %1093 = vst.msk [vmem:[#allocation3 + $0x88] sm:$0xff] %vm1075_vm5, %v1014_v28 }
 0x223   : > { %903 = vst.msk [vmem:[#allocation3 + $0xa0] sm:$0xff] %vm882_vm4, %v827_v46 }
 0x225   : > { %1967 = vrot.lane.b32.xlu0 %v3914_v50, %s3281_s21 }
 0x227   : > { %1965 = vrot.lane.b32.xlu1 %v3918_v51, %s3281_s21  ;;  %1774 = vrot.lane.b32.xlu2 %v3856_v31, %s3280_s9  ;;  %v1018_v34 = vpop.permute.xlu0 %1017  ;;  %v2432_v45 = vpop.f32.mrf.mxu1 }
 0x228   : > { %v2433_v55 = vadd.f32 %v4086_v17, %v2432_v45 }
 0x229   : > { %v1203_v61 = vpop.permute.xlu1 %1202  ;;  %v1022_v62 = vpop.permute.xlu2 %1021 }
 0x22a   : > { %v2524_v2 = vmax.f32 %v2433_v55, 0.0  ;;  %1284 = vst.msk [vmem:[#allocation3 + $0x78] sm:$0xff] %vm1268_vm6, %v1203_v61 }
 0x22c   : > { %3033 = vmatmul.msk.f32.gmra.mxu2 %vm299_vm1, %v2524_v2 }
 0x22d   : > { %1582 = vrot.lane.b32.xlu0 %v3941_v59, %s3279_s20 }
 0x22f   : > { %1580 = vrot.lane.b32.xlu1 %v3886_v42, %s3279_s20  ;;  %1389 = vrot.lane.b32.xlu2 %v3918_v51, %s3277_s19  ;;  %v1207_v31 = vpop.permute.xlu0 %1206 }
 0x230   : > { %1286 = vst.msk [vmem:[#allocation3 + $0x88] sm:$0xff] %vm1268_vm6, %v1207_v31  ;;  %v3139_v31 = vld [vmem:[%s3416_s16] sm:$0xff] }
 0x231   : > { %v825_v5 = vpop.permute.xlu1 %824  ;;  %v1211_v23 = vpop.permute.xlu2 %1210 }
 0x232   : > { %902 = vst.msk [vmem:[#allocation3 + $0x98] sm:$0xff] %vm882_vm4, %v825_v5  ;;  %v2435_v15 = vpop.f32.mrf.mxu1 }
 0x233   : > { %1095 = vst.msk [vmem:[#allocation3 + $0x98] sm:$0xff] %vm1075_vm5, %v1018_v34  ;;  %v2436_v12 = vadd.f32 %v4086_v17, %v2435_v15 }
 0x234   : > { %1288 = vst.msk [vmem:[#allocation3 + $0x98] sm:$0xff] %vm1268_vm6, %v1211_v23 }
 0x235   : > { %v2525_v59 = vmax.f32 %v2436_v12, 0.0  ;;  %2162 = vrot.lane.b32.xlu0 %v3949_v63, %s3282_s23 }
 0x237   : > { %3034 = vmatmul.msk.f32.gmra.mxu2 %vm299_vm1, %v2525_v59  ;;  %2160 = vrot.lane.b32.xlu1 %v3937_v58, %s3282_s23  ;;  %v1767_v42 = vpop.permute.xlu0 %1766 }
 0x238   : > { %1969 = vrot.lane.b32.xlu2 %v3951_v1, %s3281_s21  ;;  %1856 = vst.msk [vmem:[#allocation3 + $0x38] sm:$0xff] %vm1848_vm10, %v1767_v42 }
 0x239   : > { %v1960_v51 = vpop.permute.xlu1 %1959  ;;  %v2153_v24 = vpop.permute.xlu2 %2152 }
 0x23a   : > { %2049 = vst.msk [vmem:[#allocation3 + $0x38] sm:$0xff] %vm2041_vm11, %v1960_v51 }
 0x23b   : > { %2242 = vst.msk [vmem:[#allocation3 + $0x38] sm:$0xff] %vm2234_vm12, %v2153_v24 }
 0x23d   : > { %1778 = vrot.lane.b32.xlu0 %v3898_v22, %s3280_s9 }
 0x23f   : > { %1776 = vrot.lane.b32.xlu1 %v3866_v35, %s3280_s9  ;;  %v829_v30 = vpop.permute.xlu0 %828  ;;  %v376_v35 = vld [vmem:[%s3416_s16 + $0xf8] sm:$0xff] }
 0x240   : > { %1584 = vrot.lane.b32.xlu2 %v3937_v58, %s3279_s20  ;;  %904 = vst.msk [vmem:[#allocation3 + $0xa8] sm:$0xff] %vm882_vm4, %v829_v30  ;;  %2996 = vmatmul.msk.f32.gmra.mxu3 %vm383_vm0, %v376_v35 }
 0x241   : > { %1097 = vst.msk [vmem:[#allocation3 + $0xa8] sm:$0xff] %vm1075_vm5, %v1022_v62  ;;  %v1209_v32 = vpop.permute.xlu1 %1208  ;;  %v833_v40 = vpop.permute.xlu2 %832  ;;  %v4274_v62 = vld [vmem:[%s4867_s6] ss:$0 sm:$0xff] }
 0x242   : > { %1287 = vst.msk [vmem:[#allocation3 + $0x90] sm:$0xff] %vm1268_vm6, %v1209_v32  ;;  %v2274_v41 = vld [vmem:[#allocation3 + $0x38] sm:$0xff] }
 0x243   : > { %906 = vst.msk [vmem:[#allocation3 + $0xb8] sm:$0xff] %vm882_vm4, %v833_v40  ;;  %3005 = vmatmul.msk.f32.gmra.mxu1 %vm2308_vm13, %v2274_v41  ;;  %v4312_v40 = vld [vmem:[#allocation2 + $0x141] sm:$0xff] }
 0x245   : > { %1393 = vrot.lane.b32.xlu0 %v3951_v1, %s3277_s19 }
 0x247   : > { %1391 = vrot.lane.b32.xlu1 %v3914_v50, %s3277_s19  ;;  %v1213_v22 = vpop.permute.xlu0 %1212 }
 0x248   : > { %2164 = vrot.lane.b32.xlu2 %v3965_v7, %s3282_s23  ;;  %v2438_v58 = vpop.f32.mrf.mxu1 }
 0x249   : > { %v2439_v36 = vadd.f32 %v4086_v17, %v2438_v58  ;;  %v1020_v37 = vpop.permute.xlu1 %1019  ;;  %v1028_v0 = vpop.permute.xlu2 %1027 }
 0x24a   : > { %1096 = vst.msk [vmem:[#allocation3 + $0xa0] sm:$0xff] %vm1075_vm5, %v1020_v37 }
 0x24b   : > { %v2526_v47 = vmax.f32 %v2439_v36, 0.0  ;;  %1289 = vst.msk [vmem:[#allocation3 + $0xa0] sm:$0xff] %vm1268_vm6, %v1213_v22 }
 0x24d   : > { %1973 = vrot.lane.b32.xlu0 %v3961_v6, %s3281_s21  ;;  %3035 = vmatmul.msk.f32.gmra.mxu2 %vm299_vm1, %v2526_v47 }
 0x24f   : > { %1971 = vrot.lane.b32.xlu1 %v3967_v8, %s3281_s21  ;;  %v1024_v50 = vpop.permute.xlu0 %1023 }
 0x250   : > { %1780 = vrot.lane.b32.xlu2 %v3926_v53, %s3280_s9 }
 0x251   : > { %v831_v1 = vpop.permute.xlu1 %830  ;;  %v1769_v52 = vpop.permute.xlu2 %1768 }
 0x252   : > { %905 = vst.msk [vmem:[#allocation3 + $0xb0] sm:$0xff] %vm882_vm4, %v831_v1 }
 0x253   : > { %1098 = vst.msk [vmem:[#allocation3 + $0xb0] sm:$0xff] %vm1075_vm5, %v1024_v50 }
 0x255   : > { %1588 = vrot.lane.b32.xlu0 %v3965_v7, %s3279_s20 }
 0x257   : > { %1586 = vrot.lane.b32.xlu1 %v3949_v63, %s3279_s20  ;;  %v835_v60 = vpop.permute.xlu0 %834  ;;  %v2441_v19 = vpop.f32.mrf.mxu1 }
 0x258   : > { %1395 = vrot.lane.b32.xlu2 %v3967_v8, %s3277_s19  ;;  %907 = vst.msk [vmem:[#allocation3 + $0xc0] sm:$0xff] %vm882_vm4, %v835_v60  ;;  %v2442_v53 = vadd.f32 %v4086_v17, %v2441_v19 }
 0x259   : > { %1100 = vst.msk [vmem:[#allocation3 + $0xc0] sm:$0xff] %vm1075_vm5, %v1028_v0  ;;  %v1026_v28 = vpop.permute.xlu1 %1025  ;;  %v839_v46 = vpop.permute.xlu2 %838  ;;  %v3140_v0 = vld [vmem:[%s3416_s16 + $0x8] sm:$0xff] }
 0x25a   : > { %v2527_v34 = vmax.f32 %v2442_v53, 0.0  ;;  %1099 = vst.msk [vmem:[#allocation3 + $0xb8] sm:$0xff] %vm1075_vm5, %v1026_v28  ;;  %v4341_v53 = vld [vmem:[#allocation2 + $0x159] sm:$0xff] }
 0x25b   : > { %909 = vst.msk [vmem:[#allocation3 + $0xd0] sm:$0xff] %vm882_vm4, %v839_v46 }
 0x25c   : > { %3036 = vmatmul.msk.f32.gmra.mxu2 %vm299_vm1, %v2527_v34 }
 0x25d   : > { %2168 = vrot.lane.b32.xlu0 %v3985_v14, %s3282_s23 }
 0x25f   : > { %2166 = vrot.lane.b32.xlu1 %v4006_v26, %s3282_s23  ;;  %v1030_v63 = vpop.permute.xlu0 %1029 }
 0x260   : > { %1975 = vrot.lane.b32.xlu2 %v4002_v25, %s3281_s21 }
 0x261   : > { %v1215_v7 = vpop.permute.xlu1 %1214  ;;  %v1384_v8 = vpop.permute.xlu2 %1383 }
 0x262   : > { %1290 = vst.msk [vmem:[#allocation3 + $0xa8] sm:$0xff] %vm1268_vm6, %v1215_v7 }
 0x263   : > { %1471 = vst.msk [vmem:[#allocation3 + $0x48] sm:$0xff] %vm1461_vm7, %v1384_v8 }
 0x265   : > { %1590 = vrot.lane.b32.xlu0 %v4006_v26, %s3279_s20 }
 0x267   : > { %1782 = vrot.lane.b32.xlu1 %v3928_v54, %s3280_s9  ;;  %v1382_v45 = vpop.permute.xlu0 %1381 }
 0x268   : > { %1220 = vrot.lane.b32.xlu2 %v4101_v39, %s3278_s15  ;;  %1470 = vst.msk [vmem:[#allocation3 + $0x40] sm:$0xff] %vm1461_vm7, %v1382_v45 }
 0x269   : > { %v837_v55 = vpop.permute.xlu1 %836  ;;  %v1964_v61 = vpop.permute.xlu2 %1963 }
 0x26a   : > { %908 = vst.msk [vmem:[#allocation3 + $0xc8] sm:$0xff] %vm882_vm4, %v837_v55  ;;  %v2099_v55 = vld [vmem:[#allocation2 + $0x15a] sm:$0xff] }
 0x26b   : > { %1101 = vst.msk [vmem:[#allocation3 + $0xc8] sm:$0xff] %vm1075_vm5, %v1030_v63  ;;  %v1713_v63 = vld [vmem:[#allocation2 + $0x158] sm:$0xff] }
 0x26d   : > { %1606 = vrot.lane.b32.xlu0 %v4143_v21, %s3279_s20  ;;  %v2675_v54 = vpop.f32.mrf.mxu2 }
 0x26e   : > { %v2676_v26 = vadd.f32 %v4274_v62, %v2675_v54 }
 0x26f   : > { %1397 = vrot.lane.b32.xlu1 %v3961_v6, %s3277_s19  ;;  %v1962_v2 = vpop.permute.xlu0 %1961 }
 0x270   : > { %v2771_v5 = vadd.f32 %v3139_v31, %v2676_v26  ;;  %1784 = vrot.lane.b32.xlu2 %v3971_v9, %s3280_s9  ;;  %v1712_v9 = vld [vmem:[#allocation2 + $0x150] sm:$0xff]  ;;  %v4367_v26 = vld [vmem:[#allocation2 + $0x168] sm:$0xff] }
 0x271   : > { %v1575_v23 = vpop.permute.xlu1 %1574  ;;  %v1579_v15 = vpop.permute.xlu2 %1578 }
 0x272   : > { %v2803_v12 = vmax.f32 %v2771_v5, 0.0  ;;  %1663 = vst.msk [vmem:[#allocation3 + $0x40] sm:$0xff] %vm1654_vm8, %v1575_v23  ;;  %v2444_v59 = vpop.f32.mrf.mxu1 }
 0x273   : > { %1857 = vst.msk [vmem:[#allocation3 + $0x40] sm:$0xff] %vm1848_vm10, %v1769_v52  ;;  %v2445_v21 = vadd.f32 %v4086_v17, %v2444_v59 }
 0x274   : > { %2835 = vst.msk [vmem:[%s4290_s18] sm:$0xff] %vm383_vm0, %v2803_v12 }
 0x275   : > { %2050 = vst.msk [vmem:[#allocation3 + $0x40] sm:$0xff] %vm2041_vm11, %v1962_v2  ;;  %v2528_v6 = vmax.f32 %v2445_v21, 0.0  ;;  %2170 = vrot.lane.b32.xlu0 %v4059_v56, %s3282_s23  ;;  %v4381_v21 = vld [vmem:[#allocation2 + $0x16a] sm:$0xff] }
 0x277   : > { %3037 = vmatmul.msk.f32.gmra.mxu2 %vm299_vm1, %v2528_v6  ;;  %1413 = vrot.lane.b32.xlu1 %v4127_v10, %s3277_s19  ;;  %v1577_v42 = vpop.permute.xlu0 %1576  ;;  %v4390_v6 = vld [vmem:[#allocation2 + $0x169] sm:$0xff] }
 0x278   : > { %1800 = vrot.lane.b32.xlu2 %v1712_v9, %s3280_s9  ;;  %1664 = vst.msk [vmem:[#allocation3 + $0x48] sm:$0xff] %vm1654_vm8, %v1577_v42 }
 0x279   : > { %v1032_v51 = vpop.permute.xlu1 %1031  ;;  %v2159_v24 = vpop.permute.xlu2 %2158 }
 0x27a   : > { %1102 = vst.msk [vmem:[#allocation3 + $0xd0] sm:$0xff] %vm1075_vm5, %v1032_v51 }
 0x27d   : > { %1399 = vrot.lane.b32.xlu0 %v4002_v25, %s3277_s19  ;;  %v1905_v25 = vld [vmem:[#allocation2 + $0x151] sm:$0xff] }
 0x27f   : > { %1977 = vrot.lane.b32.xlu1 %v4019_v38, %s3281_s21  ;;  %v2157_v30 = vpop.permute.xlu0 %2156 }
 0x280   : > { %2186 = vrot.lane.b32.xlu2 %v4307_v27, %s3282_s23 }
 0x281   : > { %v2155_v10 = vpop.permute.xlu1 %2154  ;;  %v1775_v32 = vpop.permute.xlu2 %1774 }
 0x282   : > { %2243 = vst.msk [vmem:[#allocation3 + $0x40] sm:$0xff] %vm2234_vm12, %v2155_v10  ;;  %v3142_v10 = vld [vmem:[%s3416_s16 + $0x18] sm:$0xff] }
 0x285   : > { %1415 = vrot.lane.b32.xlu0 %v4312_v40, %s3277_s19 }
 0x287   : > { %1993 = vrot.lane.b32.xlu1 %v1905_v25, %s3281_s21  ;;  %v1773_v41 = vpop.permute.xlu0 %1772 }
 0x288   : > { %1592 = vrot.lane.b32.xlu2 %v3985_v14, %s3279_s20  ;;  %v2678_v35 = vpop.f32.mrf.mxu2  ;;  %v4332_v14 = vld [vmem:[#allocation2 + $0x142] sm:$0xff] }
 0x289   : > { %v2679_v22 = vadd.f32 %v4274_v62, %v2678_v35  ;;  %v1771_v58 = vpop.permute.xlu1 %1770  ;;  %v1390_v36 = vpop.permute.xlu2 %1389  ;;  %v2275_v37 = vld [vmem:[#allocation3 + $0x40] sm:$0xff] }
 0x28a   : > { %1858 = vst.msk [vmem:[#allocation3 + $0x48] sm:$0xff] %vm1848_vm10, %v1771_v58  ;;  %3006 = vmatmul.msk.f32.gmra.mxu1 %vm2308_vm13, %v2275_v37 }
 0x28b   : > { %v2772_v47 = vadd.f32 %v3140_v0, %v2679_v22  ;;  %2051 = vst.msk [vmem:[#allocation3 + $0x48] sm:$0xff] %vm2041_vm11, %v1964_v61  ;;  %v3143_v0 = vld [vmem:[%s4863_s2] ss:$0 sm:$0xff] }
 0x28c   : > { %2244 = vst.msk [vmem:[#allocation3 + $0x48] sm:$0xff] %vm2234_vm12, %v2157_v30 }
 0x28d   : > { %v2804_v50 = vmax.f32 %v2772_v47, 0.0  ;;  %1474 = vst.msk [vmem:[#allocation3 + $0x60] sm:$0xff] %vm1461_vm7, %v1390_v36  ;;  %1979 = vrot.lane.b32.xlu0 %v4036_v43, %s3281_s21 }
 0x28f   : > { %2836 = vst.msk [vmem:[%s4290_s18 + $0x8] sm:$0xff] %vm383_vm0, %v2804_v50  ;;  %1222 = vrot.lane.b32.xlu1 %v3847_v29, %s3278_s15  ;;  %v1388_v1 = vpop.permute.xlu0 %1387 }
 0x290   : > { %1608 = vrot.lane.b32.xlu2 %v4332_v14, %s3279_s20  ;;  %1473 = vst.msk [vmem:[#allocation3 + $0x58] sm:$0xff] %vm1461_vm7, %v1388_v1 }
 0x291   : > { %v1386_v52 = vpop.permute.xlu1 %1385 }
 0x292   : > { %1472 = vst.msk [vmem:[#allocation3 + $0x50] sm:$0xff] %vm1461_vm7, %v1386_v52  ;;  %v1970_v60 = vpop.permute.xlu2 %1969 }
 0x293   : > { %1665 = vst.msk [vmem:[#allocation3 + $0x50] sm:$0xff] %vm1654_vm8, %v1579_v15  ;;  %v2276_v19 = vld [vmem:[#allocation3 + $0x48] sm:$0xff]  ;;  %v3141_v15 = vld [vmem:[%s3416_s16 + $0x10] sm:$0xff] }
 0x294   : > { %1859 = vst.msk [vmem:[#allocation3 + $0x50] sm:$0xff] %vm1848_vm10, %v1773_v41  ;;  %3007 = vmatmul.msk.f32.gmra.mxu1 %vm2308_vm13, %v2276_v19 }
 0x295   : > { %1995 = vrot.lane.b32.xlu0 %v4341_v53, %s3281_s21 }
 0x297   : > { %1786 = vrot.lane.b32.xlu1 %v3980_v11, %s3280_s9  ;;  %v1968_v28 = vpop.permute.xlu0 %1967 }
 0x298   : > { %2172 = vrot.lane.b32.xlu2 %v4039_v44, %s3282_s23 }
 0x299   : > { %v1966_v46 = vpop.permute.xlu1 %1965 }
 0x29a   : > { %2052 = vst.msk [vmem:[#allocation3 + $0x50] sm:$0xff] %vm2041_vm11, %v1966_v46  ;;  %v1585_v34 = vpop.permute.xlu2 %1584 }
 0x29b   : > { %2245 = vst.msk [vmem:[#allocation3 + $0x50] sm:$0xff] %vm2234_vm12, %v2159_v24 }
 0x29d   : > { %1224 = vrot.lane.b32.xlu0 %v1712_v9, %s3278_s15 }
 0x29f   : > { %1802 = vrot.lane.b32.xlu1 %v1713_v63, %s3280_s9  ;;  %v1583_v7 = vpop.permute.xlu0 %1582 }
 0x2a0   : > { %1401 = vrot.lane.b32.xlu2 %v4019_v38, %s3277_s19  ;;  %1667 = vst.msk [vmem:[#allocation3 + $0x60] sm:$0xff] %vm1654_vm8, %v1583_v7 }
 0x2a1   : > { %v1581_v11 = vpop.permute.xlu1 %1580 }
 0x2a2   : > { %1666 = vst.msk [vmem:[#allocation3 + $0x58] sm:$0xff] %vm1654_vm8, %v1581_v11  ;;  %v2165_v8 = vpop.permute.xlu2 %2164  ;;  %v2277_v45 = vld [vmem:[#allocation3 + $0x50] sm:$0xff] }
 0x2a3   : > { %1860 = vst.msk [vmem:[#allocation3 + $0x58] sm:$0xff] %vm1848_vm10, %v1775_v32  ;;  %3008 = vmatmul.msk.f32.gmra.mxu1 %vm2308_vm13, %v2277_v45 }
 0x2a4   : > { %2053 = vst.msk [vmem:[#allocation3 + $0x58] sm:$0xff] %vm2041_vm11, %v1968_v28  ;;  %v4434_v28 = vld [vmem:[#allocation2 + $0x170] sm:$0xff] }
 0x2a5   : > { %1788 = vrot.lane.b32.xlu0 %v3988_v18, %s3280_s9 }
 0x2a7   : > { %2188 = vrot.lane.b32.xlu1 %v2099_v55, %s3282_s23  ;;  %v2163_v38 = vpop.permute.xlu0 %2162 }
 0x2a8   : > { %1417 = vrot.lane.b32.xlu2 %v1905_v25, %s3277_s19 }
 0x2a9   : > { %v2161_v61 = vpop.permute.xlu1 %2160 }
 0x2aa   : > { %2246 = vst.msk [vmem:[#allocation3 + $0x58] sm:$0xff] %vm2234_vm12, %v2161_v61  ;;  %v4365_v54 = vpop.permute.xlu2 %1780 }
 0x2ad   : > { %1804 = vrot.lane.b32.xlu0 %v4367_v26, %s3280_s9 }
 0x2af   : > { %1594 = vrot.lane.b32.xlu1 %v4059_v56, %s3279_s20  ;;  %v1779_v18 = vpop.permute.xlu0 %1778  ;;  %v2681_v2 = vpop.f32.mrf.mxu2 }
 0x2b0   : > { %1981 = vrot.lane.b32.xlu2 %v4072_v4, %s3281_s21  ;;  %v2682_v31 = vadd.f32 %v4274_v62, %v2681_v2 }
 0x2b1   : > { %v1777_v5 = vpop.permute.xlu1 %1776  ;;  %v2278_v23 = vld [vmem:[#allocation3 + $0x58] sm:$0xff] }
 0x2b2   : > { %v2773_v12 = vadd.f32 %v3141_v15, %v2682_v31  ;;  %1861 = vst.msk [vmem:[#allocation3 + $0x60] sm:$0xff] %vm1848_vm10, %v1777_v5  ;;  %v1396_v59 = vpop.permute.xlu2 %1395  ;;  %3009 = vmatmul.msk.f32.gmra.mxu1 %vm2308_vm13, %v2278_v23  ;;  %v3145_v23 = vld [vmem:[%s3416_s16 + $0x28] sm:$0xff] }
 0x2b3   : > { %2054 = vst.msk [vmem:[#allocation3 + $0x60] sm:$0xff] %vm2041_vm11, %v1970_v60 }
 0x2b4   : > { %v2805_v56 = vmax.f32 %v2773_v12, 0.0  ;;  %2247 = vst.msk [vmem:[#allocation3 + $0x60] sm:$0xff] %vm2234_vm12, %v2163_v38 }
 0x2b5   : > { %1477 = vst.msk [vmem:[#allocation3 + $0x78] sm:$0xff] %vm1461_vm7, %v1396_v59  ;;  %2190 = vrot.lane.b32.xlu0 %v4381_v21, %s3282_s23 }
 0x2b6   : > { %2837 = vst.msk [vmem:[%s4290_s18 + $0x10] sm:$0xff] %vm383_vm0, %v2805_v56 }
 0x2b7   : > { %1610 = vrot.lane.b32.xlu1 %v4307_v27, %s3279_s20  ;;  %v1394_v9 = vpop.permute.xlu0 %1393 }
 0x2b8   : > { %1997 = vrot.lane.b32.xlu2 %v4390_v6, %s3281_s21  ;;  %1476 = vst.msk [vmem:[#allocation3 + $0x70] sm:$0xff] %vm1461_vm7, %v1394_v9 }
 0x2b9   : > { %v1392_v42 = vpop.permute.xlu1 %1391 }
 0x2ba   : > { %1475 = vst.msk [vmem:[#allocation3 + $0x68] sm:$0xff] %vm1461_vm7, %v1392_v42  ;;  %v4396_v51 = vpop.permute.xlu2 %1975  ;;  %v2684_v24 = vpop.f32.mrf.mxu2 }
 0x2bb   : > { %1668 = vst.msk [vmem:[#allocation3 + $0x68] sm:$0xff] %vm1654_vm8, %v1585_v34  ;;  %v2685_v30 = vadd.f32 %v4274_v62, %v2684_v24  ;;  %v2279_v27 = vld [vmem:[#allocation3 + $0x60] sm:$0xff] }
 0x2bc   : > { %1862 = vst.msk [vmem:[#allocation3 + $0x68] sm:$0xff] %vm1848_vm10, %v1779_v18  ;;  %3010 = vmatmul.msk.f32.gmra.mxu1 %vm2308_vm13, %v2279_v27 }
 0x2bd   : > { %v2774_v32 = vadd.f32 %v3142_v10, %v2685_v30  ;;  %1596 = vrot.lane.b32.xlu0 %v4039_v44, %s3279_s20  ;;  %v587_v44 = vpop.f32.mrf.mxu3 }
 0x2be   : > { %v588_v47 = vadd.f32 %v3143_v0, %v587_v44 }
 0x2bf   : > { %v2806_v25 = vmax.f32 %v2774_v32, 0.0  ;;  %2174 = vrot.lane.b32.xlu1 %v4068_v3, %s3282_s23  ;;  %v1974_v41 = vpop.permute.xlu0 %1973 }
 0x2c0   : > { %1226 = vrot.lane.b32.xlu2 %v1713_v63, %s3278_s15  ;;  %v2447_v35 = vpop.f32.mrf.mxu1  ;;  %v623_v50 = vmax.f32 %v588_v47, 0.0 }
 0x2c1   : > { %2838 = vst.msk [vmem:[%s4290_s18 + $0x18] sm:$0xff] %vm383_vm0, %v2806_v25  ;;  %v2448_v22 = vadd.f32 %v4086_v17, %v2447_v35  ;;  %v1972_v58 = vpop.permute.xlu1 %1971 }
 0x2c2   : > { %2055 = vst.msk [vmem:[#allocation3 + $0x68] sm:$0xff] %vm2041_vm11, %v1972_v58  ;;  %v1221_v36 = vpop.permute.xlu2 %1220 }
 0x2c3   : > { %v2529_v37 = vmax.f32 %v2448_v22, 0.0  ;;  %2248 = vst.msk [vmem:[#allocation3 + $0x68] sm:$0xff] %vm2234_vm12, %v2165_v8  ;;  %v3144_v8 = vld [vmem:[%s3416_s16 + $0x20] sm:$0xff] }
 0x2c4   : > { %1293 = vst.msk [vmem:[#allocation3 + $0xc0] sm:$0xff] %vm1268_vm6, %v1221_v36 }
 0x2c5   : > { %1612 = vrot.lane.b32.xlu0 %v2099_v55, %s3279_s20  ;;  %3038 = vmatmul.msk.f32.gmra.mxu2 %vm299_vm1, %v2529_v37  ;;  %656 = vst.msk [vmem:[#allocation2 + $0x181] sm:$0xff] %vm299_vm1, %v623_v50  ;;  %v1515_v50 = vld [vmem:[#allocation2 + $0x112] sm:$0xff] }
 0x2c7   : > { %1403 = vrot.lane.b32.xlu1 %v4036_v43, %s3277_s19  ;;  %v1589_v1 = vpop.permute.xlu0 %1588  ;;  %v590_v43 = vpop.f32.mrf.mxu3 }
 0x2c8   : > { %1790 = vrot.lane.b32.xlu2 %v4015_v33, %s3280_s9  ;;  %1670 = vst.msk [vmem:[#allocation3 + $0x78] sm:$0xff] %vm1654_vm8, %v1589_v1  ;;  %v591_v33 = vadd.f32 %v3143_v0, %v590_v43  ;;  %v4522_v1 = vld [vmem:[#allocation2 + $0x129] sm:$0xff] }
 0x2c9   : > { %v1587_v52 = vpop.permute.xlu1 %1586 }
 0x2ca   : > { %1669 = vst.msk [vmem:[#allocation3 + $0x70] sm:$0xff] %vm1654_vm8, %v1587_v52  ;;  %v1785_v60 = vpop.permute.xlu2 %1784  ;;  %v2280_v19 = vld [vmem:[#allocation3 + $0x68] sm:$0xff]  ;;  %v624_v34 = vmax.f32 %v591_v33, 0.0 }
 0x2cb   : > { %1863 = vst.msk [vmem:[#allocation3 + $0x70] sm:$0xff] %vm1848_vm10, %v4365_v54  ;;  %3011 = vmatmul.msk.f32.gmra.mxu1 %vm2308_vm13, %v2280_v19 }
 0x2cc   : > { %2056 = vst.msk [vmem:[#allocation3 + $0x70] sm:$0xff] %vm2041_vm11, %v1974_v41  ;;  %v4477_v42 = vld [vmem:[#allocation2 + $0x181] sm:$0xff] }
 0x2cd   : > { %2176 = vrot.lane.b32.xlu0 %v4090_v20, %s3282_s23  ;;  %657 = vst.msk [vmem:[#allocation2 + $0x189] sm:$0xff] %vm299_vm1, %v624_v34  ;;  %v3146_v41 = vld [vmem:[%s3416_s16 + $0x30] sm:$0xff] }
 0x2cf   : > { %1419 = vrot.lane.b32.xlu1 %v4341_v53, %s3277_s19  ;;  %v2169_v46 = vpop.permute.xlu0 %2168  ;;  %v4448_v53 = vld [vmem:[#allocation2 + $0x172] sm:$0xff] }
 0x2d0   : > { %1806 = vrot.lane.b32.xlu2 %v4434_v28, %s3280_s9  ;;  %v2687_v63 = vpop.f32.mrf.mxu2 }
 0x2d1   : > { %v2688_v7 = vadd.f32 %v4274_v62, %v2687_v63  ;;  %v2167_v11 = vpop.permute.xlu1 %2166 }
 0x2d2   : > { %2249 = vst.msk [vmem:[#allocation3 + $0x70] sm:$0xff] %vm2234_vm12, %v2167_v11  ;;  %v1801_v20 = vpop.permute.xlu2 %1800 }
 0x2d3   : > { %v2775_v45 = vadd.f32 %v3144_v8, %v2688_v7 }
 0x2d4   : > { %v4506_v22 = vld [vmem:[#allocation2 + $0x182] sm:$0xff] }
 0x2d5   : > { %v2807_v55 = vmax.f32 %v2775_v45, 0.0  ;;  %1405 = vrot.lane.b32.xlu0 %v4072_v4, %s3277_s19  ;;  %v1908_v4 = vld [vmem:[#allocation2 + $0x171] sm:$0xff]  ;;  %v4517_v47 = vld [vmem:[#allocation2 + $0x188] sm:$0xff] }
 0x2d6   : > { %v4537_v34 = vld [vmem:[#allocation2 + $0x189] sm:$0xff] }
 0x2d7   : > { %2839 = vst.msk [vmem:[%s4290_s18 + $0x20] sm:$0xff] %vm383_vm0, %v2807_v55  ;;  %1983 = vrot.lane.b32.xlu1 %v4092_v16, %s3281_s21  ;;  %v1591_v38 = vpop.permute.xlu0 %1590 }
 0x2d8   : > { %2192 = vrot.lane.b32.xlu2 %v4448_v53, %s3282_s23 }
 0x2d9   : > { %v1783_v61 = vpop.permute.xlu1 %1782  ;;  %v2281_v54 = vld [vmem:[#allocation3 + $0x70] sm:$0xff] }
 0x2da   : > { %1864 = vst.msk [vmem:[#allocation3 + $0x78] sm:$0xff] %vm1848_vm10, %v1783_v61  ;;  %v2187_v18 = vpop.permute.xlu2 %2186  ;;  %3012 = vmatmul.msk.f32.gmra.mxu1 %vm2308_vm13, %v2281_v54 }
 0x2db   : > { %2057 = vst.msk [vmem:[#allocation3 + $0x78] sm:$0xff] %vm2041_vm11, %v4396_v51  ;;  %v4491_v51 = vld [vmem:[#allocation2 + $0x180] sm:$0xff] }
 0x2dc   : > { %2250 = vst.msk [vmem:[#allocation3 + $0x78] sm:$0xff] %vm2234_vm12, %v2169_v46  ;;  %v4531_v46 = vld [vmem:[#allocation2 + $0x18a] sm:$0xff] }
 0x2dd   : > { %1421 = vrot.lane.b32.xlu0 %v4390_v6, %s3277_s19 }
 0x2df   : > { %1999 = vrot.lane.b32.xlu1 %v1908_v4, %s3281_s21  ;;  %v1607_v16 = vpop.permute.xlu0 %1606  ;;  %v2690_v2 = vpop.f32.mrf.mxu2 }
 0x2e0   : > { %1598 = vrot.lane.b32.xlu2 %v4068_v3, %s3279_s20  ;;  %v2691_v31 = vadd.f32 %v4274_v62, %v2690_v2 }
 0x2e1   : > { %v1398_v5 = vpop.permute.xlu1 %1397 }
 0x2e2   : > { %v2776_v15 = vadd.f32 %v3145_v23, %v2691_v31  ;;  %1478 = vst.msk [vmem:[#allocation3 + $0x80] sm:$0xff] %vm1461_vm7, %v1398_v5  ;;  %v1593_v12 = vpop.permute.xlu2 %1592 }
 0x2e3   : > { %1671 = vst.msk [vmem:[#allocation3 + $0x80] sm:$0xff] %vm1654_vm8, %v1591_v38  ;;  %v2282_v59 = vld [vmem:[#allocation3 + $0x78] sm:$0xff] }
 0x2e4   : > { %v2808_v56 = vmax.f32 %v2776_v15, 0.0  ;;  %1865 = vst.msk [vmem:[#allocation3 + $0x80] sm:$0xff] %vm1848_vm10, %v1785_v60  ;;  %3013 = vmatmul.msk.f32.gmra.mxu1 %vm2308_vm13, %v2282_v59  ;;  %v1323_v38 = vld [vmem:[#allocation2 + $0x121] sm:$0xff]  ;;  %v1718_v15 = vld [vmem:[#allocation2 + $0x198] sm:$0xff] }
 0x2e5   : > { %1985 = vrot.lane.b32.xlu0 %v4081_v13, %s3281_s21 }
 0x2e6   : > { %2840 = vst.msk [vmem:[%s4290_s18 + $0x28] sm:$0xff] %vm383_vm0, %v2808_v56 }
 0x2e7   : > { %1228 = vrot.lane.b32.xlu1 %v4367_v26, %s3278_s15  ;;  %v2171_v3 = vpop.permute.xlu0 %2170 }
 0x2e8   : > { %1614 = vrot.lane.b32.xlu2 %v4381_v21, %s3279_s20 }
 0x2e9   : > { %v1414_v6 = vpop.permute.xlu1 %1413 }
 0x2ea   : > { %1486 = vst.msk [vmem:[#allocation3 + $0xc0] sm:$0xff] %vm1461_vm7, %v1414_v6  ;;  %v1609_v9 = vpop.permute.xlu2 %1608  ;;  %v1911_v6 = vld [vmem:[#allocation2 + $0x199] sm:$0xff] }
 0x2eb   : > { %1679 = vst.msk [vmem:[#allocation3 + $0xc0] sm:$0xff] %vm1654_vm8, %v1607_v16 }
 0x2ec   : > { %1873 = vst.msk [vmem:[#allocation3 + $0xc0] sm:$0xff] %vm1848_vm10, %v1801_v20 }
 0x2ed   : > { %2001 = vrot.lane.b32.xlu0 %v4477_v42, %s3281_s21 }
 0x2ef   : > { %1792 = vrot.lane.b32.xlu1 %v4048_v48, %s3280_s9  ;;  %v1400_v13 = vpop.permute.xlu0 %1399 }
 0x2f0   : > { %2178 = vrot.lane.b32.xlu2 %v4109_v57, %s3282_s23  ;;  %1479 = vst.msk [vmem:[#allocation3 + $0x88] sm:$0xff] %vm1461_vm7, %v1400_v13  ;;  %v1322_v57 = vld [vmem:[#allocation2 + $0x111] sm:$0xff]  ;;  %v4583_v13 = vld [vmem:[%s4865_s4] ss:$0 sm:$0xff] }
 0x2f1   : > { %1672 = vst.msk [vmem:[#allocation3 + $0x88] sm:$0xff] %vm1654_vm8, %v1593_v12  ;;  %v1978_v26 = vpop.permute.xlu1 %1977 }
 0x2f2   : > { %2058 = vst.msk [vmem:[#allocation3 + $0x80] sm:$0xff] %vm2041_vm11, %v1978_v26  ;;  %v2173_v21 = vpop.permute.xlu2 %2172 }
 0x2f3   : > { %2251 = vst.msk [vmem:[#allocation3 + $0x80] sm:$0xff] %vm2234_vm12, %v2171_v3  ;;  %v2104_v3 = vld [vmem:[#allocation2 + $0x19a] sm:$0xff] }
 0x2f5   : > { %1230 = vrot.lane.b32.xlu0 %v4434_v28, %s3278_s15 }
 0x2f7   : > { %1808 = vrot.lane.b32.xlu1 %v4491_v51, %s3280_s9  ;;  %v1416_v24 = vpop.permute.xlu0 %1415 }
 0x2f8   : > { %1407 = vrot.lane.b32.xlu2 %v1322_v57, %s3277_s19 }
 0x2f9   : > { %v1994_v30 = vpop.permute.xlu1 %1993 }
 0x2fa   : > { %2066 = vst.msk [vmem:[#allocation3 + $0xc0] sm:$0xff] %vm2041_vm11, %v1994_v30  ;;  %v1402_v27 = vpop.permute.xlu2 %1401  ;;  %v2693_v10 = vpop.f32.mrf.mxu2  ;;  %v2283_v32 = vld [vmem:[#allocation3 + $0x80] sm:$0xff]  ;;  %v2096_v30 = vld [vmem:[#allocation2 + $0x13a] sm:$0xff] }
 0x2fb   : > { %2259 = vst.msk [vmem:[#allocation3 + $0xc0] sm:$0xff] %vm2234_vm12, %v2187_v18  ;;  %v2694_v25 = vadd.f32 %v4274_v62, %v2693_v10  ;;  %3014 = vmatmul.msk.f32.gmra.mxu1 %vm2308_vm13, %v2283_v32 }
 0x2fc   : > { %1480 = vst.msk [vmem:[#allocation3 + $0x90] sm:$0xff] %vm1461_vm7, %v1402_v27 }
 0x2fd   : > { %v2777_v35 = vadd.f32 %v3146_v41, %v2694_v25  ;;  %1794 = vrot.lane.b32.xlu0 %v4050_v49, %s3280_s9 }
 0x2ff   : > { %v2809_v58 = vmax.f32 %v2777_v35, 0.0  ;;  %2194 = vrot.lane.b32.xlu1 %v4506_v22, %s3282_s23  ;;  %v1980_v36 = vpop.permute.xlu0 %1979 }
 0x300   : > { %1423 = vrot.lane.b32.xlu2 %v1908_v4, %s3277_s19 }
 0x301   : > { %2841 = vst.msk [vmem:[%s4290_s18 + $0x30] sm:$0xff] %vm383_vm0, %v2809_v58  ;;  %v1223_v37 = vpop.permute.xlu1 %1222 }
 0x302   : > { %1294 = vst.msk [vmem:[#allocation3 + $0xc8] sm:$0xff] %vm1268_vm6, %v1223_v37  ;;  %v1418_v44 = vpop.permute.xlu2 %1417  ;;  %v2291_v0 = vld [vmem:[#allocation3 + $0xc0] sm:$0xff] }
 0x303   : > { %1487 = vst.msk [vmem:[#allocation3 + $0xc8] sm:$0xff] %vm1461_vm7, %v1416_v24  ;;  %3022 = vmatmul.msk.f32.vlgmr.msrb.gmra.mxu3 %vm2308_vm13, %v2291_v0 }
 0x304   : > { %1680 = vst.msk [vmem:[#allocation3 + $0xc8] sm:$0xff] %vm1654_vm8, %v1609_v9 }
 0x305   : > { %1810 = vrot.lane.b32.xlu0 %v4517_v47, %s3280_s9 }
 0x307   : > { %1600 = vrot.lane.b32.xlu1 %v1515_v50, %s3279_s20  ;;  %v1996_v52 = vpop.permute.xlu0 %1995  ;;  %v2450_v60 = vpop.f32.mrf.mxu1 }
 0x308   : > { %1987 = vrot.lane.b32.xlu2 %v4522_v1, %s3281_s21  ;;  %v2451_v19 = vadd.f32 %v4086_v17, %v2450_v60  ;;  %v2105_v60 = vld [vmem:[#allocation2 + $0x1a2] sm:$0xff] }
 0x309   : > { %v1787_v43 = vpop.permute.xlu1 %1786 }
 0x30a   : > { %v2530_v33 = vmax.f32 %v2451_v19, 0.0  ;;  %1866 = vst.msk [vmem:[#allocation3 + $0x88] sm:$0xff] %vm1848_vm10, %v1787_v43  ;;  %v1982_v28 = vpop.permute.xlu2 %1981  ;;  %v3148_v43 = vld [vmem:[%s3416_s16 + $0x38] sm:$0xff] }
 0x30b   : > { %2059 = vst.msk [vmem:[#allocation3 + $0x88] sm:$0xff] %vm2041_vm11, %v1980_v36 }
 0x30c   : > { %2252 = vst.msk [vmem:[#allocation3 + $0x88] sm:$0xff] %vm2234_vm12, %v2173_v21  ;;  %3039 = vmatmul.msk.f32.gmra.mxu2 %vm299_vm1, %v2530_v33 }
 0x30d   : > { %2196 = vrot.lane.b32.xlu0 %v4531_v46, %s3282_s23 }
 0x30f   : > { %1616 = vrot.lane.b32.xlu1 %v4448_v53, %s3279_s20  ;;  %v1225_v63 = vpop.permute.xlu0 %1224  ;;  %v4550_v53 = vld [vmem:[#allocation2 + $0x12a] sm:$0xff] }
 0x310   : > { %2003 = vrot.lane.b32.xlu2 %v4537_v34, %s3281_s21  ;;  %1295 = vst.msk [vmem:[#allocation3 + $0xd0] sm:$0xff] %vm1268_vm6, %v1225_v63 }
 0x311   : > { %1488 = vst.msk [vmem:[#allocation3 + $0xd0] sm:$0xff] %vm1461_vm7, %v1418_v44  ;;  %v1803_v7 = vpop.permute.xlu1 %1802  ;;  %v2453_v11 = vpop.f32.mrf.mxu1  ;;  %v1719_v44 = vld [vmem:[#allocation2 + $0x1a0] sm:$0xff] }
 0x312   : > { %1874 = vst.msk [vmem:[#allocation3 + $0xc8] sm:$0xff] %vm1848_vm10, %v1803_v7  ;;  %v1998_v20 = vpop.permute.xlu2 %1997  ;;  %v2454_v8 = vadd.f32 %v4086_v17, %v2453_v11 }
 0x313   : > { %2067 = vst.msk [vmem:[#allocation3 + $0xc8] sm:$0xff] %vm2041_vm11, %v1996_v52  ;;  %v2284_v45 = vld [vmem:[#allocation3 + $0x88] sm:$0xff] }
 0x314   : > { %v2531_v55 = vmax.f32 %v2454_v8, 0.0  ;;  %3015 = vmatmul.msk.f32.gmra.mxu1 %vm2308_vm13, %v2284_v45 }
 0x315   : > { %1232 = vrot.lane.b32.xlu0 %v4491_v51, %s3278_s15 }
 0x316   : > { %3040 = vmatmul.msk.f32.gmra.mxu2 %vm299_vm1, %v2531_v55 }
 0x317   : > { %2180 = vrot.lane.b32.xlu1 %v4550_v53, %s3282_s23  ;;  %v1789_v61 = vpop.permute.xlu0 %1788 }
 0x318   : > { %1409 = vrot.lane.b32.xlu2 %v1323_v38, %s3277_s19 }
 0x319   : > { %v2189_v54 = vpop.permute.xlu1 %2188 }
 0x31a   : > { %2260 = vst.msk [vmem:[#allocation3 + $0xc8] sm:$0xff] %vm2234_vm12, %v2189_v54  ;;  %v1227_v18 = vpop.permute.xlu2 %1226 }
 0x31b   : > { %1296 = vst.msk [vmem:[#allocation3 + $0xd8] sm:$0xff] %vm1268_vm6, %v1227_v18 }
 0x31d   : > { %1796 = vrot.lane.b32.xlu0 %v4101_v39, %s3280_s9 }
 0x31f   : > { %1216 = vrot.lane.b32.xlu1 %v4048_v48, %s3278_s15  ;;  %v1805_v4 = vpop.permute.xlu0 %1804  ;;  %v1516_v48 = vld [vmem:[#allocation2 + $0x122] sm:$0xff] }
 0x320   : > { %1425 = vrot.lane.b32.xlu2 %v4477_v42, %s3277_s19  ;;  %v2456_v16 = vpop.f32.mrf.mxu1 }
 0x321   : > { %v2457_v2 = vadd.f32 %v4086_v17, %v2456_v16  ;;  %v1595_v31 = vpop.permute.xlu1 %1594  ;;  %v2292_v5 = vld [vmem:[#allocation3 + $0xc8] sm:$0xff] }
 0x322   : > { %1673 = vst.msk [vmem:[#allocation3 + $0x90] sm:$0xff] %vm1654_vm8, %v1595_v31  ;;  %v1791_v23 = vpop.permute.xlu2 %1790  ;;  %3023 = vmatmul.msk.f32.gmra.mxu3 %vm2308_vm13, %v2292_v5  ;;  %v1903_v17 = vld [vmem:[#allocation2 + $0x139] sm:$0xff] }
 0x323   : > { %v2532_v12 = vmax.f32 %v2457_v2, 0.0  ;;  %1867 = vst.msk [vmem:[#allocation3 + $0x90] sm:$0xff] %vm1848_vm10, %v1789_v61 }
 0x324   : > { %2060 = vst.msk [vmem:[#allocation3 + $0x90] sm:$0xff] %vm2041_vm11, %v1982_v28  ;;  %v1912_v28 = vld [vmem:[#allocation2 + $0x1a1] sm:$0xff] }
 0x325   : > { %1812 = vrot.lane.b32.xlu0 %v1718_v15, %s3280_s9  ;;  %3041 = vmatmul.msk.f32.gmra.mxu2 %vm299_vm1, %v2532_v12 }
 0x327   : > { %1602 = vrot.lane.b32.xlu1 %v1516_v48, %s3279_s20  ;;  %v2191_v39 = vpop.permute.xlu0 %2190 }
 0x328   : > { %1989 = vrot.lane.b32.xlu2 %v1903_v17, %s3281_s21 }
 0x329   : > { %v1611_v59 = vpop.permute.xlu1 %1610 }
 0x32a   : > { %1681 = vst.msk [vmem:[#allocation3 + $0xd0] sm:$0xff] %vm1654_vm8, %v1611_v59  ;;  %v1807_v56 = vpop.permute.xlu2 %1806 }
 0x32b   : > { %1875 = vst.msk [vmem:[#allocation3 + $0xd0] sm:$0xff] %vm1848_vm10, %v1805_v4 }
 0x32c   : > { %2068 = vst.msk [vmem:[#allocation3 + $0xd0] sm:$0xff] %vm2041_vm11, %v1998_v20 }
 0x32d   : > { %2261 = vst.msk [vmem:[#allocation3 + $0xd0] sm:$0xff] %vm2234_vm12, %v2191_v39  ;;  %2198 = vrot.lane.b32.xlu0 %v2104_v3, %s3282_s23 }
 0x32f   : > { %1618 = vrot.lane.b32.xlu1 %v4506_v22, %s3279_s20  ;;  %v1597_v9 = vpop.permute.xlu0 %1596  ;;  %v2459_v42 = vpop.f32.mrf.mxu1 }
 0x330   : > { %2005 = vrot.lane.b32.xlu2 %v1911_v6, %s3281_s21  ;;  %v2460_v26 = vadd.f32 %v4583_v13, %v2459_v42 }
 0x331   : > { %v2175_v21 = vpop.permute.xlu1 %2174 }
 0x332   : > { %v2533_v51 = vmax.f32 %v2460_v26, 0.0  ;;  %2253 = vst.msk [vmem:[#allocation3 + $0x90] sm:$0xff] %vm2234_vm12, %v2175_v21  ;;  %v2193_v57 = vpop.permute.xlu2 %2192 }
 0x334   : > { %3042 = vmatmul.msk.f32.gmra.mxu2 %vm299_vm1, %v2533_v51  ;;  %v2293_v24 = vld [vmem:[#allocation3 + $0xd0] sm:$0xff] }
 0x335   : > { %1234 = vrot.lane.b32.xlu0 %v4517_v47, %s3278_s15  ;;  %3024 = vmatmul.msk.f32.gmra.mxu3 %vm2308_vm13, %v2293_v24 }
 0x337   : > { %2182 = vrot.lane.b32.xlu1 %v2096_v30, %s3282_s23  ;;  %v1613_v27 = vpop.permute.xlu0 %1612 }
 0x338   : > { %1411 = vrot.lane.b32.xlu2 %v4522_v1, %s3277_s19 }
 0x339   : > { %v1404_v10 = vpop.permute.xlu1 %1403  ;;  %v2462_v32 = vpop.f32.mrf.mxu1  ;;  %v2285_v25 = vld [vmem:[#allocation3 + $0x90] sm:$0xff] }
 0x33a   : > { %1481 = vst.msk [vmem:[#allocation3 + $0x98] sm:$0xff] %vm1461_vm7, %v1404_v10  ;;  %v1599_v41 = vpop.permute.xlu2 %1598  ;;  %v2463_v35 = vadd.f32 %v4583_v13, %v2462_v32  ;;  %3016 = vmatmul.msk.f32.gmra.mxu1 %vm2308_vm13, %v2285_v25 }
 0x33b   : > { %1674 = vst.msk [vmem:[#allocation3 + $0x98] sm:$0xff] %vm1654_vm8, %v1597_v9 }
 0x33c   : > { %1868 = vst.msk [vmem:[#allocation3 + $0x98] sm:$0xff] %vm1848_vm10, %v1791_v23  ;;  %v2534_v22 = vmax.f32 %v2463_v35, 0.0  ;;  %v3149_v35 = vld [vmem:[%s3416_s16 + $0x40] sm:$0xff] }
 0x33d   : > { %1798 = vrot.lane.b32.xlu0 %v3847_v29, %s3280_s9 }
 0x33e   : > { %3043 = vmatmul.msk.f32.gmra.mxu2 %vm299_vm1, %v2534_v22 }
 0x33f   : > { %1218 = vrot.lane.b32.xlu1 %v4050_v49, %s3278_s15  ;;  %v2177_v58 = vpop.permute.xlu0 %2176  ;;  %s3224_s15 = scalar_lea.hbm %s4868_s7, 512 }
 0x340   : > { %1427 = vrot.lane.b32.xlu2 %v4537_v34, %s3277_s19 }
 0x341   : > { %v1420_v36 = vpop.permute.xlu1 %1419 }
 0x342   : > { %1489 = vst.msk [vmem:[#allocation3 + $0xd8] sm:$0xff] %vm1461_vm7, %v1420_v36  ;;  %v1615_v37 = vpop.permute.xlu2 %1614 }
 0x343   : > { %1682 = vst.msk [vmem:[#allocation3 + $0xd8] sm:$0xff] %vm1654_vm8, %v1613_v27 }
 0x344   : > { %1876 = vst.msk [vmem:[#allocation3 + $0xd8] sm:$0xff] %vm1848_vm10, %v1807_v56 }
 0x345   : > { %1814 = vrot.lane.b32.xlu0 %v1719_v44, %s3280_s9 }
 0x347   : > { %1604 = vrot.lane.b32.xlu1 %v4550_v53, %s3279_s20  ;;  %v1406_v29 = vpop.permute.xlu0 %1405 }
 0x348   : > { %1991 = vrot.lane.b32.xlu2 %v4312_v40, %s3281_s21  ;;  %1482 = vst.msk [vmem:[#allocation3 + $0xa0] sm:$0xff] %vm1461_vm7, %v1406_v29  ;;  %v2465_v49 = vpop.f32.mrf.mxu1  ;;  %v2696_v0 = vpop.f32.mrf.mxu2 }
 0x349   : > { %1675 = vst.msk [vmem:[#allocation3 + $0xa0] sm:$0xff] %vm1654_vm8, %v1599_v41  ;;  %v2466_v47 = vadd.f32 %v4583_v13, %v2465_v49  ;;  %v2697_v50 = vadd.f32 %v4274_v62, %v2696_v0  ;;  %v1984_v1 = vpop.permute.xlu1 %1983 }
 0x34a   : > { %2061 = vst.msk [vmem:[#allocation3 + $0x98] sm:$0xff] %vm2041_vm11, %v1984_v1  ;;  %v2179_v52 = vpop.permute.xlu2 %2178 }
 0x34b   : > { %v2535_v19 = vmax.f32 %v2466_v47, 0.0  ;;  %v2778_v33 = vadd.f32 %v3148_v43, %v2697_v50  ;;  %2254 = vst.msk [vmem:[#allocation3 + $0x98] sm:$0xff] %vm2234_vm12, %v2177_v58  ;;  %v3150_v50 = vld [vmem:[%s3416_s16 + $0x48] sm:$0xff] }
 0x34d   : > { %v2810_v40 = vmax.f32 %v2778_v33, 0.0  ;;  %3044 = vmatmul.msk.f32.gmra.mxu2 %vm299_vm1, %v2535_v19  ;;  %2200 = vrot.lane.b32.xlu0 %v2105_v60, %s3282_s23 }
 0x34f   : > { %2842 = vst.msk [vmem:[%s4290_s18 + $0x38] sm:$0xff] %vm383_vm0, %v2810_v40  ;;  %1620 = vrot.lane.b32.xlu1 %v4531_v46, %s3279_s20  ;;  %v1422_v34 = vpop.permute.xlu0 %1421  ;;  %s3069_s20 = sshll.u32 %s3345_s28, 8  ;;  %s2868_s28 = scalar_lea.sflag [#allocation6], %s3410_s22 }
 0x350   : > { %2007 = vrot.lane.b32.xlu2 %v1912_v28, %s3281_s21 }
 0x351   : > { %v2000_v63 = vpop.permute.xlu1 %1999 }
 0x352   : > { %2069 = vst.msk [vmem:[#allocation3 + $0xd8] sm:$0xff] %vm2041_vm11, %v2000_v63  ;;  %v1408_v7 = vpop.permute.xlu2 %1407  ;;  %v2286_v11 = vld [vmem:[#allocation3 + $0x98] sm:$0xff] }
 0x353   : > { %2262 = vst.msk [vmem:[#allocation3 + $0xd8] sm:$0xff] %vm2234_vm12, %v2193_v57  ;;  %3017 = vmatmul.msk.f32.gmra.mxu1 %vm2308_vm13, %v2286_v11 }
 0x354   : > { %1483 = vst.msk [vmem:[#allocation3 + $0xa8] sm:$0xff] %vm1461_vm7, %v1408_v7  ;;  %v3151_v7 = vld [vmem:[%s3416_s16 + $0x50] sm:$0xff] }
 0x357   : > { %2184 = vrot.lane.b32.xlu1 %v4332_v14, %s3282_s23  ;;  %v1986_v20 = vpop.permute.xlu0 %1985  ;;  %v2468_v8 = vpop.f32.mrf.mxu1  ;;  %s2879_s23 = scalar_lea.hbm %s4868_s7, %s3069_s20 }
 0x358   : > { %v2469_v46 = vadd.f32 %v4583_v13, %v2468_v8  ;;  %s2882_s10 = sshll.u32 %s2879_s23, 4  ;;  %s2883_s10 = int_to_ptr.hbm [resolvable:$true] %s2882_s10 }
 0x359   : > { %v1229_v45 = vpop.permute.xlu1 %1228  ;;  %s3218_s29 = sshra.s32 %s2883_s10, 4  ;;  %s3219_s29 = int_to_ptr.hbm [resolvable:$true] %s3218_s29 }
 0x35a   : > { %v2536_v55 = vmax.f32 %v2469_v46, 0.0  ;;  %1297 = vst.msk [vmem:[#allocation3 + $0xe0] sm:$0xff] %vm1268_vm6, %v1229_v45  ;;  %v1424_v53 = vpop.permute.xlu2 %1423  ;;  %v2294_v38 = vld [vmem:[#allocation3 + $0xd8] sm:$0xff]  ;;  %s3220_s8 = scalar_lea.hbm %s3219_s29, 256  ;;  %p3225_p0 = scmp.lt.s32.totalorder %s3219_s29, %s4868_s7 }
 0x35b   : > { %1490 = vst.msk [vmem:[#allocation3 + $0xe0] sm:$0xff] %vm1461_vm7, %v1422_v34  ;;  %3025 = vmatmul.msk.f32.gmra.mxu3 %vm2308_vm13, %v2294_v38  ;;  %p3221_p6 = scmp.ne.s32.totalorder %s3219_s29, %s3220_s8  ;;  %p3226_p1 = scmp.lt.s32.totalorder %s3224_s15, %s3220_s8 }
 0x35c   : > { %1683 = vst.msk [vmem:[#allocation3 + $0xe0] sm:$0xff] %vm1654_vm8, %v1615_v37  ;;  %3045 = vmatmul.msk.f32.gmra.mxu2 %vm299_vm1, %v2536_v55 }
 0x35d   : > { %p3222_p9 = pnand %p3221_p6, %p3374_p11  ;;  %p3227_p3 = por %p3226_p1, %p3225_p0 }
 0x35f   : > { %v2002_v61 = vpop.permute.xlu0 %2001  ;;  %p3223_p13 = pneg %p3222_p9 }
 0x361   : > { %v1793_v14 = vpop.permute.xlu1 %1792  ;;  %v2471_v54 = vpop.f32.mrf.mxu1  ;;  %p3228_p4 = pnand %p3227_p3, %p3223_p13 }
 0x362   : > { %1869 = vst.msk [vmem:[#allocation3 + $0xa0] sm:$0xff] %vm1848_vm10, %v1793_v14  ;;  %v1988_v18 = vpop.permute.xlu2 %1987  ;;  %v2472_v4 = vadd.f32 %v4583_v13, %v2471_v54  ;;  %v4700_v14 = vld [vmem:[%s4867_s6] ss:$0 sm:$0xff] }
 0x363   : > { %2062 = vst.msk [vmem:[#allocation3 + $0xa0] sm:$0xff] %vm2041_vm11, %v1986_v20 }
 0x364   : > { %2255 = vst.msk [vmem:[#allocation3 + $0xa0] sm:$0xff] %vm2234_vm12, %v2179_v52  ;;  %v2537_v16 = vmax.f32 %v2472_v4, 0.0 }
 0x366   : > { %3046 = vmatmul.msk.f32.gmra.mxu2 %vm299_vm1, %v2537_v16 }
 0x367   : > { %v1231_v2 = vpop.permute.xlu0 %1230 }
 0x368   : > { %1298 = vst.msk [vmem:[#allocation3 + $0xe8] sm:$0xff] %vm1268_vm6, %v1231_v2  ;;  %v3153_v2 = vld [vmem:[%s3416_s16 + $0x58] sm:$0xff] }
 0x369   : > { %1491 = vst.msk [vmem:[#allocation3 + $0xe8] sm:$0xff] %vm1461_vm7, %v1424_v53  ;;  %v1809_v31 = vpop.permute.xlu1 %1808 }
 0x36a   : > { %1877 = vst.msk [vmem:[#allocation3 + $0xe0] sm:$0xff] %vm1848_vm10, %v1809_v31  ;;  %v2004_v23 = vpop.permute.xlu2 %2003 }
 0x36b   : > { %2070 = vst.msk [vmem:[#allocation3 + $0xe0] sm:$0xff] %vm2041_vm11, %v2002_v61  ;;  %v2287_v5 = vld [vmem:[#allocation3 + $0xa0] sm:$0xff] }
 0x36c   : > { %3018 = vmatmul.msk.f32.gmra.mxu1 %vm2308_vm13, %v2287_v5 }
 0x36f   : > { %v1795_v15 = vpop.permute.xlu0 %1794 }
 0x371   : > { %v2195_v12 = vpop.permute.xlu1 %2194 }
 0x372   : > { %2263 = vst.msk [vmem:[#allocation3 + $0xe0] sm:$0xff] %vm2234_vm12, %v2195_v12  ;;  %v1410_v48 = vpop.permute.xlu2 %1409 }
 0x377   : > { %v1811_v17 = vpop.permute.xlu0 %1810 }
 0x378   : > { %v2474_v39 = vpop.f32.mrf.mxu1 }
 0x379   : > { %v2475_v59 = vadd.f32 %v4583_v13, %v2474_v39  ;;  %v1601_v56 = vpop.permute.xlu1 %1600  ;;  %v2295_v3 = vld [vmem:[#allocation3 + $0xe0] sm:$0xff] }
 0x37a   : > { %1676 = vst.msk [vmem:[#allocation3 + $0xa8] sm:$0xff] %vm1654_vm8, %v1601_v56  ;;  %3026 = vmatmul.msk.f32.gmra.mxu3 %vm2308_vm13, %v2295_v3  ;;  %v1426_v42 = vpop.permute.xlu2 %1425 }
 0x37b   : > { %v2538_v6 = vmax.f32 %v2475_v59, 0.0  ;;  %1870 = vst.msk [vmem:[#allocation3 + $0xa8] sm:$0xff] %vm1848_vm10, %v1795_v15  ;;  %v3154_v59 = vld [vmem:[%s3416_s16 + $0x60] sm:$0xff] }
 0x37c   : > { %2063 = vst.msk [vmem:[#allocation3 + $0xa8] sm:$0xff] %vm2041_vm11, %v1988_v18 }
 0x37d   : > { %3047 = vmatmul.msk.f32.gmra.mxu2 %vm299_vm1, %v2538_v6 }
 0x37f   : > { %v2197_v9 = vpop.permute.xlu0 %2196 }
 0x381   : > { %v1617_v26 = vpop.permute.xlu1 %1616 }
 0x382   : > { %1684 = vst.msk [vmem:[#allocation3 + $0xe8] sm:$0xff] %vm1654_vm8, %v1617_v26  ;;  %v1990_v57 = vpop.permute.xlu2 %1989 }
 0x383   : > { %1878 = vst.msk [vmem:[#allocation3 + $0xe8] sm:$0xff] %vm1848_vm10, %v1811_v17 }
 0x384   : > { %2071 = vst.msk [vmem:[#allocation3 + $0xe8] sm:$0xff] %vm2041_vm11, %v2004_v23 }
 0x385   : > { %2264 = vst.msk [vmem:[#allocation3 + $0xe8] sm:$0xff] %vm2234_vm12, %v2197_v9 }
 0x386   : > { %v4713_v39 = vpop.f32.mrf.mxu3 }
 0x387   : > { %v1233_v21 = vpop.permute.xlu0 %1232 }
 0x388   : > { %1299 = vst.msk [vmem:[#allocation3 + $0xf0] sm:$0xff] %vm1268_vm6, %v1233_v21 }
 0x389   : > { %1492 = vst.msk [vmem:[#allocation3 + $0xf0] sm:$0xff] %vm1461_vm7, %v1426_v42  ;;  %v2181_v51 = vpop.permute.xlu1 %2180 }
 0x38a   : > { %2256 = vst.msk [vmem:[#allocation3 + $0xa8] sm:$0xff] %vm2234_vm12, %v2181_v51  ;;  %v2006_v36 = vpop.permute.xlu2 %2005 }
 0x38c   : > { %v2296_v24 = vld [vmem:[#allocation3 + $0xe8] sm:$0xff] }
 0x38d   : > { %3027 = vmatmul.msk.f32.gmra.mxu3 %vm2308_vm13, %v2296_v24 }
 0x38f   : > { %v1797_v30 = vpop.permute.xlu0 %1796  ;;  %v2699_v27 = vpop.f32.mrf.mxu2 }
 0x390   : > { %v2700_v10 = vadd.f32 %v4274_v62, %v2699_v27 }
 0x391   : > { %v1217_v32 = vpop.permute.xlu1 %1216  ;;  %v2477_v25 = vpop.f32.mrf.mxu1  ;;  %v2288_v41 = vld [vmem:[#allocation3 + $0xa8] sm:$0xff] }
 0x392   : > { %v2779_v22 = vadd.f32 %v3149_v35, %v2700_v10  ;;  %1291 = vst.msk [vmem:[#allocation3 + $0xb0] sm:$0xff] %vm1268_vm6, %v1217_v32  ;;  %v2478_v58 = vadd.f32 %v4583_v13, %v2477_v25  ;;  %3019 = vmatmul.msk.f32.gmra.mxu1 %vm2308_vm13, %v2288_v41  ;;  %v1412_v52 = vpop.permute.xlu2 %1411  ;;  %v3155_v32 = vld [vmem:[%s3416_s16 + $0x68] sm:$0xff] }
 0x393   : > { %1484 = vst.msk [vmem:[#allocation3 + $0xb0] sm:$0xff] %vm1461_vm7, %v1410_v48 }
 0x394   : > { %v2811_v37 = vmax.f32 %v2779_v22, 0.0  ;;  %v2539_v44 = vmax.f32 %v2478_v58, 0.0 }
 0x396   : > { %2843 = vst.msk [vmem:[%s4290_s18 + $0x40] sm:$0xff] %vm383_vm0, %v2811_v37  ;;  %3048 = vmatmul.msk.f32.gmra.mxu2 %vm299_vm1, %v2539_v44 }
 0x397   : > { %v1813_v29 = vpop.permute.xlu0 %1812 }
 0x399   : > { %v1603_v49 = vpop.permute.xlu1 %1602  ;;  %v2702_v0 = vpop.f32.mrf.mxu2 }
 0x39a   : > { %1677 = vst.msk [vmem:[#allocation3 + $0xb0] sm:$0xff] %vm1654_vm8, %v1603_v49  ;;  %v2703_v47 = vadd.f32 %v4274_v62, %v2702_v0  ;;  %v1428_v40 = vpop.permute.xlu2 %1427  ;;  %v3156_v49 = vld [vmem:[%s3416_s16 + $0x70] sm:$0xff] }
 0x39b   : > { %1871 = vst.msk [vmem:[#allocation3 + $0xb0] sm:$0xff] %vm1848_vm10, %v1797_v30 }
 0x39c   : > { %2064 = vst.msk [vmem:[#allocation3 + $0xb0] sm:$0xff] %vm2041_vm11, %v1990_v57  ;;  %v2780_v1 = vadd.f32 %v3150_v50, %v2703_v47 }
 0x39e   : > { %v2812_v60 = vmax.f32 %v2780_v1, 0.0 }
 0x39f   : > { %v2199_v19 = vpop.permute.xlu0 %2198 }
 0x3a0   : > { %2844 = vst.msk [vmem:[%s4290_s18 + $0x48] sm:$0xff] %vm383_vm0, %v2812_v60 }
 0x3a1   : > { %v1619_v43 = vpop.permute.xlu1 %1618 }
 0x3a2   : > { %1685 = vst.msk [vmem:[#allocation3 + $0xf0] sm:$0xff] %vm1654_vm8, %v1619_v43  ;;  %v1992_v38 = vpop.permute.xlu2 %1991 }
 0x3a3   : > { %1879 = vst.msk [vmem:[#allocation3 + $0xf0] sm:$0xff] %vm1848_vm10, %v1813_v29 }
 0x3a4   : > { %2072 = vst.msk [vmem:[#allocation3 + $0xf0] sm:$0xff] %vm2041_vm11, %v2006_v36 }
 0x3a5   : > { %2265 = vst.msk [vmem:[#allocation3 + $0xf0] sm:$0xff] %vm2234_vm12, %v2199_v19  ;;  %v2501_v9 = vpop.f32.mrf.mxu3 }
 0x3a6   : > { %v2502_v26 = vadd.f32 %v4583_v13, %v2501_v9 }
 0x3a7   : > { %v1235_v33 = vpop.permute.xlu0 %1234 }
 0x3a8   : > { %1300 = vst.msk [vmem:[#allocation3 + $0xf8] sm:$0xff] %vm1268_vm6, %v1235_v33  ;;  %v2705_v28 = vpop.f32.mrf.mxu2  ;;  %v2547_v27 = vmax.f32 %v2502_v26, 0.0  ;;  %v3157_v33 = vld [vmem:[%s3416_s16 + $0x78] sm:$0xff] }
 0x3a9   : > { %1493 = vst.msk [vmem:[#allocation3 + $0xf8] sm:$0xff] %vm1461_vm7, %v1428_v40  ;;  %v2706_v34 = vadd.f32 %v4274_v62, %v2705_v28  ;;  %v2183_v63 = vpop.permute.xlu1 %2182 }
 0x3aa   : > { %2257 = vst.msk [vmem:[#allocation3 + $0xb0] sm:$0xff] %vm2234_vm12, %v2183_v63  ;;  %v2008_v23 = vpop.permute.xlu2 %2007 }
 0x3ab   : > { %v2781_v11 = vadd.f32 %v3151_v7, %v2706_v34 }
 0x3ac   : > { %v2297_v20 = vld [vmem:[#allocation3 + $0xf0] sm:$0xff] }
 0x3ad   : > { %v2813_v8 = vmax.f32 %v2781_v11, 0.0  ;;  %3028 = vmatmul.msk.f32.gmra.mxu3 %vm2308_vm13, %v2297_v20 }
 0x3af   : > { %2845 = vst.msk [vmem:[%s4290_s18 + $0x50] sm:$0xff] %vm383_vm0, %v2813_v8  ;;  %v1799_v46 = vpop.permute.xlu0 %1798  ;;  %v3158_v8 = vld [vmem:[%s3416_s16 + $0x80] sm:$0xff] }
 0x3b1   : > { %v1219_v45 = vpop.permute.xlu1 %1218  ;;  %v2289_v55 = vld [vmem:[#allocation3 + $0xb0] sm:$0xff] }
 0x3b2   : > { %1292 = vst.msk [vmem:[#allocation3 + $0xb8] sm:$0xff] %vm1268_vm6, %v1219_v45  ;;  %3020 = vmatmul.msk.f32.gmra.mxu1 %vm2308_vm13, %v2289_v55 }
 0x3b3   : > { %1485 = vst.msk [vmem:[#allocation3 + $0xb8] sm:$0xff] %vm1461_vm7, %v1412_v52 }
 0x3b7   : > { %v2480_v62 = vpop.f32.mrf.mxu1  ;;  %v2708_v53 = vpop.f32.mrf.mxu2 }
 0x3b8   : > { %v2481_v61 = vadd.f32 %v4583_v13, %v2480_v62  ;;  %v2709_v54 = vadd.f32 %v4700_v14, %v2708_v53  ;;  %v1815_v18 = vpop.permute.xlu0 %1814  ;;  %v2504_v41 = vpop.f32.mrf.mxu3 }
 0x3b9   : > { %v1605_v4 = vpop.permute.xlu1 %1604  ;;  %v2505_v22 = vadd.f32 %v4583_v13, %v2504_v41 }
 0x3ba   : > { %v2540_v16 = vmax.f32 %v2481_v61, 0.0  ;;  %v2782_v31 = vadd.f32 %v3153_v2, %v2709_v54  ;;  %1678 = vst.msk [vmem:[#allocation3 + $0xb8] sm:$0xff] %vm1654_vm8, %v1605_v4 }
 0x3bb   : > { %1872 = vst.msk [vmem:[#allocation3 + $0xb8] sm:$0xff] %vm1848_vm10, %v1799_v46  ;;  %v2548_v58 = vmax.f32 %v2505_v22, 0.0 }
 0x3bc   : > { %v2814_v5 = vmax.f32 %v2782_v31, 0.0  ;;  %2065 = vst.msk [vmem:[#allocation3 + $0xb8] sm:$0xff] %vm2041_vm11, %v1992_v38  ;;  %3049 = vmatmul.msk.f32.gmra.mxu2 %vm299_vm1, %v2540_v16  ;;  %v3159_v16 = vld [vmem:[%s3416_s16 + $0x88] sm:$0xff] }
 0x3be   : > { %2846 = vst.msk [vmem:[%s4290_s18 + $0x58] sm:$0xff] %vm383_vm0, %v2814_v5 }
 0x3c0   : > { %v2201_v17 = vpop.permute.xlu0 %2200 }
 0x3c1   : > { %v1621_v15 = vpop.permute.xlu1 %1620  ;;  %v2711_v12 = vpop.f32.mrf.mxu2 }
 0x3c2   : > { %1686 = vst.msk [vmem:[#allocation3 + $0xf8] sm:$0xff] %vm1654_vm8, %v1621_v15  ;;  %v2712_v48 = vadd.f32 %v4700_v14, %v2711_v12 }
 0x3c3   : > { %1880 = vst.msk [vmem:[#allocation3 + $0xf8] sm:$0xff] %vm1848_vm10, %v1815_v18 }
 0x3c4   : > { %v2783_v56 = vadd.f32 %v3154_v59, %v2712_v48  ;;  %2073 = vst.msk [vmem:[#allocation3 + $0xf8] sm:$0xff] %vm2041_vm11, %v2008_v23 }
 0x3c5   : > { %2266 = vst.msk [vmem:[#allocation3 + $0xf8] sm:$0xff] %vm2234_vm12, %v2201_v17 }
 0x3c6   : > { %v2815_v3 = vmax.f32 %v2783_v56, 0.0 }
 0x3c8   : > { %2847 = vst.msk [vmem:[%s4290_s18 + $0x60] sm:$0xff] %vm383_vm0, %v2815_v3  ;;  %v3160_v3 = vld [vmem:[%s3416_s16 + $0x90] sm:$0xff] }
 0x3c9   : > { %v2185_v6 = vpop.permute.xlu1 %2184 }
 0x3ca   : > { %2258 = vst.msk [vmem:[#allocation3 + $0xb8] sm:$0xff] %vm2234_vm12, %v2185_v6 }
 0x3cc   : > { %v2298_v42 = vld [vmem:[#allocation3 + $0xf8] sm:$0xff] }
 0x3cd   : > { %3029 = vmatmul.msk.f32.gmra.mxu3 %vm2308_vm13, %v2298_v42 }
 0x3d0   : > { %v2483_v21 = vpop.f32.mrf.mxu1  ;;  %v2714_v51 = vpop.f32.mrf.mxu2 }
 0x3d1   : > { %v2484_v57 = vadd.f32 %v4583_v13, %v2483_v21  ;;  %v2715_v24 = vadd.f32 %v4700_v14, %v2714_v51  ;;  %v2290_v30 = vld [vmem:[#allocation3 + $0xb8] sm:$0xff] }
 0x3d2   : > { %3021 = vmatmul.msk.f32.gmra.mxu1 %vm2308_vm13, %v2290_v30  ;;  %v2499_v30 = vadd.f32 %v4583_v13, %v4713_v39 }
 0x3d3   : > { %v2541_v10 = vmax.f32 %v2484_v57, 0.0  ;;  %v2784_v25 = vadd.f32 %v3155_v32, %v2715_v24 }
 0x3d4   : > { %v2546_v41 = vmax.f32 %v2499_v30, 0.0 }
 0x3d5   : > { %v2816_v35 = vmax.f32 %v2784_v25, 0.0  ;;  %3050 = vmatmul.msk.f32.gmra.mxu2 %vm299_vm1, %v2541_v10  ;;  %3056 = vmatmul.msk.f32.vlgmr.msra.gmra.mxu3 %vm299_vm1, %v2547_v27 }
 0x3d7   : > { %2848 = vst.msk [vmem:[%s4290_s18 + $0x68] sm:$0xff] %vm383_vm0, %v2816_v35  ;;  %v3161_v35 = vld [vmem:[%s3416_s16 + $0x98] sm:$0xff] }
 0x3dd   : > { %3057 = vmatmul.msk.f32.gmra.mxu3 %vm299_vm1, %v2548_v58  ;;  %v3162_v58 = vld [vmem:[%s3416_s16 + $0xc8] sm:$0xff] }
 0x3de   : > { %v2507_v36 = vpop.f32.mrf.mxu3 }
 0x3df   : > { %v2508_v37 = vadd.f32 %v4583_v13, %v2507_v36  ;;  %v2717_v44 = vpop.f32.mrf.mxu2 }
 0x3e0   : > { %v2718_v29 = vadd.f32 %v4700_v14, %v2717_v44 }
 0x3e1   : > { %v2549_v47 = vmax.f32 %v2508_v37, 0.0 }
 0x3e2   : > { %v2785_v0 = vadd.f32 %v3156_v49, %v2718_v29  ;;  %v3163_v29 = vld [vmem:[%s3416_s16 + $0xd0] sm:$0xff] }
 0x3e4   : > { %v2817_v50 = vmax.f32 %v2785_v0, 0.0 }
 0x3e5   : > { %3058 = vmatmul.msk.f32.gmra.mxu3 %vm299_vm1, %v2549_v47 }
 0x3e6   : > { %2849 = vst.msk [vmem:[%s4290_s18 + $0x70] sm:$0xff] %vm383_vm0, %v2817_v50 }
 0x3e9   : > { %v2486_v1 = vpop.f32.mrf.mxu1  ;;  %v2720_v52 = vpop.f32.mrf.mxu2 }
 0x3ea   : > { %v2487_v60 = vadd.f32 %v4583_v13, %v2486_v1  ;;  %v2721_v19 = vadd.f32 %v4700_v14, %v2720_v52  ;;  %v3164_v1 = vld [vmem:[%s3416_s16 + $0xd8] sm:$0xff] }
 0x3ec   : > { %v2542_v43 = vmax.f32 %v2487_v60, 0.0  ;;  %v2786_v40 = vadd.f32 %v3157_v33, %v2721_v19  ;;  %v3165_v33 = vld [vmem:[%s3416_s16 + $0xa0] sm:$0xff] }
 0x3ee   : > { %v2818_v28 = vmax.f32 %v2786_v40, 0.0  ;;  %3051 = vmatmul.msk.f32.gmra.mxu2 %vm299_vm1, %v2542_v43 }
 0x3f0   : > { %2850 = vst.msk [vmem:[%s4290_s18 + $0x78] sm:$0xff] %vm383_vm0, %v2818_v28 }
 0x3fd   : > { %v2510_v34 = vpop.f32.mrf.mxu3 }
 0x3fe   : > { %v2511_v63 = vadd.f32 %v4583_v13, %v2510_v34 }
 0x400   : > { %v2550_v7 = vmax.f32 %v2511_v63, 0.0  ;;  %v2723_v11 = vpop.f32.mrf.mxu2 }
 0x401   : > { %v2724_v20 = vadd.f32 %v4700_v14, %v2723_v11 }
 0x402   : > { %3059 = vmatmul.msk.f32.gmra.mxu3 %vm299_vm1, %v2550_v7  ;;  %v3166_v7 = vld [vmem:[%s3416_s16 + $0xe0] sm:$0xff] }
 0x403   : > { %v2787_v46 = vadd.f32 %v3158_v8, %v2724_v20 }
 0x405   : > { %v2819_v45 = vmax.f32 %v2787_v46, 0.0 }
 0x407   : > { %2851 = vst.msk [vmem:[%s4290_s18 + $0x80] sm:$0xff] %vm383_vm0, %v2819_v45 }
 0x40f   : > { %v2489_v55 = vpop.f32.mrf.mxu1 }
 0x410   : > { %v2490_v62 = vadd.f32 %v4583_v13, %v2489_v55  ;;  %v2513_v53 = vpop.f32.mrf.mxu3 }
 0x411   : > { %v2514_v38 = vadd.f32 %v4583_v13, %v2513_v53 }
 0x412   : > { %v2543_v61 = vmax.f32 %v2490_v62, 0.0  ;;  %v3167_v62 = vld [vmem:[%s3416_s16 + $0xa8] sm:$0xff] }
 0x413   : > { %v2551_v54 = vmax.f32 %v2514_v38, 0.0  ;;  %v3168_v38 = vld [vmem:[%s3416_s16 + $0xe8] sm:$0xff] }
 0x414   : > { %3052 = vmatmul.msk.f32.gmra.mxu2 %vm299_vm1, %v2543_v61 }
 0x415   : > { %3060 = vmatmul.msk.f32.gmra.mxu3 %vm299_vm1, %v2551_v54 }
 0x419   : > { %v2726_v18 = vpop.f32.mrf.mxu2 }
 0x41a   : > { %v2727_v4 = vadd.f32 %v4700_v14, %v2726_v18 }
 0x41c   : > { %v2788_v2 = vadd.f32 %v3159_v16, %v2727_v4 }
 0x41e   : > { %v2820_v31 = vmax.f32 %v2788_v2, 0.0 }
 0x420   : > { %2852 = vst.msk [vmem:[%s4290_s18 + $0x88] sm:$0xff] %vm383_vm0, %v2820_v31 }
 0x42f   : > { %v2492_v5 = vpop.f32.mrf.mxu1 }
 0x430   : > { %v2493_v23 = vadd.f32 %v4583_v13, %v2492_v5  ;;  %v2516_v15 = vpop.f32.mrf.mxu3  ;;  %v3169_v5 = vld [vmem:[%s3416_s16 + $0xb0] sm:$0xff] }
 0x431   : > { %v2517_v12 = vadd.f32 %v4583_v13, %v2516_v15  ;;  %v3170_v15 = vld [vmem:[%s3416_s16 + $0xf0] sm:$0xff] }
 0x432   : > { %v2544_v48 = vmax.f32 %v2493_v23, 0.0 }
 0x433   : > { %v2552_v17 = vmax.f32 %v2517_v12, 0.0 }
 0x434   : > { %3053 = vmatmul.msk.f32.gmra.mxu2 %vm299_vm1, %v2544_v48 }
 0x435   : > { %3061 = vmatmul.msk.f32.gmra.mxu3 %vm299_vm1, %v2552_v17 }
 0x43f   : > { %v2729_v59 = vpop.f32.mrf.mxu2 }
 0x440   : > { %v2730_v56 = vadd.f32 %v4700_v14, %v2729_v59 }
 0x442   : > { %v2789_v6 = vadd.f32 %v3160_v3, %v2730_v56 }
 0x444   : > { %v2821_v9 = vmax.f32 %v2789_v6, 0.0 }
 0x446   : > { %2853 = vst.msk [vmem:[%s4290_s18 + $0x90] sm:$0xff] %vm383_vm0, %v2821_v9  ;;  %v3171_v9 = vld [vmem:[%s3416_s16 + $0xb8] sm:$0xff] }
 0x44f   : > { %v2495_v42 = vpop.f32.mrf.mxu1 }
 0x450   : > { %v2496_v26 = vadd.f32 %v4583_v13, %v2495_v42  ;;  %v2519_v21 = vpop.f32.mrf.mxu3 }
 0x451   : > { %v2520_v51 = vadd.f32 %v4583_v13, %v2519_v21 }
 0x452   : > { %v2545_v57 = vmax.f32 %v2496_v26, 0.0  ;;  %v3172_v26 = vld [vmem:[%s3416_s16 + $0xf8] sm:$0xff] }
 0x453   : > { %v2553_v24 = vmax.f32 %v2520_v51, 0.0 }
 0x454   : > { %3054 = vmatmul.msk.f32.gmra.mxu2 %vm299_vm1, %v2545_v57 }
 0x455   : > { %3062 = vmatmul.msk.f32.gmra.mxu3 %vm299_vm1, %v2553_v24 }
 0x458   : > { %v2732_v27 = vpop.f32.mrf.mxu2  ;;  %v2750_v10 = vpop.f32.mrf.mxu3 }
 0x459   : > { %v2733_v32 = vadd.f32 %v4700_v14, %v2732_v27  ;;  %v2751_v25 = vadd.f32 %v4700_v14, %v2750_v10  ;;  %v3173_v27 = vld [vmem:[%s3416_s16 + $0xc0] sm:$0xff] }
 0x45b   : > { %v2790_v22 = vadd.f32 %v3161_v35, %v2733_v32  ;;  %v2796_v36 = vadd.f32 %v3162_v58, %v2751_v25 }
 0x45c   : > { %3055 = vmatmul.msk.f32.gmra.mxu2 %vm299_vm1, %v2546_v41 }
 0x45d   : > { %v2822_v37 = vmax.f32 %v2790_v22, 0.0  ;;  %v2828_v44 = vmax.f32 %v2796_v36, 0.0 }
 0x45f   : > { %2854 = vst.msk [vmem:[%s4290_s18 + $0x98] sm:$0xff] %vm383_vm0, %v2822_v37 }
 0x460   : > { %2860 = vst.msk [vmem:[%s4290_s18 + $0xc8] sm:$0xff] %vm383_vm0, %v2828_v44  ;;  %v2753_v13 = vpop.f32.mrf.mxu3 }
 0x461   : > { %v2754_v39 = vadd.f32 %v4700_v14, %v2753_v13 }
 0x463   : > { %v2797_v49 = vadd.f32 %v3163_v29, %v2754_v39 }
 0x465   : > { %v2829_v0 = vmax.f32 %v2797_v49, 0.0 }
 0x467   : > { %2861 = vst.msk [vmem:[%s4290_s18 + $0xd0] sm:$0xff] %vm383_vm0, %v2829_v0 }
 0x468   : > { %v2756_v47 = vpop.f32.mrf.mxu3 }
 0x469   : > { %v2757_v50 = vadd.f32 %v4700_v14, %v2756_v47 }
 0x46b   : > { %v2798_v52 = vadd.f32 %v3164_v1, %v2757_v50 }
 0x46d   : > { %v2830_v60 = vmax.f32 %v2798_v52, 0.0 }
 0x46f   : > { %2862 = vst.msk [vmem:[%s4290_s18 + $0xd8] sm:$0xff] %vm383_vm0, %v2830_v60 }
 0x471   : > { %v2735_v19 = vpop.f32.mrf.mxu2 }
 0x472   : > { %v2736_v43 = vadd.f32 %v4700_v14, %v2735_v19 }
 0x474   : > { %v2791_v40 = vadd.f32 %v3165_v33, %v2736_v43 }
 0x476   : > { %v2823_v28 = vmax.f32 %v2791_v40, 0.0 }
 0x478   : > { %2855 = vst.msk [vmem:[%s4290_s18 + $0xa0] sm:$0xff] %vm383_vm0, %v2823_v28 }
 0x485   : > { %v2759_v34 = vpop.f32.mrf.mxu3 }
 0x486   : > { %v2760_v63 = vadd.f32 %v4700_v14, %v2759_v34 }
 0x488   : > { %v2799_v11 = vadd.f32 %v3166_v7, %v2760_v63 }
 0x48a   : > { %v2831_v20 = vmax.f32 %v2799_v11, 0.0 }
 0x48c   : > { %2863 = vst.msk [vmem:[%s4290_s18 + $0xe0] sm:$0xff] %vm383_vm0, %v2831_v20 }
 0x497   : > { %v2738_v8 = vpop.f32.mrf.mxu2 }
 0x498   : > { %v2739_v46 = vadd.f32 %v4700_v14, %v2738_v8  ;;  %v2762_v45 = vpop.f32.mrf.mxu3 }
 0x499   : > { %v2763_v55 = vadd.f32 %v4700_v14, %v2762_v45 }
 0x49a   : > { %v2792_v53 = vadd.f32 %v3167_v62, %v2739_v46 }
 0x49b   : > { %v2800_v61 = vadd.f32 %v3168_v38, %v2763_v55 }
 0x49c   : > { %v2824_v54 = vmax.f32 %v2792_v53, 0.0 }
 0x49d   : > { %v2832_v18 = vmax.f32 %v2800_v61, 0.0 }
 0x49e   : > { %2856 = vst.msk [vmem:[%s4290_s18 + $0xa8] sm:$0xff] %vm383_vm0, %v2824_v54 }
 0x49f   : > { %2864 = vst.msk [vmem:[%s4290_s18 + $0xe8] sm:$0xff] %vm383_vm0, %v2832_v18 }
 0x4b7   : > { %v2741_v4 = vpop.f32.mrf.mxu2 }
 0x4b8   : > { %v2742_v16 = vadd.f32 %v4700_v14, %v2741_v4  ;;  %v2765_v2 = vpop.f32.mrf.mxu3 }
 0x4b9   : > { %v2766_v31 = vadd.f32 %v4700_v14, %v2765_v2 }
 0x4ba   : > { %v2793_v23 = vadd.f32 %v3169_v5, %v2742_v16 }
 0x4bb   : > { %v2801_v12 = vadd.f32 %v3170_v15, %v2766_v31 }
 0x4bc   : > { %v2825_v48 = vmax.f32 %v2793_v23, 0.0 }
 0x4bd   : > { %v2833_v17 = vmax.f32 %v2801_v12, 0.0 }
 0x4be   : > { %2857 = vst.msk [vmem:[%s4290_s18 + $0xb0] sm:$0xff] %vm383_vm0, %v2825_v48 }
 0x4bf   : > { %2865 = vst.msk [vmem:[%s4290_s18 + $0xf0] sm:$0xff] %vm383_vm0, %v2833_v17 }
 0x4d7   : > { %v2744_v59 = vpop.f32.mrf.mxu2 }
 0x4d8   : > { %v2745_v56 = vadd.f32 %v4700_v14, %v2744_v59  ;;  %v2768_v3 = vpop.f32.mrf.mxu3 }
 0x4d9   : > { %v2769_v6 = vadd.f32 %v4700_v14, %v2768_v3 }
 0x4da   : > { %v2794_v42 = vadd.f32 %v3171_v9, %v2745_v56 }
 0x4db   : > { %v2802_v21 = vadd.f32 %v3172_v26, %v2769_v6 }
 0x4dc   : > { %v2826_v51 = vmax.f32 %v2794_v42, 0.0 }
 0x4dd   : > { %v2834_v57 = vmax.f32 %v2802_v21, 0.0 }
 0x4de   : > { %2858 = vst.msk [vmem:[%s4290_s18 + $0xb8] sm:$0xff] %vm383_vm0, %v2826_v51 }
 0x4df   : > { %v2747_v24 = vpop.f32.mrf.mxu2  ;;  %2866 = vst.msk [vmem:[%s4290_s18 + $0xf8] sm:$0xff] %vm383_vm0, %v2834_v57 }
 0x4e0   : > { %v2748_v30 = vadd.f32 %v4700_v14, %v2747_v24 }
 0x4e2   : > { %v2795_v10 = vadd.f32 %v3173_v27, %v2748_v30 }
 0x4e4   : > { %v2827_v32 = vmax.f32 %v2795_v10, 0.0 }
 0x4e6   : > { %2859 = vst.msk [vmem:[%s4290_s18 + $0xc0] sm:$0xff] %vm383_vm0, %v2827_v32 }
 0x4e7   : > { %3231 = shalt.err (!%p3228_p4)
}
 0x4e8   : > { %s3283_s22 = smov 128  }
 0x4e9   : > { %3080 = dma.vmem_to_hbm [thread:$0]  (%p3374_p11), %s2881_s11, 4096, %s2883_s10, %s2868_s28, %s3283_s22, %s3283_s22, %s3276_s17  }
 0x4ea PF: > { %s2897_s18 = sand.u32 1, %s3258_s24   ;;  %p4875_p7 = scmp.ge.s32.totalorder %s3270_s27, 2 }
 0x4eb   : > { %s2898_s9 = scalar_lea.sflag [#allocation6], %s2897_s18 }
 0x4ec   : > { %p3087_p5 = pnand %p4875_p7, %p3378_p12 }
 0x4ee   : > { %p3088_p8 = pneg %p3087_p5 }
 0x4f0   : > { %3253 = dma.done.wait (%p3088_p8), %s2898_s9, 4096  }
 0x4f1   : > { %3255 = vsyncadd (%p3088_p8), %s2898_s9, 4294963200  ;;  %s4876_s21 = sld [smem:[#allocation10_spill]]  ;;  %p20_p10 = scmp.ge.s32.totalorder %s3349_s30, 4  }
 0x4f2   : > { %s4877_s24 = smov %s3262_s25  ;;  %s4878_s25 = smov %s3266_s26 }
 0x4f3   : > { %s4880_s27 = smov %s3349_s30  ;;  %22 = sbr.rel (!%p20_p10) target bundleno = 5 (0x5), region = 96 }
 0x4f7   : > { %s4879_s26 = smov %s4876_s21 }
 0x4f8   :  { %2904 = vsyncpa [#allocation5], 1 }
 0x4f9   :  { %2906 = vsyncpa [#allocation5 + $0x1], 1 }
 0x4fa   :  { %2907 = vsyncpa [#allocation6], 1 }
 0x4fb   :  { %2909 = vsyncpa [#allocation6 + $0x1], 1 }

</bundles_post_ra>
